<compile_context>
chip_gen: v6e
topology: v6e:2x2x1
jax: 0.10.0
libtpu: 0.0.40
codegen_flags: <defaults>
</compile_context>

<pallas_src>
import jax
import jax.numpy as jnp
from jax.experimental import pallas as pl
from jax.experimental.pallas import tpu as pltpu


def _sa2d_kernel(x_dst_ref, x_src_ref, a_ref, u_ref, wv_ref, bv_ref, gamma_ref,
                 o_ref, yt_sc, m_sc, l_sc, acc_sc):
    """One (batch, dest-tile, source-tile) grid step.

    affinity[i, j] = q[:, i] . k[:, j],  softmax over i (source axis)
    out[:, j]      = sum_i v[:, i] * att[i, j]
    """
    ki = pl.program_id(2)
    nk = pl.num_programs(2)

    # ---- init: first source tile of this destination tile -------------------
    @pl.when(ki == 0)
    def _init():
        # y[:, j] = A @ x[:, j] + u (the terms constant along the softmax axis
        # cancel exactly).  Stored transposed so every per-source-step matmul
        # below is in a canonical NN / NT MXU form (no per-step transposes).
        y = jnp.dot(a_ref[...], x_dst_ref[0].astype(jnp.bfloat16),
                    preferred_element_type=jnp.float32) + u_ref[...]   # (C, Tq)
        yt_sc[...] = y.T.astype(jnp.bfloat16)                          # (Tq, C)
        m_sc[...] = jnp.full(m_sc.shape, -jnp.inf, jnp.float32)
        l_sc[...] = jnp.zeros(l_sc.shape, jnp.float32)
        acc_sc[...] = jnp.zeros(acc_sc.shape, jnp.float32)

    # ---- online-softmax update for this source tile -------------------------
    x_src = x_src_ref[0]                                               # (C, Tk) bf16

    # s[j, i] = y[:, j] . x[:, i]   -> (Tq, Tk); softmax runs over i (axis 1).
    s = jnp.dot(yt_sc[...], x_src, preferred_element_type=jnp.float32)

    m_prev = m_sc[...]                                                 # (Tq, 1)
    m_new = jnp.maximum(m_prev, jnp.max(s, axis=1, keepdims=True))
    alpha = jnp.exp(m_prev - m_new)                                    # (Tq, 1)
    p = jnp.exp(s - m_new)                                             # (Tq, Tk)

    l_sc[...] = alpha * l_sc[...] + jnp.sum(p, axis=1, keepdims=True)
    # acc[j, :] += sum_i p[j, i] * x[:, i]  (value projection deferred).
    # NT dot (contract last dims) — same form as the canonical flash kernel.
    acc_sc[...] = alpha * acc_sc[...] + jax.lax.dot_general(
        p.astype(jnp.bfloat16), x_src, (((1,), (1,)), ((), ())),
        preferred_element_type=jnp.float32)
    m_sc[...] = m_new

    # ---- finalize: last source tile ------------------------------------------
    @pl.when(ki == nk - 1)
    def _finalize():
        inv_l = pl.reciprocal(l_sc[...], approx=True)                  # (Tq, 1)
        xatt_t = (acc_sc[...] * inv_l).astype(jnp.bfloat16)            # (Tq, C)
        # out[:, j] = Wv @ (x att)[:, j] + bv (att columns sum to 1), NT dot.
        out = jax.lax.dot_general(
            wv_ref[...], xatt_t, (((1,), (1,)), ((), ())),
            preferred_element_type=jnp.float32) + bv_ref[...]          # (C, Tq)
        gamma = gamma_ref[0]
        o_ref[0] = (gamma * out + x_dst_ref[0]).astype(o_ref.dtype)


def _rup(x, m):
    return -(-x // m) * m


def _vmem_budget_bytes():
    """Generation-aware VMEM budget (leaves headroom for Mosaic internals)."""
    cap = 64 * 1024 * 1024            # conservative default (v7x per-core VMEM)
    try:
        info = pltpu.get_tpu_info()
        cap = int(getattr(info, "vmem_capacity_bytes", cap))
    except Exception:
        pass
    return max(32 * 1024 * 1024, int(cap * 0.80))


def _vmem_estimate(C, tq, tk):
    """Bytes of VMEM: double-buffered blocks + scratch + (Tq,Tk) temporaries."""
    Cl = _rup(C, 128)                 # C as a lane (minor) dim
    Cs = _rup(C, 16)                  # C as a sublane dim (covers bf16 packing)
    tql, tkl = _rup(tq, 128), _rup(tk, 128)
    tqs = _rup(tq, 16)
    est = 0
    est += 2 * 4 * Cs * tql                           # x_dst (1,C,tq) f32, 2 bufs
    est += 2 * 4 * Cs * tql                           # out   (1,C,tq) f32, 2 bufs
    est += 2 * 2 * Cs * tkl                           # x_src (1,C,tk) bf16, 2 bufs
    est += 2 * (2 * Cs * Cl * 2 + 4 * Cs * 128 * 2)   # A, Wv (bf16) + u, bv (f32)
    est += 2 * tqs * Cl                               # y^T scratch (bf16)
    est += 4 * tqs * Cl                               # acc scratch (f32)
    est += 2 * 4 * tqs * 128                          # m, l scratch (f32)
    est += 18 * tqs * tkl                             # s, p, rescale temporaries
    return est


def _tile_candidates(n):
    """Divisors of n that are multiples of 128 (descending), else just [n]."""
    if n % 128 != 0:
        return [n]
    return [t for t in range(n, 0, -128) if n % t == 0]


def _select_tiles(n_dst, n_src, C, budget, block_q, block_k, batch,
                  allow_source_residency=True):
    cq = _tile_candidates(n_dst)
    ck = _tile_candidates(n_src)

    def fits(tq, tk):
        return _vmem_estimate(C, tq, tk) <= budget

    # Destination tile: largest lane-dense divisor <= block_q.
    tq = next((t for t in cq if t <= block_q), cq[-1])
    # Keep both v7x TensorCores busy at tiny batch (no-op on v5e/v6e).
    while batch * (n_dst // tq) < 2 and tq > cq[-1]:
        tq = next(t for t in cq if t < tq)

    # Source tile: whole-row residency (block index becomes constant per batch
    # -> fetched once per batch) if the budget allows, else largest <= block_k.
    tk = None
    if (allow_source_residency and 2 * 2 * C * n_src <= budget // 3
            and fits(tq, n_src)):
        tk = n_src
    if tk is None:
        tk = next((t for t in ck if t <= block_k and fits(tq, t)), ck[-1])

    # Shrink (source first, then destination) until the working set fits.
    while not fits(tq, tk) and (tq > cq[-1] or tk > ck[-1]):
        if tk > ck[-1] and tk >= tq:
            tk = next(t for t in ck if t < tk)
        elif tq > cq[-1]:
            tq = next(t for t in cq if t < tq)
        else:
            tk = next(t for t in ck if t < tk)
    return tq, tk


def self_attention_2d(x, wk, bk, wq, bq, wv, bv, gamma,
                      block_q=512, block_k=512, allow_source_residency=True):
    """SAGAN SelfAttention2d forward. x: (B, C, H, W) f32 -> (B, C, H, W)."""
    B, C, H, W = x.shape
    N = H * W
    x_flat = x.reshape(B, C, N)

    # Lane-dense destination axis: pad N up to a multiple of 128.  Padded
    # columns produce values that are sliced off; they never act as softmax
    # sources because the source stream keeps the true length N.
    n_dst = _rup(N, 128)
    x_dst = x_flat if n_dst == N else jnp.pad(
        x_flat, ((0, 0), (0, 0), (0, n_dst - N)))
    x_src = x_flat.astype(jnp.bfloat16)      # hot, re-read stream -> bf16

    # Fold key/query 1x1 convs: score(i, j) = x_i . (A x_j + u) with
    # A = Wq^T Wk, u = Wq^T bk (softmax-constant terms cancel exactly).
    a_mat = (wq.T @ wk).astype(jnp.bfloat16)                 # (C, C) bf16
    u_vec = (wq.T @ bk).reshape(C, 1).astype(jnp.float32)    # (C, 1)
    wv_b = wv.astype(jnp.bfloat16)                           # (C, C) bf16
    bv2 = bv.reshape(C, 1).astype(jnp.float32)
    gamma1 = gamma.reshape(1).astype(jnp.float32)

    budget = _vmem_budget_bytes()
    tq, tk = _select_tiles(n_dst, N, C, budget, block_q, block_k, B,
                           allow_source_residency)
    grid = (B, n_dst // tq, N // tk)

    est = _vmem_estimate(C, tq, tk)
    vmem_limit = int(min(budget, max(32 * 1024 * 1024, est + est // 2)))

    out = pl.pallas_call(
        _sa2d_kernel,
        out_shape=jax.ShapeDtypeStruct((B, C, n_dst), x.dtype),
        grid_spec=pltpu.PrefetchScalarGridSpec(
            num_scalar_prefetch=0,
            grid=grid,
            in_specs=[
                pl.BlockSpec((1, C, tq), lambda b, qi, ki: (b, 0, qi)),  # x dest f32
                pl.BlockSpec((1, C, tk), lambda b, qi, ki: (b, 0, ki)),  # x src bf16
                pl.BlockSpec((C, C), lambda b, qi, ki: (0, 0)),          # A  bf16
                pl.BlockSpec((C, 1), lambda b, qi, ki: (0, 0)),          # u  f32
                pl.BlockSpec((C, C), lambda b, qi, ki: (0, 0)),          # Wv bf16
                pl.BlockSpec((C, 1), lambda b, qi, ki: (0, 0)),          # bv f32
                pl.BlockSpec(memory_space=pltpu.MemorySpace.SMEM),       # gamma
            ],
            out_specs=pl.BlockSpec((1, C, tq), lambda b, qi, ki: (b, 0, qi)),
            scratch_shapes=[
                pltpu.VMEM((tq, C), jnp.bfloat16),   # y^T: dest "query" features
                pltpu.VMEM((tq, 1), jnp.float32),    # running max
                pltpu.VMEM((tq, 1), jnp.float32),    # running denominator
                pltpu.VMEM((tq, C), jnp.float32),    # un-normalized (x @ att)^T
            ],
        ),
        compiler_params=pltpu.CompilerParams(
            dimension_semantics=("parallel", "parallel", "arbitrary"),
            vmem_limit_bytes=vmem_limit,
        ),
    )(x_dst, x_src, a_mat, u_vec, wv_b, bv2, gamma1)

    if n_dst != N:
        out = out[:, :, :N]
    return out.reshape(B, C, H, W)


def self_attention_2d_ref(x, wk, bk, wq, bq, wv, bv, gamma):
    """Pure-JAX f32 reference mirroring the PyTorch module exactly."""
    B, C, H, W = x.shape
    N = H * W
    xf = x.reshape(B, C, N)
    k = jnp.einsum('oc,bcn->bon', wk, xf) + bk[None, :, None]
    q = jnp.einsum('oc,bcn->bon', wq, xf) + bq[None, :, None]
    v = jnp.einsum('oc,bcn->bon', wv, xf) + bv[None, :, None]
    aff = jnp.einsum('bki,bkj->bij', q, k)
    att = jax.nn.softmax(aff, axis=1)          # torch: F.softmax(affinity, dim=1)
    out = jnp.einsum('bci,bih->bch', v, att).reshape(B, C, H, W)
    return gamma.reshape(()) * out + x


def _check(y, y_ref, tag):
    err = jnp.abs(y - y_ref)
    mx, mn = float(jnp.max(err)), float(jnp.mean(err))
    assert mx < 1e-1, f"{tag}: max err {mx}"
    assert mn < 1e-2, f"{tag}: mean err {mn}"


if __name__ == "__main__":
    # ch must be >= 8 (Conv1d(ch, ch // 8, 1)).
    B, C, H, W = 2, 32, 16, 16
    C8 = C // 8

    key = jax.random.PRNGKey(0)
    k_x, k_wk, k_bk, k_wq, k_bq, k_wv, k_bv, k_x2 = jax.random.split(key, 8)

    x = jax.random.normal(k_x, (B, C, H, W), dtype=jnp.float32)
    # Conv1d weights with kernel_size=1: (out_ch, in_ch) after squeezing k=1.
    wk = jax.random.normal(k_wk, (C8, C), dtype=jnp.float32) * (1.0 / C ** 0.5)
    bk = jax.random.normal(k_bk, (C8,), dtype=jnp.float32) * 0.1
    wq = jax.random.normal(k_wq, (C8, C), dtype=jnp.float32) * (1.0 / C ** 0.5)
    bq = jax.random.normal(k_bq, (C8,), dtype=jnp.float32) * 0.1
    wv = jax.random.normal(k_wv, (C, C), dtype=jnp.float32) * (1.0 / C ** 0.5)
    bv = jax.random.normal(k_bv, (C,), dtype=jnp.float32) * 0.1

    gamma0 = jnp.zeros((1,), dtype=jnp.float32)       # module init value
    gamma_half = jnp.array([0.5], dtype=jnp.float32)

    # 1) Default config: big tiles + full source-row residency (grid (B,1,1)).
    y0 = self_attention_2d(x, wk, bk, wq, bq, wv, bv, gamma0)
    jax.block_until_ready(y0)
    assert jnp.allclose(y0, x, atol=1e-6), "gamma=0 should return x"

    y1 = self_attention_2d(x, wk, bk, wq, bq, wv, bv, gamma_half)
    jax.block_until_ready(y1)
    y1_ref = self_attention_2d_ref(x, wk, bk, wq, bq, wv, bv, gamma_half)
    _check(y1, y1_ref, "default tiles")

    # 2) Forced streaming config (128x128 tiles, no residency): exercises the
    #    online-softmax accumulation across multiple source and dest tiles.
    y2 = self_attention_2d(x, wk, bk, wq, bq, wv, bv, gamma_half,
                           block_q=128, block_k=128,
                           allow_source_residency=False)
    jax.block_until_ready(y2)
    _check(y2, y1_ref, "streaming tiles")

    # 3) Non-multiple-of-128 spatial size: exercises destination-axis padding.
    H2, W2 = 12, 12
    x_odd = jax.random.normal(k_x2, (B, C, H2, W2), dtype=jnp.float32)
    y3 = self_attention_2d(x_odd, wk, bk, wq, bq, wv, bv, gamma_half)
    jax.block_until_ready(y3)
    y3_ref = self_attention_2d_ref(x_odd, wk, bk, wq, bq, wv, bv, gamma_half)
    _check(y3, y3_ref, "padded N")

    print("KERNEL_OK")
</pallas_src>

<mosaic_0001>
module attributes {stable_mosaic.version = 11 : i64} {
  func.func @_sa2d_kernel(%arg0: i32, %arg1: i32, %arg2: i32, %arg3: memref<1x32x256xf32, #tpu.memory_space<vmem>>, %arg4: memref<1x32x256xbf16, #tpu.memory_space<vmem>>, %arg5: memref<32x32xbf16, #tpu.memory_space<vmem>>, %arg6: memref<32x1xf32, #tpu.memory_space<vmem>>, %arg7: memref<32x32xbf16, #tpu.memory_space<vmem>>, %arg8: memref<32x1xf32, #tpu.memory_space<vmem>>, %arg9: memref<1xf32, #tpu.memory_space<smem>>, %arg10: memref<1x32x256xf32, #tpu.memory_space<vmem>>, %arg11: memref<256x32xbf16, #tpu.memory_space<vmem>>, %arg12: memref<256x1xf32, #tpu.memory_space<vmem>>, %arg13: memref<256x1xf32, #tpu.memory_space<vmem>>, %arg14: memref<256x32xf32, #tpu.memory_space<vmem>>) attributes {dimension_semantics = [#tpu.dimension_semantics<parallel>, #tpu.dimension_semantics<parallel>, #tpu.dimension_semantics<arbitrary>], iteration_bounds = array<i64: 2, 1, 1>, scalar_prefetch = 0 : i64, scratch_operands = 4 : i64, tpu.core_type = #tpu.core_type<tc>, window_params = [{transform_indices = @transform_0, window_bounds = array<i64: 1, 32, 256>}, {transform_indices = @transform_1, window_bounds = array<i64: 1, 32, 256>}, {pipeline_mode = #tpu.pipeline_mode<synchronous>, transform_indices = @transform_2, window_bounds = array<i64: 32, 32>}, {pipeline_mode = #tpu.pipeline_mode<synchronous>, transform_indices = @transform_3, window_bounds = array<i64: 32, 1>}, {pipeline_mode = #tpu.pipeline_mode<synchronous>, transform_indices = @transform_4, window_bounds = array<i64: 32, 32>}, {pipeline_mode = #tpu.pipeline_mode<synchronous>, transform_indices = @transform_5, window_bounds = array<i64: 32, 1>}, {transform_indices = @transform_6, window_bounds = array<i64: 1>}, {transform_indices = @transform_7, window_bounds = array<i64: 1, 32, 256>}]} {
    %c0_i32 = arith.constant 0 : i32
    %0 = arith.cmpi eq, %arg2, %c0_i32 : i32
    %1 = arith.extui %0 : i1 to i32
    %c0_i32_0 = arith.constant 0 : i32
    %2 = arith.cmpi ne, %1, %c0_i32_0 : i32
    scf.if %2 {
      %c0_22 = arith.constant 0 : index
      %c0_23 = arith.constant 0 : index
      %33 = vector.load %arg5[%c0_22, %c0_23] : memref<32x32xbf16, #tpu.memory_space<vmem>>, vector<32x32xbf16>
      %c0_24 = arith.constant 0 : index
      %c0_25 = arith.constant 0 : index
      %c0_26 = arith.constant 0 : index
      %34 = vector.load %arg3[%c0_24, %c0_25, %c0_26] : memref<1x32x256xf32, #tpu.memory_space<vmem>>, vector<1x32x256xf32>
      %35 = vector.shape_cast %34 : vector<1x32x256xf32> to vector<32x256xf32>
      %36 = arith.truncf %35 : vector<32x256xf32> to vector<32x256xbf16>
      %cst_27 = arith.constant dense<0.000000e+00> : vector<32x256xf32>
      %37 = tpu.matmul %33, %36, %cst_27 {dimension_numbers = #tpu.dot_dimension_numbers<[1], [0], [0], [1], [0, 0, 1, 1], [], []>} : vector<32x32xbf16>, vector<32x256xbf16>, vector<32x256xf32> -> vector<32x256xf32>
      %c0_28 = arith.constant 0 : index
      %c0_29 = arith.constant 0 : index
      %38 = vector.load %arg6[%c0_28, %c0_29] : memref<32x1xf32, #tpu.memory_space<vmem>>, vector<32x1xf32>
      %39 = vector.broadcast %38 : vector<32x1xf32> to vector<32x256xf32>
      %40 = arith.addf %37, %39 : vector<32x256xf32>
      %41 = tpu.transpose %40, [1, 0] : vector<32x256xf32> -> vector<256x32xf32>
      %42 = arith.truncf %41 : vector<256x32xf32> to vector<256x32xbf16>
      %c0_30 = arith.constant 0 : index
      %c0_31 = arith.constant 0 : index
      %43 = vector.load %arg11[%c0_30, %c0_31] : memref<256x32xbf16, #tpu.memory_space<vmem>>, vector<256x32xbf16>
      tpu.vector_store %arg11[%c0_30, %c0_31], %42 {strides = array<i32>} : memref<256x32xbf16, #tpu.memory_space<vmem>>, vector<256x32xbf16>,
      %cst_32 = arith.constant 0xFF800000 : f32
      %44 = vector.broadcast %cst_32 : f32 to vector<256x1xf32>
      %c0_33 = arith.constant 0 : index
      %c0_34 = arith.constant 0 : index
      %45 = vector.load %arg12[%c0_33, %c0_34] : memref<256x1xf32, #tpu.memory_space<vmem>>, vector<256x1xf32>
      tpu.vector_store %arg12[%c0_33, %c0_34], %44 {strides = array<i32>} : memref<256x1xf32, #tpu.memory_space<vmem>>, vector<256x1xf32>,
      %cst_35 = arith.constant 0.000000e+00 : f32
      %46 = vector.broadcast %cst_35 : f32 to vector<256x1xf32>
      %c0_36 = arith.constant 0 : index
      %c0_37 = arith.constant 0 : index
      %47 = vector.load %arg13[%c0_36, %c0_37] : memref<256x1xf32, #tpu.memory_space<vmem>>, vector<256x1xf32>
      tpu.vector_store %arg13[%c0_36, %c0_37], %46 {strides = array<i32>} : memref<256x1xf32, #tpu.memory_space<vmem>>, vector<256x1xf32>,
      %cst_38 = arith.constant 0.000000e+00 : f32
      %48 = vector.broadcast %cst_38 : f32 to vector<256x32xf32>
      %c0_39 = arith.constant 0 : index
      %c0_40 = arith.constant 0 : index
      %49 = vector.load %arg14[%c0_39, %c0_40] : memref<256x32xf32, #tpu.memory_space<vmem>>, vector<256x32xf32>
      tpu.vector_store %arg14[%c0_39, %c0_40], %48 {strides = array<i32>} : memref<256x32xf32, #tpu.memory_space<vmem>>, vector<256x32xf32>,
    } else {
    }
    %c0 = arith.constant 0 : index
    %c0_1 = arith.constant 0 : index
    %c0_2 = arith.constant 0 : index
    %3 = vector.load %arg4[%c0, %c0_1, %c0_2] : memref<1x32x256xbf16, #tpu.memory_space<vmem>>, vector<1x32x256xbf16>
    %4 = vector.shape_cast %3 : vector<1x32x256xbf16> to vector<32x256xbf16>
    %c0_3 = arith.constant 0 : index
    %c0_4 = arith.constant 0 : index
    %5 = vector.load %arg11[%c0_3, %c0_4] : memref<256x32xbf16, #tpu.memory_space<vmem>>, vector<256x32xbf16>
    %cst = arith.constant dense<0.000000e+00> : vector<256x256xf32>
    %6 = tpu.matmul %5, %4, %cst {dimension_numbers = #tpu.dot_dimension_numbers<[1], [0], [0], [1], [0, 0, 1, 1], [], []>} : vector<256x32xbf16>, vector<32x256xbf16>, vector<256x256xf32> -> vector<256x256xf32>
    %c0_5 = arith.constant 0 : index
    %c0_6 = arith.constant 0 : index
    %7 = vector.load %arg12[%c0_5, %c0_6] : memref<256x1xf32, #tpu.memory_space<vmem>>, vector<256x1xf32>
    %cst_7 = arith.constant dense<0xFF800000> : vector<256xf32>
    %8 = vector.multi_reduction <maximumf>, %6, %cst_7 [1] : vector<256x256xf32> to vector<256xf32>
    %9 = vector.shape_cast %8 : vector<256xf32> to vector<256x1xf32>
    %10 = arith.maximumf %7, %9 : vector<256x1xf32>
    %11 = arith.subf %7, %10 : vector<256x1xf32>
    %12 = math.exp %11 : vector<256x1xf32>
    %13 = vector.broadcast %10 : vector<256x1xf32> to vector<256x256xf32>
    %14 = arith.subf %6, %13 : vector<256x256xf32>
    %15 = math.exp %14 : vector<256x256xf32>
    %c0_8 = arith.constant 0 : index
    %c0_9 = arith.constant 0 : index
    %16 = vector.load %arg13[%c0_8, %c0_9] : memref<256x1xf32, #tpu.memory_space<vmem>>, vector<256x1xf32>
    %17 = arith.mulf %12, %16 : vector<256x1xf32>
    %cst_10 = arith.constant dense<0.000000e+00> : vector<256xf32>
    %18 = vector.multi_reduction <add>, %15, %cst_10 [1] : vector<256x256xf32> to vector<256xf32>
    %19 = vector.shape_cast %18 : vector<256xf32> to vector<256x1xf32>
    %20 = arith.addf %17, %19 : vector<256x1xf32>
    %c0_11 = arith.constant 0 : index
    %c0_12 = arith.constant 0 : index
    %21 = vector.load %arg13[%c0_11, %c0_12] : memref<256x1xf32, #tpu.memory_space<vmem>>, vector<256x1xf32>
    tpu.vector_store %arg13[%c0_11, %c0_12], %20 {strides = array<i32>} : memref<256x1xf32, #tpu.memory_space<vmem>>, vector<256x1xf32>,
    %c0_13 = arith.constant 0 : index
    %c0_14 = arith.constant 0 : index
    %22 = vector.load %arg14[%c0_13, %c0_14] : memref<256x32xf32, #tpu.memory_space<vmem>>, vector<256x32xf32>
    %23 = vector.broadcast %12 : vector<256x1xf32> to vector<256x32xf32>
    %24 = arith.mulf %23, %22 : vector<256x32xf32>
    %25 = arith.truncf %15 : vector<256x256xf32> to vector<256x256xbf16>
    %cst_15 = arith.constant dense<0.000000e+00> : vector<256x32xf32>
    %26 = tpu.matmul %25, %4, %cst_15 {dimension_numbers = #tpu.dot_dimension_numbers<[1], [1], [0], [0], [0, 0, 1, 0], [], []>} : vector<256x256xbf16>, vector<32x256xbf16>, vector<256x32xf32> -> vector<256x32xf32>
    %27 = arith.addf %24, %26 : vector<256x32xf32>
    %c0_16 = arith.constant 0 : index
    %c0_17 = arith.constant 0 : index
    %28 = vector.load %arg14[%c0_16, %c0_17] : memref<256x32xf32, #tpu.memory_space<vmem>>, vector<256x32xf32>
    tpu.vector_store %arg14[%c0_16, %c0_17], %27 {strides = array<i32>} : memref<256x32xf32, #tpu.memory_space<vmem>>, vector<256x32xf32>,
    %c0_18 = arith.constant 0 : index
    %c0_19 = arith.constant 0 : index
    %29 = vector.load %arg12[%c0_18, %c0_19] : memref<256x1xf32, #tpu.memory_space<vmem>>, vector<256x1xf32>
    tpu.vector_store %arg12[%c0_18, %c0_19], %10 {strides = array<i32>} : memref<256x1xf32, #tpu.memory_space<vmem>>, vector<256x1xf32>,
    %c0_i32_20 = arith.constant 0 : i32
    %30 = arith.cmpi eq, %arg2, %c0_i32_20 : i32
    %31 = arith.extui %30 : i1 to i32
    %c0_i32_21 = arith.constant 0 : i32
    %32 = arith.cmpi ne, %31, %c0_i32_21 : i32
    scf.if %32 {
      %c0_22 = arith.constant 0 : index
      %c0_23 = arith.constant 0 : index
      %33 = vector.load %arg13[%c0_22, %c0_23] : memref<256x1xf32, #tpu.memory_space<vmem>>, vector<256x1xf32>
      %34 = tpu.reciprocal %33 {approx = true} : vector<256x1xf32> -> vector<256x1xf32>
      %c0_24 = arith.constant 0 : index
      %c0_25 = arith.constant 0 : index
      %35 = vector.load %arg14[%c0_24, %c0_25] : memref<256x32xf32, #tpu.memory_space<vmem>>, vector<256x32xf32>
      %36 = vector.broadcast %34 : vector<256x1xf32> to vector<256x32xf32>
      %37 = arith.mulf %35, %36 : vector<256x32xf32>
      %38 = arith.truncf %37 : vector<256x32xf32> to vector<256x32xbf16>
      %c0_26 = arith.constant 0 : index
      %c0_27 = arith.constant 0 : index
      %39 = vector.load %arg7[%c0_26, %c0_27] : memref<32x32xbf16, #tpu.memory_space<vmem>>, vector<32x32xbf16>
      %cst_28 = arith.constant dense<0.000000e+00> : vector<32x256xf32>
      %40 = tpu.matmul %39, %38, %cst_28 {dimension_numbers = #tpu.dot_dimension_numbers<[1], [1], [0], [0], [0, 0, 1, 0], [], []>} : vector<32x32xbf16>, vector<256x32xbf16>, vector<32x256xf32> -> vector<32x256xf32>
      %c0_29 = arith.constant 0 : index
      %c0_30 = arith.constant 0 : index
      %41 = vector.load %arg8[%c0_29, %c0_30] : memref<32x1xf32, #tpu.memory_space<vmem>>, vector<32x1xf32>
      %42 = vector.broadcast %41 : vector<32x1xf32> to vector<32x256xf32>
      %43 = arith.addf %40, %42 : vector<32x256xf32>
      %c0_31 = arith.constant 0 : index
      %44 = memref.load %arg9[%c0_31] : memref<1xf32, #tpu.memory_space<smem>>
      %45 = vector.broadcast %44 : f32 to vector<32x256xf32>
      %46 = arith.mulf %45, %43 : vector<32x256xf32>
      %c0_32 = arith.constant 0 : index
      %c0_33 = arith.constant 0 : index
      %c0_34 = arith.constant 0 : index
      %47 = vector.load %arg3[%c0_32, %c0_33, %c0_34] : memref<1x32x256xf32, #tpu.memory_space<vmem>>, vector<1x32x256xf32>
      %48 = vector.shape_cast %47 : vector<1x32x256xf32> to vector<32x256xf32>
      %49 = arith.addf %46, %48 : vector<32x256xf32>
      %c0_35 = arith.constant 0 : index
      %c0_36 = arith.constant 0 : index
      %c0_37 = arith.constant 0 : index
      %50 = vector.load %arg10[%c0_35, %c0_36, %c0_37] : memref<1x32x256xf32, #tpu.memory_space<vmem>>, vector<1x32x256xf32>
      %51 = vector.shape_cast %50 : vector<1x32x256xf32> to vector<32x256xf32>
      %52 = vector.shape_cast %49 : vector<32x256xf32> to vector<1x32x256xf32>
      tpu.vector_store %arg10[%c0_35, %c0_36, %c0_37], %52 {strides = array<i32>} : memref<1x32x256xf32, #tpu.memory_space<vmem>>, vector<1x32x256xf32>,
    } else {
    }
    return
  }
  func.func @transform_0(%arg0: i32, %arg1: i32, %arg2: i32) -> (i32, i32, i32) {
    %c0_i32 = arith.constant 0 : i32
    %c0_i32_0 = arith.constant 0 : i32
    return %arg0, %c0_i32, %arg1 : i32, i32, i32
  }
  func.func @transform_1(%arg0: i32, %arg1: i32, %arg2: i32) -> (i32, i32, i32) {
    %c0_i32 = arith.constant 0 : i32
    %c0_i32_0 = arith.constant 0 : i32
    return %arg0, %c0_i32, %arg2 : i32, i32, i32
  }
  func.func @transform_2(%arg0: i32, %arg1: i32, %arg2: i32) -> (i32, i32) {
    %c0_i32 = arith.constant 0 : i32
    %c0_i32_0 = arith.constant 0 : i32
    %c0_i32_1 = arith.constant 0 : i32
    return %c0_i32, %c0_i32_0 : i32, i32
  }
  func.func @transform_3(%arg0: i32, %arg1: i32, %arg2: i32) -> (i32, i32) {
    %c0_i32 = arith.constant 0 : i32
    %c0_i32_0 = arith.constant 0 : i32
    %c0_i32_1 = arith.constant 0 : i32
    return %c0_i32, %c0_i32_0 : i32, i32
  }
  func.func @transform_4(%arg0: i32, %arg1: i32, %arg2: i32) -> (i32, i32) {
    %c0_i32 = arith.constant 0 : i32
    %c0_i32_0 = arith.constant 0 : i32
    %c0_i32_1 = arith.constant 0 : i32
    return %c0_i32, %c0_i32_0 : i32, i32
  }
  func.func @transform_5(%arg0: i32, %arg1: i32, %arg2: i32) -> (i32, i32) {
    %c0_i32 = arith.constant 0 : i32
    %c0_i32_0 = arith.constant 0 : i32
    %c0_i32_1 = arith.constant 0 : i32
    return %c0_i32, %c0_i32_0 : i32, i32
  }
  func.func @transform_6(%arg0: i32, %arg1: i32, %arg2: i32) -> i32 {
    %c0_i32 = arith.constant 0 : i32
    %c0_i32_0 = arith.constant 0 : i32
    return %c0_i32 : i32
  }
  func.func @transform_7(%arg0: i32, %arg1: i32, %arg2: i32) -> (i32, i32, i32) {
    %c0_i32 = arith.constant 0 : i32
    %c0_i32_0 = arith.constant 0 : i32
    return %arg0, %c0_i32, %arg1 : i32, i32, i32
  }
}

</mosaic_0001>

<bundles_post_ra>
// kernel: tpu_custom_call.1
= control target key start
LH: loop header
LB: loop body
LE: loop exit
PB: predicated region body
PF: predicated region fallthrough
CT: control target
= control target key end

     0   :  { %s5512_s0 = inlined_call_operand.hbm [shape: f32[2,32,256], index: 0, kind: input, shape index: {}]   ;;  %s5513_s1 = inlined_call_operand.vmem [shape: bf16[2,32,256], index: 1, kind: input, shape index: {}]   ;;  %s5514_s2 = inlined_call_operand.hbm [shape: bf16[32,32], index: 2, kind: input, shape index: {}]   ;;  %s5515_s3 = inlined_call_operand.vmem [shape: f32[32,1], index: 3, kind: input, shape index: {}]   ;;  %s5516_s4 = inlined_call_operand.hbm [shape: bf16[32,32], index: 4, kind: input, shape index: {}]   ;;  %s5517_s5 = inlined_call_operand.vmem [shape: f32[32,1], index: 5, kind: input, shape index: {}]   ;;  %s5518_s6 = inlined_call_operand.<no memory space> [shape: f32[1], index: 6, kind: input, shape index: {}]   ;;  %s5519_s7 = inlined_call_operand.hbm [shape: f32[2,32,256], index: 7, kind: output, shape index: {}]  }
   0x1   :  { %5594 = sst [smem:[#allocation88_spill]] %s5514_s2 }
   0x2   :  { %5595 = sst [smem:[#allocation89_spill]] %s5516_s4 }
   0x3   :  { %12 = sst [smem:[#allocation6]] %s5518_s6 }
   0x4   :  { %13 = vsyncpa [#allocation8], 0 }
   0x5   :  { %15 = vsyncpa [#allocation8 + $0x1], 0 }
   0x6   :  { %16 = vsyncpa [#allocation11], 0 }
   0x7   :  { %17 = vsyncpa [#allocation9], 0 }
   0x8   :  { %19 = vsyncpa [#allocation9 + $0x1], 0  ;;  %s3938_s26 = smov 0   ;;  %s3940_s27 = smov 0  }
   0x9   :  { %s3942_s28 = smov 0   ;;  %s3944_s29 = smov 0  }
   0xa   :  { %s3946_s30 = smov 0   ;;  %s3948_s8 = smov 0  }
   0xb LB: > { %s3180_s6 = sadd.s32 4294967295, %s3880_s8   ;;  %s3181_s9 = sadd.s32 4294967294, %s3880_s8   ;;  %s3880_s8 = sphi %s3948_s8, %s25_s8   ;;  %s3876_s30 = sphi %s3946_s30, %s5786_s30   ;;  %s3872_s29 = sphi %s3944_s29, %s5785_s29   ;;  %s3868_s28 = sphi %s3942_s28, %s5784_s28   ;;  %s3864_s27 = sphi %s3940_s27, %s5783_s27   ;;  %s3860_s26 = sphi %s3938_s26, %s5782_s26  }
   0xc   : > { %p66_p0 = scmp.ne.s32.totalorder %s3864_s27, %s3860_s26  ;;  %p3972_p1 = scmp.eq.s32.totalorder %s3180_s6, 0 }
   0xd   : > { %p3976_p2 = scmp.eq.s32.totalorder %s3180_s6, 1  ;;  %p231_p3 = scmp.eq.s32.totalorder %s3181_s9, 1 }
   0xe   : > { %s5596_s10 = scalar_select %p3972_p1, 1, 0 }
   0xf   : > { %p3982_p4 = por %p3972_p1, %p66_p0  ;;  %p3182_p5 = scmp.ge.s32.totalorder %s3880_s8, 1 }
  0x10   : > { %p3987_p6 = por %p231_p3, %p66_p0  ;;  %p238_p7 = scmp.lt.s32.totalorder %s3880_s8, 3 }
  0x11   : > { %s5598_s12 = scalar_select %p3982_p4, 1, 0 }
  0x12   : > { %s5599_s13 = scalar_select %p3987_p6, 1, 0 }
  0x13   : > { %p3992_p8 = pnand %p3182_p5, %p238_p7  ;;  %s3882_s15 = smov [#allocation10]  }
  0x14   : > { %s250_s16 = sshll.u32 %s3882_s15, 4  ;;  %s3883_s18 = smov [#allocation12]   ;;  %s251_s16 = int_to_ptr.vmem [resolvable:$true] %s250_s16 }
  0x15   : > { %p3352_p9 = pneg %p3992_p8  ;;  %s266_s19 = sshll.u32 %s3883_s18, 4  ;;  %s267_s19 = int_to_ptr.vmem [resolvable:$true] %s266_s19 }
  0x16   : > { %s3727_s20 = scalar_lea.vmem %s251_s16, 256  ;;  %p3735_p5 = scmp.lt.s32.totalorder %s251_s16, %s251_s16 }
  0x17   : > { %p4001_p11 = pnand %p3352_p9, %p3972_p1  ;;  %p3728_p13 = scmp.ne.s32.totalorder %s251_s16, %s3727_s20 }
  0x18   : > { %p3736_p7 = scmp.lt.s32.totalorder %s3727_s20, %s3727_s20 }
  0x19   : > { %p3718_p12 = pneg %p4001_p11 }
  0x1a   : > { %p3737_p10 = por %p3736_p7, %p3735_p5 }
  0x1b   : > { %p3730_p0 = pnand %p3728_p13, %p3718_p12 }
  0x1d   : > { %p3731_p3 = pneg %p3730_p0 }
  0x1f   : > { %p3738_p9 = pnand %p3737_p10, %p3731_p3 }
  0x21   : > { %3741 = shalt.err (!%p3738_p9)
}
  0x22   : > { %s3884_s21 = smov 64   ;;  %s3885_s22 = smov 4  }
  0x23   : > { %s5602_s2 = sld [smem:[#allocation88_spill]]  ;;  %s3753_s25 = scalar_lea.vmem %s267_s19, 256 }
  0x24   : > { %p3754_p6 = scmp.ne.s32.totalorder %s267_s19, %s3753_s25  ;;  %p3761_p1 = scmp.lt.s32.totalorder %s267_s19, %s267_s19 }
  0x25   : > { %p3762_p4 = scmp.lt.s32.totalorder %s3753_s25, %s3753_s25 }
  0x26   : > { %p3756_p13 = pnand %p3754_p6, %p3718_p12 }
  0x27   : > { %p3763_p5 = por %p3762_p4, %p3761_p1 }
  0x28   : > { %p3757_p0 = pneg %p3756_p13 }
  0x29   : > { %3355 = dma.hbm_to_vmem [thread:$0]  (!%p4001_p11), %s5602_s2, 256, %s251_s16, [#allocation11], %s3884_s21, %s3884_s21, %s3885_s22  }
  0x2a   : > { %p3764_p10 = pnand %p3763_p5, %p3757_p0 }
  0x2c   : > { %3767 = shalt.err (!%p3764_p10)
}
  0x2d   : > { %s5603_s4 = sld [smem:[#allocation89_spill]]  ;;  %s44_s15 = sadd.s32 1, %s3876_s30 }
  0x2e   : > { %s53_s16 = sadd.s32 1, %s3868_s28  ;;  %p46_p1 = scmp.ge.s32.totalorder %s44_s15, 2 }
  0x2f   : > { %p60_p4 = scmp.ne.s32.totalorder %s3868_s28, %s3864_s27  ;;  %p61_p6 = scmp.eq.s32.totalorder %s3880_s8, 0 }
  0x30   : > { %p3369_p12 = scmp.lt.s32.totalorder %s3880_s8, 2  ;;  %s5788_s15 = smov (%p46_p1, %s44_s15), 0 }
  0x31   : > { %p62_p3 = por %p61_p6, %p60_p4  ;;  %p4033_p7 = por %p3976_p2, %p60_p4 }
  0x32   : > { %s48_s18 = ssub.s32 %s3876_s30, %s5788_s15  ;;  %s286_s20 = sand.u32 1, %s3868_s28  }
  0x33   : > { %3358 = dma.hbm_to_vmem [thread:$0]  (!%p4001_p11), %s5603_s4, 256, %s267_s19, [#allocation11], %s3884_s21, %s3884_s21, %s3885_s22  }
  0x34   : > { %p51_p9 = scmp.eq.s32.totalorder %s48_s18, 0  ;;  %s3186_s19 = sshll.u32 %s286_s20, 6 }
  0x35   : > { %s3277_s21 = sshll.u32 %s3876_s30, 10  ;;  %s290_s6 = scalar_lea.vmem [#allocation7], %s3186_s19 }
  0x36   : > { %s4042_s22 = scalar_select %p51_p9, %s3868_s28, %s53_s16  }
  0x37   : > { %s298_s25 = scalar_lea.hbm %s5512_s0, %s3277_s21  ;;  %s299_s9 = sshll.u32 %s290_s6, 4  ;;  %s300_s9 = int_to_ptr.vmem [resolvable:$true] %s299_s9 }
  0x38   : > { %p4049_p11 = pnand %p3369_p12, %p62_p3  ;;  %s287_s2 = scalar_lea.sflag [#allocation8], %s286_s20 }
  0x39   : > { %s3781_s18 = scalar_lea.vmem %s300_s9, 1024  ;;  %s3886_s16 = smov [#allocation7]  }
  0x3a   : > { %p3770_p2 = pneg %p4049_p11  ;;  %p3782_p13 = scmp.ne.s32.totalorder %s300_s9, %s3781_s18 }
  0x3b   : > { %s3786_s4 = sshll.u32 %s3886_s16, 4  ;;  %s3787_s4 = int_to_ptr.vmem [resolvable:$false] %s3786_s4 }
  0x3c   : > { %p3784_p0 = pnand %p3782_p13, %p3770_p2  ;;  %s3788_s21 = scalar_lea.vmem %s3787_s4, 2048 }
  0x3d   : > { %p3789_p10 = scmp.lt.s32.totalorder %s300_s9, %s3787_s4  ;;  %p3790_p1 = scmp.lt.s32.totalorder %s3788_s21, %s3781_s18 }
  0x3e   : > { %p3785_p5 = pneg %p3784_p0 }
  0x3f   : > { %p3791_p4 = por %p3790_p1, %p3789_p10 }
  0x41   : > { %p3792_p6 = pnand %p3791_p4, %p3785_p5 }
  0x43   : > { %3795 = shalt.err (!%p3792_p6)
}
  0x44   : > { %s3887_s19 = smov 256   ;;  %s3888_s23 = smov 16  }
  0x45   : > { %3362 = dma.hbm_to_vmem [thread:$0]  (!%p4049_p11), %s298_s25, 1024, %s300_s9, %s287_s2, %s3887_s19, %s3887_s19, %s3888_s23  }
  0x46   : > { %324 = sbr.rel (%p3992_p8) target bundleno = 1711 (0x6af), region = 48 }
  0x4b   : > { %s4060_s20 = sand.u32 1, %s3864_s27   ;;  %p5606_p12 = scmp.ne.s32.totalorder %s5598_s12, 0 }
  0x4c   : > { %s3190_s4 = sshll.u32 %s4060_s20, 6  ;;  %s327_s24 = scalar_lea.sflag [#allocation8], %s4060_s20 }
  0x4d   : > { %s4066_s6 = scalar_lea.vmem [#allocation7], %s3190_s4 }
  0x4e   : > { %3847 = dma.done.wait (%p5606_p12), %s327_s24, 1024  }
  0x4f   : > { %3849 = vsyncadd (%p5606_p12), %s327_s24, 4294966272  ;;  %p5607_p3 = scmp.ne.s32.totalorder %s5596_s10, 0 }
  0x51   : > { %3851 = dma.done.wait (%p5607_p3), [#allocation11], 512  }
  0x52   : > { %3853 = vsyncadd (%p5607_p3), [#allocation11], 4294966784  ;;  %v3889_v0 = vmov 0   ;;  %v404_v1 = vld [vmem:[%s4066_s6 + $0x28] sm:$0xff]  ;;  %v406_v2 = vld [vmem:[%s4066_s6 + $0x38] sm:$0xff]  ;;  %vm445_vm0 = vcmask 261120  }
  0x53   : > { %484 = vmatprep.mubr.bf16.mxu0 %v3889_v0  ;;  %3432 = vset.pattern.permute.xlu0 %v3889_v0  ;;  %v403_v3 = vld [vmem:[%s4066_s6 + $0x20] sm:$0xff]  ;;  %v410_v4 = vpack.c.bf16 %v406_v2, %v404_v1  ;;  %v405_v5 = vld [vmem:[%s4066_s6 + $0x30] sm:$0xff]  ;;  %v400_v6 = vld [vmem:[%s4066_s6 + $0x8] sm:$0xff]  ;;  %p380_p8 = scmp.lt.s32.totalorder %s3872_s29, 1  ;;  %vm697_vm1 = vcmask 257024   ;;  %vm730_vm2 = vcmask 7168  }
  0x54   : > { %3433 = vset.pattern.permute.xlu1 %v3889_v0  ;;  %1044 = vmatprep.mubr.bf16.mxu1 %v3889_v0  ;;  %v402_v7 = vld [vmem:[%s4066_s6 + $0x18] sm:$0xff]  ;;  %v409_v8 = vpack.c.bf16 %v405_v5, %v403_v3  ;;  %v399_v10 = vld [vmem:[%s4066_s6] sm:$0xff]  ;;  %v401_v11 = vld [vmem:[%s4066_s6 + $0x10] sm:$0xff]  ;;  %s3038_s10 = scalar_lea.sflag [#allocation9], %s4060_s20 }
  0x55   : > { %v408_v9 = vpack.c.bf16 %v402_v7, %v400_v6  ;;  %464 = vmatprep.subr.bf16.mxu0 %v410_v4  ;;  %v407_v12 = vpack.c.bf16 %v401_v11, %v399_v10  ;;  %v411_v13 = vld [vmem:[%s5515_s3] sm:$0xff]  ;;  %v412_v14 = vld [vmem:[%s5515_s3 + $0x8] sm:$0xff]  ;;  %v413_v15 = vld [vmem:[%s5515_s3 + $0x10] sm:$0xff]  ;;  %s381_s16 = scalar_select %p380_p8, %s3872_s29, 1 }
  0x56   : > { %465 = vmatpush1.bf16.msra.mxu0 %v409_v8  ;;  %417 = vperm.xlu0 %3432, %v411_v13   ;;  %v3434_v16 = vld [vmem:[#allocation10] sm:$0xff]   ;;  %v414_v17 = vld [vmem:[%s5515_s3 + $0x18] sm:$0xff]  ;;  %v3435_v18 = vld [vmem:[#allocation10 + $0x8] sm:$0xff]  }
  0x57   : > { %466 = vmatprep.subr.bf16.mxu0 %v408_v9  ;;  %427 = vperm.xlu1 %3433, %v413_v15   ;;  %s3278_s21 = sshll.u32 %s381_s16, 5  ;;  %s3003_s16 = sld [smem:[#allocation6]] }
  0x58   : > { %s387_s24 = scalar_lea.vmem %s5513_s1, %s3278_s21  ;;  %s5442_s21 = scalar_lea.vmem [#allocation13], %s3190_s4 }
  0x59   : > { %v3436_v27 = vld [vmem:[%s387_s24 + $0x14] ss:$8 sps:$4 sm:$0xff]   ;;  %v3438_v30 = vld [vmem:[%s387_s24 + $0x10] ss:$8 sps:$4 sm:$0xff]   ;;  %v3439_v34 = vld [vmem:[%s387_s24 + $0x4] ss:$8 sps:$4 sm:$0xff]  }
  0x5a   : > { %467 = vmatpush1.bf16.msra.mxu0 %v407_v12  ;;  %422 = vperm.xlu0 %3432, %v412_v14   ;;  %v3441_v36 = vld [vmem:[%s387_s24] ss:$8 sps:$4 sm:$0xff]   ;;  %s3311_s4 = sshll.u32 %s3872_s29, 10  ;;  %s3053_s19 = sshll.u32 %s5442_s21, 4  ;;  %s5462_s19 = int_to_ptr.vmem [resolvable:$true] %s3053_s19 }
  0x5b   : > { %432 = vperm.xlu1 %3433, %v414_v17   ;;  %1024 = vmatprep.subr.bf16.mxu1 %v3436_v27  ;;  %s5460_s2 = scalar_lea.hbm %s5519_s7, %s3311_s4  ;;  %s3796_s29 = scalar_lea.vmem %s5462_s19, 1024 }
  0x5c   : > { %1025 = vmatpush1.bf16.msra.mxu1 %v3438_v30  ;;  %2306 = vmatprep.subr.bf16.mxu0 %v3436_v27  ;;  %p3797_p9 = scmp.ne.s32.totalorder %s5462_s19, %s3796_s29 }
  0x5d   : > { %3198 = vmatmul.mubr.msk.bf16.vlgmr.msra.gmra.mxu0 %vm445_vm0, %v3434_v16  ;;  %1026 = vmatprep.subr.bf16.mxu1 %v3439_v34 }
  0x5e   : > { %494 = vmatprep.mubr.bf16.mxu0 %v3889_v0  ;;  %2307 = vmatpush1.bf16.xpose.msra.mxu0 %v3438_v30  ;;  %p3798_p11 = pnand %p3797_p9, %p4033_p7 }
  0x5f   : > { %2308 = vmatprep.subr.bf16.mxu0 %v3439_v34 }
  0x60   : > { %1027 = vmatpush1.bf16.msra.mxu1 %v3441_v36  ;;  %p3799_p2 = pneg %p3798_p11 }
  0x65   : > { %3199 = vmatmul.mubr.msk.bf16.gmra.mxu0 %vm445_vm0, %v3435_v18 }
  0x66   : > { %2309 = vmatpush1.bf16.xpose.msra.mxu0 %v3441_v36 }
  0xd1   : > { %v418_v19 = vpop.permute.xlu0 %417 }
  0xd2   : > { %v428_v28 = vpop.permute.xlu1 %427 }
  0xd5   : > { %v423_v24 = vpop.permute.xlu0 %422 }
  0xd6   : > { %v433_v38 = vpop.permute.xlu1 %432 }
 0x11d   : > { %v486_v20 = vpop.f32.mrf.mxu0 }
 0x11e   : > { %v487_v21 = vadd.f32 %v486_v20, %v418_v19 }
 0x11f   : > { %v488_v22 = vpop.f32.mrf.mxu0 }
 0x120   : > { %v489_v23 = vadd.f32 %v488_v22, %v418_v19  ;;  %505 = vxpose.xlu0.b32.start [1/4] (short) %v487_v21, 128 }
 0x121   : > { %v490_v25 = vpop.f32.mrf.mxu0 }
 0x122   : > { %v491_v26 = vadd.f32 %v490_v25, %v423_v24  ;;  %537 = vxpose.xlu1.b32.start [1/4] (short) %v489_v23, 128 }
 0x123   : > { %v492_v29 = vpop.f32.mrf.mxu0 }
 0x124   : > { %v493_v31 = vadd.f32 %v492_v29, %v423_v24  ;;  %506 = vxpose.xlu0.b32.cont [2/4] (short) %v491_v26, 128 }
 0x125   : > { %v496_v32 = vpop.f32.mrf.mxu0 }
 0x126   : > { %v497_v33 = vadd.f32 %v496_v32, %v428_v28  ;;  %538 = vxpose.xlu1.b32.cont [2/4] (short) %v493_v31, 128 }
 0x127   : > { %v498_v35 = vpop.f32.mrf.mxu0 }
 0x128   : > { %v499_v37 = vadd.f32 %v498_v35, %v428_v28  ;;  %507 = vxpose.xlu0.b32.cont [3/4] (short) %v497_v33, 128 }
 0x129   : > { %v500_v39 = vpop.f32.mrf.mxu0 }
 0x12a   : > { %v501_v40 = vadd.f32 %v500_v39, %v433_v38  ;;  %539 = vxpose.xlu1.b32.cont [3/4] (short) %v499_v37, 128 }
 0x12b   : > { %v502_v41 = vpop.f32.mrf.mxu0 }
 0x12c   : > { %v503_v42 = vadd.f32 %v502_v41, %v433_v38  ;;  %508 = vxpose.xlu0.b32.end [4/4] (short) %v501_v40, 128 }
 0x12e   : > { %540 = vxpose.xlu1.b32.end [4/4] (short) %v503_v42, 128 }
 0x19c   : > { %v521_v43 = vpop.trf.xlu0 }
 0x19d   : > { %v3279_v44 = vpack.c.bf16 %v521_v43, %v521_v43 }
 0x19e   : > { %v553_v45 = vpop.trf.xlu1 }
 0x19f   : > { %698 = vst.msk [vmem:[#allocation2] sm:$0xf] %vm697_vm1, %v3279_v44  ;;  %v3295_v46 = vpack.c.bf16 %v553_v45, %v553_v45 }
 0x1a0   : > { %v522_v47 = vpop.trf.xlu0 }
 0x1a1   : > { %v3280_v48 = vpack.c.bf16 %v522_v47, %v522_v47  ;;  %714 = vst.msk [vmem:[#allocation2 + $0x40] sm:$0xf] %vm697_vm1, %v3295_v46 }
 0x1a2   : > { %v554_v49 = vpop.trf.xlu1 }
 0x1a3   : > { %699 = vst.msk [vmem:[#allocation2 + $0x4] sm:$0xf] %vm697_vm1, %v3280_v48  ;;  %v3296_v50 = vpack.c.bf16 %v554_v49, %v554_v49 }
 0x1a4   : > { %v523_v51 = vpop.trf.xlu0 }
 0x1a5   : > { %v3281_v52 = vpack.c.bf16 %v523_v51, %v523_v51  ;;  %715 = vst.msk [vmem:[#allocation2 + $0x44] sm:$0xf] %vm697_vm1, %v3296_v50 }
 0x1a6   : > { %v555_v53 = vpop.trf.xlu1 }
 0x1a7   : > { %700 = vst.msk [vmem:[#allocation2 + $0x8] sm:$0xf] %vm697_vm1, %v3281_v52  ;;  %v3297_v54 = vpack.c.bf16 %v555_v53, %v555_v53 }
 0x1a8   : > { %v524_v55 = vpop.trf.xlu0 }
 0x1a9   : > { %v3282_v56 = vpack.c.bf16 %v524_v55, %v524_v55  ;;  %716 = vst.msk [vmem:[#allocation2 + $0x48] sm:$0xf] %vm697_vm1, %v3297_v54 }
 0x1aa   : > { %v3442_v57 = vld [vmem:[#allocation2] sm:$0xff]   ;;  %v556_v58 = vpop.trf.xlu1 }
 0x1ab   : > { %701 = vst.msk [vmem:[#allocation2 + $0xc] sm:$0xf] %vm697_vm1, %v3282_v56  ;;  %v3298_v59 = vpack.c.bf16 %v556_v58, %v556_v58  ;;  %3252 = vmatmul.mubr.msk.bf16.vlgmr.msra.gmra.mxu1 %vm445_vm0, %v3442_v57 }
 0x1ac   : > { %v525_v60 = vpop.trf.xlu0  ;;  %1054 = vmatprep.mubr.bf16.mxu1 %v3889_v0  ;;  %v3450_v50 = vld [vmem:[#allocation2 + $0x40] sm:$0xff]  }
 0x1ad   : > { %v3283_v61 = vpack.c.bf16 %v525_v60, %v525_v60  ;;  %717 = vst.msk [vmem:[#allocation2 + $0x4c] sm:$0xf] %vm697_vm1, %v3298_v59  ;;  %v3890_v60 = vmov -inf  }
 0x1ae   : > { %v557_v62 = vpop.trf.xlu1  ;;  %731 = vst.msk [vmem:[#allocation3] sm:$0xff] %vm730_vm2, %v3890_v60  ;;  %732 = vst.msk [vmem:[#allocation3 + $0x8] sm:$0xff] %vm730_vm2, %v3890_v60 }
 0x1af   : > { %702 = vst.msk [vmem:[#allocation2 + $0x10] sm:$0xf] %vm697_vm1, %v3283_v61  ;;  %v3299_v63 = vpack.c.bf16 %v557_v62, %v557_v62 }
 0x1b0   : > { %v526_v1 = vpop.trf.xlu0  ;;  %733 = vst.msk [vmem:[#allocation3 + $0x10] sm:$0xff] %vm730_vm2, %v3890_v60  ;;  %734 = vst.msk [vmem:[#allocation3 + $0x18] sm:$0xff] %vm730_vm2, %v3890_v60 }
 0x1b1   : > { %v3284_v2 = vpack.c.bf16 %v526_v1, %v526_v1  ;;  %718 = vst.msk [vmem:[#allocation2 + $0x50] sm:$0xf] %vm697_vm1, %v3299_v63 }
 0x1b2   : > { %v3443_v3 = vld [vmem:[#allocation2 + $0x8] sm:$0xff]   ;;  %v558_v4 = vpop.trf.xlu1  ;;  %735 = vst.msk [vmem:[#allocation3 + $0x20] sm:$0xff] %vm730_vm2, %v3890_v60  ;;  %736 = vst.msk [vmem:[#allocation3 + $0x28] sm:$0xff] %vm730_vm2, %v3890_v60 }
 0x1b3   : > { %703 = vst.msk [vmem:[#allocation2 + $0x14] sm:$0xf] %vm697_vm1, %v3284_v2  ;;  %v3300_v5 = vpack.c.bf16 %v558_v4, %v558_v4  ;;  %3253 = vmatmul.mubr.msk.bf16.gmra.mxu1 %vm445_vm0, %v3443_v3 }
 0x1b4   : > { %v527_v6 = vpop.trf.xlu0  ;;  %1064 = vmatprep.mubr.bf16.mxu1 %v3889_v0  ;;  %v3451_v53 = vld [vmem:[#allocation2 + $0x48] sm:$0xff]   ;;  %737 = vst.msk [vmem:[#allocation3 + $0x30] sm:$0xff] %vm730_vm2, %v3890_v60  ;;  %738 = vst.msk [vmem:[#allocation3 + $0x38] sm:$0xff] %vm730_vm2, %v3890_v60 }
 0x1b5   : > { %v3285_v7 = vpack.c.bf16 %v527_v6, %v527_v6  ;;  %719 = vst.msk [vmem:[#allocation2 + $0x54] sm:$0xf] %vm697_vm1, %v3300_v5 }
 0x1b6   : > { %v559_v8 = vpop.trf.xlu1  ;;  %739 = vst.msk [vmem:[#allocation3 + $0x40] sm:$0xff] %vm730_vm2, %v3890_v60  ;;  %740 = vst.msk [vmem:[#allocation3 + $0x48] sm:$0xff] %vm730_vm2, %v3890_v60 }
 0x1b7   : > { %704 = vst.msk [vmem:[#allocation2 + $0x18] sm:$0xf] %vm697_vm1, %v3285_v7  ;;  %v3301_v9 = vpack.c.bf16 %v559_v8, %v559_v8 }
 0x1b8   : > { %v528_v10 = vpop.trf.xlu0  ;;  %741 = vst.msk [vmem:[#allocation3 + $0x50] sm:$0xff] %vm730_vm2, %v3890_v60  ;;  %742 = vst.msk [vmem:[#allocation3 + $0x58] sm:$0xff] %vm730_vm2, %v3890_v60 }
 0x1b9   : > { %v3286_v11 = vpack.c.bf16 %v528_v10, %v528_v10  ;;  %720 = vst.msk [vmem:[#allocation2 + $0x58] sm:$0xf] %vm697_vm1, %v3301_v9 }
 0x1ba   : > { %v3444_v12 = vld [vmem:[#allocation2 + $0x10] sm:$0xff]   ;;  %v560_v13 = vpop.trf.xlu1  ;;  %743 = vst.msk [vmem:[#allocation3 + $0x60] sm:$0xff] %vm730_vm2, %v3890_v60  ;;  %744 = vst.msk [vmem:[#allocation3 + $0x68] sm:$0xff] %vm730_vm2, %v3890_v60 }
 0x1bb   : > { %705 = vst.msk [vmem:[#allocation2 + $0x1c] sm:$0xf] %vm697_vm1, %v3286_v11  ;;  %v3302_v14 = vpack.c.bf16 %v560_v13, %v560_v13  ;;  %3254 = vmatmul.mubr.msk.bf16.gmra.mxu1 %vm445_vm0, %v3444_v12 }
 0x1bc   : > { %v529_v15 = vpop.trf.xlu0  ;;  %1074 = vmatprep.mubr.bf16.mxu1 %v3889_v0  ;;  %v3452_v54 = vld [vmem:[#allocation2 + $0x50] sm:$0xff]   ;;  %745 = vst.msk [vmem:[#allocation3 + $0x70] sm:$0xff] %vm730_vm2, %v3890_v60  ;;  %746 = vst.msk [vmem:[#allocation3 + $0x78] sm:$0xff] %vm730_vm2, %v3890_v60 }
 0x1bd   : > { %v3287_v16 = vpack.c.bf16 %v529_v15, %v529_v15  ;;  %721 = vst.msk [vmem:[#allocation2 + $0x5c] sm:$0xf] %vm697_vm1, %v3302_v14 }
 0x1be   : > { %v561_v17 = vpop.trf.xlu1  ;;  %747 = vst.msk [vmem:[#allocation3 + $0x80] sm:$0xff] %vm730_vm2, %v3890_v60  ;;  %748 = vst.msk [vmem:[#allocation3 + $0x88] sm:$0xff] %vm730_vm2, %v3890_v60 }
 0x1bf   : > { %706 = vst.msk [vmem:[#allocation2 + $0x20] sm:$0xf] %vm697_vm1, %v3287_v16  ;;  %v3303_v18 = vpack.c.bf16 %v561_v17, %v561_v17 }
 0x1c0   : > { %v530_v19 = vpop.trf.xlu0  ;;  %749 = vst.msk [vmem:[#allocation3 + $0x90] sm:$0xff] %vm730_vm2, %v3890_v60  ;;  %750 = vst.msk [vmem:[#allocation3 + $0x98] sm:$0xff] %vm730_vm2, %v3890_v60 }
 0x1c1   : > { %v3288_v20 = vpack.c.bf16 %v530_v19, %v530_v19  ;;  %722 = vst.msk [vmem:[#allocation2 + $0x60] sm:$0xf] %vm697_vm1, %v3303_v18 }
 0x1c2   : > { %v3445_v21 = vld [vmem:[#allocation2 + $0x18] sm:$0xff]   ;;  %v562_v22 = vpop.trf.xlu1  ;;  %751 = vst.msk [vmem:[#allocation3 + $0xa0] sm:$0xff] %vm730_vm2, %v3890_v60  ;;  %752 = vst.msk [vmem:[#allocation3 + $0xa8] sm:$0xff] %vm730_vm2, %v3890_v60 }
 0x1c3   : > { %707 = vst.msk [vmem:[#allocation2 + $0x24] sm:$0xf] %vm697_vm1, %v3288_v20  ;;  %v3304_v23 = vpack.c.bf16 %v562_v22, %v562_v22  ;;  %3255 = vmatmul.mubr.msk.bf16.gmra.mxu1 %vm445_vm0, %v3445_v21  ;;  %v3891_v20 = vmov 0.0  }
 0x1c4   : > { %v531_v24 = vpop.trf.xlu0  ;;  %1084 = vmatprep.mubr.bf16.mxu1 %v3889_v0  ;;  %v3453_v55 = vld [vmem:[#allocation2 + $0x58] sm:$0xff]   ;;  %753 = vst.msk [vmem:[#allocation3 + $0xb0] sm:$0xff] %vm730_vm2, %v3890_v60  ;;  %754 = vst.msk [vmem:[#allocation3 + $0xb8] sm:$0xff] %vm730_vm2, %v3890_v60 }
 0x1c5   : > { %v3289_v25 = vpack.c.bf16 %v531_v24, %v531_v24  ;;  %723 = vst.msk [vmem:[#allocation2 + $0x64] sm:$0xf] %vm697_vm1, %v3304_v23 }
 0x1c6   : > { %v563_v26 = vpop.trf.xlu1  ;;  %755 = vst.msk [vmem:[#allocation3 + $0xc0] sm:$0xff] %vm730_vm2, %v3890_v60  ;;  %756 = vst.msk [vmem:[#allocation3 + $0xc8] sm:$0xff] %vm730_vm2, %v3890_v60 }
 0x1c7   : > { %708 = vst.msk [vmem:[#allocation2 + $0x28] sm:$0xf] %vm697_vm1, %v3289_v25  ;;  %v3305_v27 = vpack.c.bf16 %v563_v26, %v563_v26 }
 0x1c8   : > { %v532_v28 = vpop.trf.xlu0  ;;  %757 = vst.msk [vmem:[#allocation3 + $0xd0] sm:$0xff] %vm730_vm2, %v3890_v60  ;;  %758 = vst.msk [vmem:[#allocation3 + $0xd8] sm:$0xff] %vm730_vm2, %v3890_v60 }
 0x1c9   : > { %v3290_v29 = vpack.c.bf16 %v532_v28, %v532_v28  ;;  %724 = vst.msk [vmem:[#allocation2 + $0x68] sm:$0xf] %vm697_vm1, %v3305_v27 }
 0x1ca   : > { %v3446_v30 = vld [vmem:[#allocation2 + $0x20] sm:$0xff]   ;;  %v564_v31 = vpop.trf.xlu1  ;;  %759 = vst.msk [vmem:[#allocation3 + $0xe0] sm:$0xff] %vm730_vm2, %v3890_v60  ;;  %760 = vst.msk [vmem:[#allocation3 + $0xe8] sm:$0xff] %vm730_vm2, %v3890_v60 }
 0x1cb   : > { %709 = vst.msk [vmem:[#allocation2 + $0x2c] sm:$0xf] %vm697_vm1, %v3290_v29  ;;  %v3306_v32 = vpack.c.bf16 %v564_v31, %v564_v31  ;;  %3256 = vmatmul.mubr.msk.bf16.gmra.mxu1 %vm445_vm0, %v3446_v30 }
 0x1cc   : > { %v533_v33 = vpop.trf.xlu0  ;;  %1094 = vmatprep.mubr.bf16.mxu1 %v3889_v0  ;;  %v3454_v56 = vld [vmem:[#allocation2 + $0x60] sm:$0xff]   ;;  %761 = vst.msk [vmem:[#allocation3 + $0xf0] sm:$0xff] %vm730_vm2, %v3890_v60  ;;  %762 = vst.msk [vmem:[#allocation3 + $0xf8] sm:$0xff] %vm730_vm2, %v3890_v60 }
 0x1cd   : > { %v3291_v34 = vpack.c.bf16 %v533_v33, %v533_v33  ;;  %725 = vst.msk [vmem:[#allocation2 + $0x6c] sm:$0xf] %vm697_vm1, %v3306_v32 }
 0x1ce   : > { %v565_v35 = vpop.trf.xlu1  ;;  %809 = vst.msk [vmem:[#allocation5 + $0x70] sm:$0xff] %vm445_vm0, %v3891_v20  ;;  %795 = vst.msk [vmem:[#allocation5] sm:$0xff] %vm445_vm0, %v3891_v20 }
 0x1cf   : > { %710 = vst.msk [vmem:[#allocation2 + $0x30] sm:$0xf] %vm697_vm1, %v3291_v34  ;;  %v3307_v36 = vpack.c.bf16 %v565_v35, %v565_v35 }
 0x1d0   : > { %v534_v37 = vpop.trf.xlu0  ;;  %763 = vst.msk [vmem:[#allocation4] sm:$0xff] %vm730_vm2, %v3891_v20  ;;  %764 = vst.msk [vmem:[#allocation4 + $0x8] sm:$0xff] %vm730_vm2, %v3891_v20 }
 0x1d1   : > { %v3292_v38 = vpack.c.bf16 %v534_v37, %v534_v37  ;;  %726 = vst.msk [vmem:[#allocation2 + $0x70] sm:$0xf] %vm697_vm1, %v3307_v36 }
 0x1d2   : > { %v3447_v39 = vld [vmem:[#allocation2 + $0x28] sm:$0xff]   ;;  %v566_v40 = vpop.trf.xlu1  ;;  %765 = vst.msk [vmem:[#allocation4 + $0x10] sm:$0xff] %vm730_vm2, %v3891_v20  ;;  %766 = vst.msk [vmem:[#allocation4 + $0x18] sm:$0xff] %vm730_vm2, %v3891_v20 }
 0x1d3   : > { %711 = vst.msk [vmem:[#allocation2 + $0x34] sm:$0xf] %vm697_vm1, %v3292_v38  ;;  %v3308_v41 = vpack.c.bf16 %v566_v40, %v566_v40  ;;  %3257 = vmatmul.mubr.msk.bf16.gmra.mxu1 %vm445_vm0, %v3447_v39 }
 0x1d4   : > { %v535_v42 = vpop.trf.xlu0  ;;  %1104 = vmatprep.mubr.bf16.mxu1 %v3889_v0  ;;  %v3455_v57 = vld [vmem:[#allocation2 + $0x68] sm:$0xff]   ;;  %767 = vst.msk [vmem:[#allocation4 + $0x20] sm:$0xff] %vm730_vm2, %v3891_v20  ;;  %768 = vst.msk [vmem:[#allocation4 + $0x28] sm:$0xff] %vm730_vm2, %v3891_v20 }
 0x1d5   : > { %v3293_v43 = vpack.c.bf16 %v535_v42, %v535_v42  ;;  %727 = vst.msk [vmem:[#allocation2 + $0x74] sm:$0xf] %vm697_vm1, %v3308_v41 }
 0x1d6   : > { %v567_v44 = vpop.trf.xlu1  ;;  %769 = vst.msk [vmem:[#allocation4 + $0x30] sm:$0xff] %vm730_vm2, %v3891_v20  ;;  %770 = vst.msk [vmem:[#allocation4 + $0x38] sm:$0xff] %vm730_vm2, %v3891_v20 }
 0x1d7   : > { %712 = vst.msk [vmem:[#allocation2 + $0x38] sm:$0xf] %vm697_vm1, %v3293_v43  ;;  %v3309_v45 = vpack.c.bf16 %v567_v44, %v567_v44 }
 0x1d8   : > { %v536_v46 = vpop.trf.xlu0  ;;  %771 = vst.msk [vmem:[#allocation4 + $0x40] sm:$0xff] %vm730_vm2, %v3891_v20  ;;  %772 = vst.msk [vmem:[#allocation4 + $0x48] sm:$0xff] %vm730_vm2, %v3891_v20 }
 0x1d9   : > { %v3294_v47 = vpack.c.bf16 %v536_v46, %v536_v46  ;;  %728 = vst.msk [vmem:[#allocation2 + $0x78] sm:$0xf] %vm697_vm1, %v3309_v45 }
 0x1da   : > { %v3448_v48 = vld [vmem:[#allocation2 + $0x30] sm:$0xff]   ;;  %v568_v51 = vpop.trf.xlu1  ;;  %773 = vst.msk [vmem:[#allocation4 + $0x50] sm:$0xff] %vm730_vm2, %v3891_v20  ;;  %774 = vst.msk [vmem:[#allocation4 + $0x58] sm:$0xff] %vm730_vm2, %v3891_v20 }
 0x1db   : > { %713 = vst.msk [vmem:[#allocation2 + $0x3c] sm:$0xf] %vm697_vm1, %v3294_v47  ;;  %3258 = vmatmul.mubr.msk.bf16.gmra.mxu1 %vm445_vm0, %v3448_v48  ;;  %v3310_v52 = vpack.c.bf16 %v568_v51, %v568_v51 }
 0x1dc   : > { %1114 = vmatprep.mubr.bf16.mxu1 %v3889_v0  ;;  %v3456_v58 = vld [vmem:[#allocation2 + $0x70] sm:$0xff]   ;;  %775 = vst.msk [vmem:[#allocation4 + $0x60] sm:$0xff] %vm730_vm2, %v3891_v20  ;;  %776 = vst.msk [vmem:[#allocation4 + $0x68] sm:$0xff] %vm730_vm2, %v3891_v20 }
 0x1dd   : > { %729 = vst.msk [vmem:[#allocation2 + $0x7c] sm:$0xf] %vm697_vm1, %v3310_v52 }
 0x1de   : > { %777 = vst.msk [vmem:[#allocation4 + $0x70] sm:$0xff] %vm730_vm2, %v3891_v20  ;;  %778 = vst.msk [vmem:[#allocation4 + $0x78] sm:$0xff] %vm730_vm2, %v3891_v20 }
 0x1df   : > { %779 = vst.msk [vmem:[#allocation4 + $0x80] sm:$0xff] %vm730_vm2, %v3891_v20  ;;  %780 = vst.msk [vmem:[#allocation4 + $0x88] sm:$0xff] %vm730_vm2, %v3891_v20 }
 0x1e0   : > { %781 = vst.msk [vmem:[#allocation4 + $0x90] sm:$0xff] %vm730_vm2, %v3891_v20  ;;  %782 = vst.msk [vmem:[#allocation4 + $0x98] sm:$0xff] %vm730_vm2, %v3891_v20 }
 0x1e1   : > { %783 = vst.msk [vmem:[#allocation4 + $0xa0] sm:$0xff] %vm730_vm2, %v3891_v20  ;;  %784 = vst.msk [vmem:[#allocation4 + $0xa8] sm:$0xff] %vm730_vm2, %v3891_v20 }
 0x1e2   : > { %v3449_v49 = vld [vmem:[#allocation2 + $0x38] sm:$0xff]   ;;  %785 = vst.msk [vmem:[#allocation4 + $0xb0] sm:$0xff] %vm730_vm2, %v3891_v20  ;;  %786 = vst.msk [vmem:[#allocation4 + $0xb8] sm:$0xff] %vm730_vm2, %v3891_v20 }
 0x1e3   : > { %3259 = vmatmul.mubr.msk.bf16.gmra.mxu1 %vm445_vm0, %v3449_v49  ;;  %787 = vst.msk [vmem:[#allocation4 + $0xc0] sm:$0xff] %vm730_vm2, %v3891_v20  ;;  %788 = vst.msk [vmem:[#allocation4 + $0xc8] sm:$0xff] %vm730_vm2, %v3891_v20 }
 0x1e4   : > { %1124 = vmatprep.mubr.bf16.mxu1 %v3889_v0  ;;  %v3457_v59 = vld [vmem:[#allocation2 + $0x78] sm:$0xff]   ;;  %789 = vst.msk [vmem:[#allocation4 + $0xd0] sm:$0xff] %vm730_vm2, %v3891_v20  ;;  %790 = vst.msk [vmem:[#allocation4 + $0xd8] sm:$0xff] %vm730_vm2, %v3891_v20 }
 0x1e5   : > { %791 = vst.msk [vmem:[#allocation4 + $0xe0] sm:$0xff] %vm730_vm2, %v3891_v20  ;;  %792 = vst.msk [vmem:[#allocation4 + $0xe8] sm:$0xff] %vm730_vm2, %v3891_v20 }
 0x1e6   : > { %793 = vst.msk [vmem:[#allocation4 + $0xf0] sm:$0xff] %vm730_vm2, %v3891_v20  ;;  %794 = vst.msk [vmem:[#allocation4 + $0xf8] sm:$0xff] %vm730_vm2, %v3891_v20 }
 0x1e7   : > { %796 = vst.msk [vmem:[#allocation5 + $0x8] sm:$0xff] %vm445_vm0, %v3891_v20  ;;  %797 = vst.msk [vmem:[#allocation5 + $0x10] sm:$0xff] %vm445_vm0, %v3891_v20 }
 0x1e8   : > { %798 = vst.msk [vmem:[#allocation5 + $0x18] sm:$0xff] %vm445_vm0, %v3891_v20  ;;  %799 = vst.msk [vmem:[#allocation5 + $0x20] sm:$0xff] %vm445_vm0, %v3891_v20 }
 0x1e9   : > { %800 = vst.msk [vmem:[#allocation5 + $0x28] sm:$0xff] %vm445_vm0, %v3891_v20  ;;  %801 = vst.msk [vmem:[#allocation5 + $0x30] sm:$0xff] %vm445_vm0, %v3891_v20 }
 0x1ea   : > { %802 = vst.msk [vmem:[#allocation5 + $0x38] sm:$0xff] %vm445_vm0, %v3891_v20  ;;  %803 = vst.msk [vmem:[#allocation5 + $0x40] sm:$0xff] %vm445_vm0, %v3891_v20 }
 0x1eb   : > { %3260 = vmatmul.mubr.msk.bf16.gmra.mxu1 %vm445_vm0, %v3450_v50  ;;  %804 = vst.msk [vmem:[#allocation5 + $0x48] sm:$0xff] %vm445_vm0, %v3891_v20  ;;  %805 = vst.msk [vmem:[#allocation5 + $0x50] sm:$0xff] %vm445_vm0, %v3891_v20 }
 0x1ec   : > { %1134 = vmatprep.mubr.bf16.mxu1 %v3889_v0  ;;  %806 = vst.msk [vmem:[#allocation5 + $0x58] sm:$0xff] %vm445_vm0, %v3891_v20  ;;  %807 = vst.msk [vmem:[#allocation5 + $0x60] sm:$0xff] %vm445_vm0, %v3891_v20 }
 0x1ed   : > { %808 = vst.msk [vmem:[#allocation5 + $0x68] sm:$0xff] %vm445_vm0, %v3891_v20  ;;  %810 = vst.msk [vmem:[#allocation5 + $0x78] sm:$0xff] %vm445_vm0, %v3891_v20 }
 0x1ee   : > { %811 = vst.msk [vmem:[#allocation5 + $0x80] sm:$0xff] %vm445_vm0, %v3891_v20  ;;  %812 = vst.msk [vmem:[#allocation5 + $0x88] sm:$0xff] %vm445_vm0, %v3891_v20 }
 0x1ef   : > { %813 = vst.msk [vmem:[#allocation5 + $0x90] sm:$0xff] %vm445_vm0, %v3891_v20  ;;  %814 = vst.msk [vmem:[#allocation5 + $0x98] sm:$0xff] %vm445_vm0, %v3891_v20 }
 0x1f0   : > { %815 = vst.msk [vmem:[#allocation5 + $0xa0] sm:$0xff] %vm445_vm0, %v3891_v20  ;;  %816 = vst.msk [vmem:[#allocation5 + $0xa8] sm:$0xff] %vm445_vm0, %v3891_v20 }
 0x1f1   : > { %817 = vst.msk [vmem:[#allocation5 + $0xb0] sm:$0xff] %vm445_vm0, %v3891_v20  ;;  %818 = vst.msk [vmem:[#allocation5 + $0xb8] sm:$0xff] %vm445_vm0, %v3891_v20 }
 0x1f2   : > { %819 = vst.msk [vmem:[#allocation5 + $0xc0] sm:$0xff] %vm445_vm0, %v3891_v20  ;;  %820 = vst.msk [vmem:[#allocation5 + $0xc8] sm:$0xff] %vm445_vm0, %v3891_v20 }
 0x1f3   : > { %3261 = vmatmul.mubr.msk.bf16.gmra.mxu1 %vm445_vm0, %v3451_v53  ;;  %821 = vst.msk [vmem:[#allocation5 + $0xd0] sm:$0xff] %vm445_vm0, %v3891_v20  ;;  %822 = vst.msk [vmem:[#allocation5 + $0xd8] sm:$0xff] %vm445_vm0, %v3891_v20 }
 0x1f4   : > { %1144 = vmatprep.mubr.bf16.mxu1 %v3889_v0  ;;  %823 = vst.msk [vmem:[#allocation5 + $0xe0] sm:$0xff] %vm445_vm0, %v3891_v20  ;;  %824 = vst.msk [vmem:[#allocation5 + $0xe8] sm:$0xff] %vm445_vm0, %v3891_v20 }
 0x1f5   : > { %825 = vst.msk [vmem:[#allocation5 + $0xf0] sm:$0xff] %vm445_vm0, %v3891_v20  ;;  %826 = vst.msk [vmem:[#allocation5 + $0xf8] sm:$0xff] %vm445_vm0, %v3891_v20 }
 0x1fb   : > { %3262 = vmatmul.mubr.msk.bf16.gmra.mxu1 %vm445_vm0, %v3452_v54 }
 0x1fc   : > { %1154 = vmatprep.mubr.bf16.mxu1 %v3889_v0 }
 0x203   : > { %3263 = vmatmul.mubr.msk.bf16.gmra.mxu1 %vm445_vm0, %v3453_v55 }
 0x204   : > { %1164 = vmatprep.mubr.bf16.mxu1 %v3889_v0 }
 0x20b   : > { %3264 = vmatmul.mubr.msk.bf16.gmra.mxu1 %vm445_vm0, %v3454_v56 }
 0x20c   : > { %1174 = vmatprep.mubr.bf16.mxu1 %v3889_v0 }
 0x213   : > { %3265 = vmatmul.mubr.msk.bf16.gmra.mxu1 %vm445_vm0, %v3455_v57 }
 0x214   : > { %1184 = vmatprep.mubr.bf16.mxu1 %v3889_v0 }
 0x21b   : > { %3266 = vmatmul.mubr.msk.bf16.gmra.mxu1 %vm445_vm0, %v3456_v58 }
 0x21c   : > { %1194 = vmatprep.mubr.bf16.mxu1 %v3889_v0 }
 0x223   : > { %3267 = vmatmul.mubr.msk.bf16.gmra.mxu1 %vm445_vm0, %v3457_v59 }
 0x26b   : > { %v4203_v0 = vpop.f32.mrf.mxu1 }
 0x26d   : > { %v4205_v61 = vpop.f32.mrf.mxu1 }
 0x26e   : > { %v1237_v62 = vmax.f32 %v4203_v0, %v4205_v61 }
 0x26f   : > { %v4209_v63 = vpop.f32.mrf.mxu1 }
 0x270   : > { %1238 = vmax.xlane.f32.xlu0 %v1237_v62 }
 0x271   : > { %v4211_v1 = vpop.f32.mrf.mxu1 }
 0x272   : > { %v1240_v2 = vmax.f32 %v4209_v63, %v4211_v1 }
 0x273   : > { %v4215_v3 = vpop.f32.mrf.mxu1 }
 0x274   : > { %1241 = vmax.xlane.f32.xlu1 %v1240_v2 }
 0x275   : > { %v4217_v4 = vpop.f32.mrf.mxu1 }
 0x276   : > { %v1243_v5 = vmax.f32 %v4215_v3, %v4217_v4 }
 0x277   : > { %v4221_v6 = vpop.f32.mrf.mxu1 }
 0x278   : > { %1244 = vmax.xlane.f32.xlu0 %v1243_v5 }
 0x279   : > { %v4223_v7 = vpop.f32.mrf.mxu1 }
 0x27a   : > { %v1246_v8 = vmax.f32 %v4221_v6, %v4223_v7 }
 0x27b   : > { %v4227_v9 = vpop.f32.mrf.mxu1 }
 0x27c   : > { %1247 = vmax.xlane.f32.xlu0 %v1246_v8 }
 0x27d   : > { %v4229_v10 = vpop.f32.mrf.mxu1 }
 0x27e   : > { %v1249_v11 = vmax.f32 %v4227_v9, %v4229_v10 }
 0x27f   : > { %v4233_v12 = vpop.f32.mrf.mxu1 }
 0x280   : > { %1250 = vmax.xlane.f32.xlu1 %v1249_v11 }
 0x281   : > { %v4235_v13 = vpop.f32.mrf.mxu1 }
 0x282   : > { %v1252_v14 = vmax.f32 %v4233_v12, %v4235_v13 }
 0x283   : > { %v4239_v15 = vpop.f32.mrf.mxu1 }
 0x284   : > { %1253 = vmax.xlane.f32.xlu0 %v1252_v14 }
 0x285   : > { %v4241_v16 = vpop.f32.mrf.mxu1 }
 0x286   : > { %v1255_v17 = vmax.f32 %v4239_v15, %v4241_v16 }
 0x287   : > { %v4245_v18 = vpop.f32.mrf.mxu1 }
 0x288   : > { %1256 = vmax.xlane.f32.xlu1 %v1255_v17 }
 0x289   : > { %v4247_v19 = vpop.f32.mrf.mxu1 }
 0x28a   : > { %v1258_v21 = vmax.f32 %v4245_v18, %v4247_v19 }
 0x28b   : > { %v4379_v22 = vpop.f32.mrf.mxu1 }
 0x28c   : > { %1259 = vmax.xlane.f32.xlu0 %v1258_v21 }
 0x28d   : > { %v4381_v23 = vpop.f32.mrf.mxu1 }
 0x28e   : > { %v1261_v24 = vmax.f32 %v4379_v22, %v4381_v23 }
 0x28f   : > { %v4385_v25 = vpop.f32.mrf.mxu1 }
 0x290   : > { %1262 = vmax.xlane.f32.xlu1 %v1261_v24 }
 0x291   : > { %v4387_v26 = vpop.f32.mrf.mxu1 }
 0x292   : > { %v1264_v27 = vmax.f32 %v4385_v25, %v4387_v26 }
 0x293   : > { %v4391_v28 = vpop.f32.mrf.mxu1 }
 0x294   : > { %1265 = vmax.xlane.f32.xlu0 %v1264_v27 }
 0x295   : > { %v4393_v29 = vpop.f32.mrf.mxu1 }
 0x296   : > { %v1267_v30 = vmax.f32 %v4391_v28, %v4393_v29 }
 0x297   : > { %v4397_v31 = vpop.f32.mrf.mxu1 }
 0x298   : > { %1268 = vmax.xlane.f32.xlu1 %v1267_v30 }
 0x299   : > { %v4399_v32 = vpop.f32.mrf.mxu1 }
 0x29a   : > { %v1270_v33 = vmax.f32 %v4397_v31, %v4399_v32 }
 0x29b   : > { %v4403_v34 = vpop.f32.mrf.mxu1 }
 0x29c   : > { %1271 = vmax.xlane.f32.xlu0 %v1270_v33 }
 0x29d   : > { %v4405_v35 = vpop.f32.mrf.mxu1 }
 0x29e   : > { %v1273_v36 = vmax.f32 %v4403_v34, %v4405_v35 }
 0x29f   : > { %v4409_v37 = vpop.f32.mrf.mxu1 }
 0x2a0   : > { %1274 = vmax.xlane.f32.xlu1 %v1273_v36 }
 0x2a1   : > { %v4411_v38 = vpop.f32.mrf.mxu1 }
 0x2a2   : > { %v1276_v39 = vmax.f32 %v4409_v37, %v4411_v38 }
 0x2a3   : > { %v4415_v40 = vpop.f32.mrf.mxu1 }
 0x2a4   : > { %1277 = vmax.xlane.f32.xlu0 %v1276_v39 }
 0x2a5   : > { %v4417_v41 = vpop.f32.mrf.mxu1 }
 0x2a6   : > { %v1279_v42 = vmax.f32 %v4415_v40, %v4417_v41 }
 0x2a7   : > { %v4421_v43 = vpop.f32.mrf.mxu1 }
 0x2a8   : > { %1280 = vmax.xlane.f32.xlu1 %v1279_v42 }
 0x2a9   : > { %v4423_v44 = vpop.f32.mrf.mxu1 }
 0x2aa   : > { %v1282_v45 = vmax.f32 %v4421_v43, %v4423_v44 }
 0x2ab   : > { %v4427_v46 = vpop.f32.mrf.mxu1 }
 0x2ac   : > { %1283 = vmax.xlane.f32.xlu0 %v1282_v45 }
 0x2ad   : > { %v4429_v47 = vpop.f32.mrf.mxu1 }
 0x2ae   : > { %v1285_v48 = vmax.f32 %v4427_v46, %v4429_v47 }
 0x2af   : > { %v4433_v49 = vpop.f32.mrf.mxu1 }
 0x2b0   : > { %1286 = vmax.xlane.f32.xlu1 %v1285_v48 }
 0x2b1   : > { %v4435_v50 = vpop.f32.mrf.mxu1 }
 0x2b2   : > { %v1288_v51 = vmax.f32 %v4433_v49, %v4435_v50 }
 0x2b3   : > { %v4439_v52 = vpop.f32.mrf.mxu1 }
 0x2b4   : > { %1289 = vmax.xlane.f32.xlu0 %v1288_v51 }
 0x2b5   : > { %v4441_v53 = vpop.f32.mrf.mxu1 }
 0x2b6   : > { %v1291_v54 = vmax.f32 %v4439_v52, %v4441_v53 }
 0x2b7   : > { %v4445_v55 = vpop.f32.mrf.mxu1 }
 0x2b8   : > { %1292 = vmax.xlane.f32.xlu1 %v1291_v54 }
 0x2b9   : > { %v4447_v56 = vpop.f32.mrf.mxu1 }
 0x2ba   : > { %v1294_v57 = vmax.f32 %v4445_v55, %v4447_v56 }
 0x2bb   : > { %v4451_v58 = vpop.f32.mrf.mxu1 }
 0x2bc   : > { %5608 = vst [vmem:[#allocation17_spill] sm:$0xff] %v4451_v58  ;;  %1295 = vmax.xlane.f32.xlu0 %v1294_v57 }
 0x2bd   : > { %v4453_v59 = vpop.f32.mrf.mxu1 }
 0x2be   : > { %v1297_v60 = vmax.f32 %v4451_v58, %v4453_v59 }
 0x2bf   : > { %v4457_v62 = vpop.f32.mrf.mxu1 }
 0x2c0   : > { %1298 = vmax.xlane.f32.xlu1 %v1297_v60 }
 0x2c1   : > { %v4459_v2 = vpop.f32.mrf.mxu1 }
 0x2c2   : > { %v1300_v5 = vmax.f32 %v4457_v62, %v4459_v2 }
 0x2c3   : > { %v4463_v8 = vpop.f32.mrf.mxu1 }
 0x2c4   : > { %5609 = vst [vmem:[#allocation18_spill] sm:$0xff] %v4463_v8  ;;  %1301 = vmax.xlane.f32.xlu0 %v1300_v5 }
 0x2c5   : > { %v4465_v11 = vpop.f32.mrf.mxu1 }
 0x2c6   : > { %5610 = vst [vmem:[#allocation19_spill] sm:$0xff] %v4465_v11  ;;  %v1303_v14 = vmax.f32 %v4463_v8, %v4465_v11 }
 0x2c7   : > { %v4469_v17 = vpop.f32.mrf.mxu1 }
 0x2c8   : > { %5611 = vst [vmem:[#allocation20_spill] sm:$0xff] %v4469_v17  ;;  %1304 = vmax.xlane.f32.xlu1 %v1303_v14 }
 0x2c9   : > { %v4471_v20 = vpop.f32.mrf.mxu1 }
 0x2ca   : > { %v1306_v21 = vmax.f32 %v4469_v17, %v4471_v20 }
 0x2cb   : > { %v4475_v24 = vpop.f32.mrf.mxu1 }
 0x2cc   : > { %5612 = vst [vmem:[#allocation21_spill] sm:$0xff] %v4475_v24  ;;  %1307 = vmax.xlane.f32.xlu0 %v1306_v21 }
 0x2cd   : > { %v4477_v27 = vpop.f32.mrf.mxu1 }
 0x2ce   : > { %5613 = vst [vmem:[#allocation22_spill] sm:$0xff] %v4477_v27  ;;  %v1309_v30 = vmax.f32 %v4475_v24, %v4477_v27 }
 0x2cf   : > { %v4481_v33 = vpop.f32.mrf.mxu1 }
 0x2d0   : > { %5614 = vst [vmem:[#allocation23_spill] sm:$0xff] %v4481_v33  ;;  %1310 = vmax.xlane.f32.xlu1 %v1309_v30 }
 0x2d1   : > { %v4483_v36 = vpop.f32.mrf.mxu1 }
 0x2d2   : > { %5615 = vst [vmem:[#allocation24_spill] sm:$0xff] %v4483_v36  ;;  %v1312_v39 = vmax.f32 %v4481_v33, %v4483_v36  ;;  %v4676_v33 = vld [vmem:[#allocation3 + $0x88] sm:$0xff] }
 0x2d3   : > { %v4487_v42 = vpop.f32.mrf.mxu1  ;;  %5658 = vst [vmem:[#allocation67_spill] sm:$0xff] %v4676_v33 }
 0x2d4   : > { %5616 = vst [vmem:[#allocation25_spill] sm:$0xff] %v4487_v42  ;;  %1313 = vmax.xlane.f32.xlu0 %v1312_v39 }
 0x2d5   : > { %v4489_v45 = vpop.f32.mrf.mxu1 }
 0x2d6   : > { %5617 = vst [vmem:[#allocation26_spill] sm:$0xff] %v4489_v45  ;;  %v1315_v48 = vmax.f32 %v4487_v42, %v4489_v45 }
 0x2d7   : > { %v4493_v51 = vpop.f32.mrf.mxu1 }
 0x2d8   : > { %5618 = vst [vmem:[#allocation27_spill] sm:$0xff] %v4493_v51  ;;  %1316 = vmax.xlane.f32.xlu1 %v1315_v48  ;;  %v4511_v48 = vld [vmem:[#allocation3] sm:$0xff] }
 0x2d9   : > { %v4495_v54 = vpop.f32.mrf.mxu1  ;;  %5624 = vst [vmem:[#allocation33_spill] sm:$0xff] %v4511_v48 }
 0x2da   : > { %5619 = vst [vmem:[#allocation28_spill] sm:$0xff] %v4495_v54  ;;  %v1318_v57 = vmax.f32 %v4493_v51, %v4495_v54 }
 0x2db   : > { %v4499_v60 = vpop.f32.mrf.mxu1 }
 0x2dc   : > { %5620 = vst [vmem:[#allocation29_spill] sm:$0xff] %v4499_v60  ;;  %1319 = vmax.xlane.f32.xlu0 %v1318_v57  ;;  %v4516_v57 = vld [vmem:[#allocation3 + $0x8] sm:$0xff] }
 0x2dd   : > { %v4501_v5 = vpop.f32.mrf.mxu1  ;;  %5626 = vst [vmem:[#allocation35_spill] sm:$0xff] %v4516_v57 }
 0x2de   : > { %5621 = vst [vmem:[#allocation30_spill] sm:$0xff] %v4501_v5  ;;  %v1321_v14 = vmax.f32 %v4499_v60, %v4501_v5  ;;  %v4536_v5 = vld [vmem:[#allocation3 + $0x18] sm:$0xff] }
 0x2df   : > { %v4505_v21 = vpop.f32.mrf.mxu1  ;;  %5630 = vst [vmem:[#allocation39_spill] sm:$0xff] %v4536_v5 }
 0x2e0   : > { %5622 = vst [vmem:[#allocation31_spill] sm:$0xff] %v4505_v21  ;;  %1322 = vmax.xlane.f32.xlu1 %v1321_v14 }
 0x2e1   : > { %v4507_v30 = vpop.f32.mrf.mxu1 }
 0x2e2   : > { %5623 = vst [vmem:[#allocation32_spill] sm:$0xff] %v4507_v30  ;;  %v1324_v39 = vmax.f32 %v4505_v21, %v4507_v30 }
 0x2e3   : > { %v4660_v45 = vpop.f32.mrf.mxu1 }
 0x2e4   : > { %1325 = vmax.xlane.f32.xlu0 %v1324_v39  ;;  %v4526_v39 = vld [vmem:[#allocation3 + $0x10] sm:$0xff]  ;;  %5653 = vst [vmem:[#allocation62_spill] sm:$0xff] %v4660_v45 }
 0x2e5   : > { %5628 = vst [vmem:[#allocation37_spill] sm:$0xff] %v4526_v39  ;;  %v4671_v54 = vpop.f32.mrf.mxu1 }
 0x2e6   : > { %5656 = vst [vmem:[#allocation65_spill] sm:$0xff] %v4671_v54  ;;  %v1327_v11 = vmax.f32 %v4660_v45, %v4671_v54 }
 0x2e7   : > { %v4682_v8 = vpop.f32.mrf.mxu1 }
 0x2e8   : > { %5659 = vst [vmem:[#allocation68_spill] sm:$0xff] %v4682_v8 }
 0x2e9   : > { %v4693_v17 = vpop.f32.mrf.mxu1 }
 0x2ea   : > { %5662 = vst [vmem:[#allocation71_spill] sm:$0xff] %v4693_v17 }
 0x2f9   : > { %v1239_v42 = vpop.xlane.xlu0 %1238 }
 0x2fa   : > { %v4514_v51 = vmax.f32 %v4511_v48, %v1239_v42 }
 0x2fc   : > { %5625 = vst [vmem:[#allocation34_spill] sm:$0xff] %v4514_v51  ;;  %2519 = vst.msk [vmem:[#allocation3] sm:$0xff] %vm730_vm2, %v4514_v51  ;;  %1463 = vperm.xlu1 %3433, %v4514_v51  }
 0x2fd   : > { %v1242_v14 = vpop.xlane.xlu1 %1241 }
 0x2fe   : > { %v4524_v21 = vmax.f32 %v4516_v57, %v1242_v14  ;;  %v4546_v57 = vld [vmem:[#allocation3 + $0x20] sm:$0xff] }
 0x2ff   : > { %5632 = vst [vmem:[#allocation41_spill] sm:$0xff] %v4546_v57 }
 0x300   : > { %5627 = vst [vmem:[#allocation36_spill] sm:$0xff] %v4524_v21  ;;  %2520 = vst.msk [vmem:[#allocation3 + $0x8] sm:$0xff] %vm730_vm2, %v4524_v21  ;;  %1468 = vperm.xlu0 %3432, %v4524_v21   ;;  %v4556_v21 = vld [vmem:[#allocation3 + $0x28] sm:$0xff] }
 0x301   : > { %v1245_v60 = vpop.xlane.xlu0 %1244  ;;  %5634 = vst [vmem:[#allocation43_spill] sm:$0xff] %v4556_v21 }
 0x302   : > { %v4534_v48 = vmax.f32 %v4526_v39, %v1245_v60 }
 0x304   : > { %5629 = vst [vmem:[#allocation38_spill] sm:$0xff] %v4534_v48  ;;  %2521 = vst.msk [vmem:[#allocation3 + $0x10] sm:$0xff] %vm730_vm2, %v4534_v48  ;;  %1473 = vperm.xlu1 %3433, %v4534_v48  }
 0x305   : > { %v1248_v42 = vpop.xlane.xlu0 %1247 }
 0x306   : > { %v4544_v51 = vmax.f32 %v4536_v5, %v1248_v42  ;;  %v4566_v5 = vld [vmem:[#allocation3 + $0x30] sm:$0xff] }
 0x307   : > { %5636 = vst [vmem:[#allocation45_spill] sm:$0xff] %v4566_v5 }
 0x308   : > { %5631 = vst [vmem:[#allocation40_spill] sm:$0xff] %v4544_v51  ;;  %2522 = vst.msk [vmem:[#allocation3 + $0x18] sm:$0xff] %vm730_vm2, %v4544_v51  ;;  %1478 = vperm.xlu0 %3432, %v4544_v51   ;;  %v4576_v51 = vld [vmem:[#allocation3 + $0x38] sm:$0xff] }
 0x309   : > { %v1251_v14 = vpop.xlane.xlu1 %1250  ;;  %5638 = vst [vmem:[#allocation47_spill] sm:$0xff] %v4576_v51 }
 0x30a   : > { %v4554_v39 = vmax.f32 %v4546_v57, %v1251_v14 }
 0x30c   : > { %5633 = vst [vmem:[#allocation42_spill] sm:$0xff] %v4554_v39  ;;  %2523 = vst.msk [vmem:[#allocation3 + $0x20] sm:$0xff] %vm730_vm2, %v4554_v39  ;;  %1483 = vperm.xlu1 %3433, %v4554_v39  }
 0x30d   : > { %v1254_v60 = vpop.xlane.xlu0 %1253 }
 0x30e   : > { %v4564_v48 = vmax.f32 %v4556_v21, %v1254_v60  ;;  %v4586_v21 = vld [vmem:[#allocation3 + $0x40] sm:$0xff] }
 0x30f   : > { %5640 = vst [vmem:[#allocation49_spill] sm:$0xff] %v4586_v21 }
 0x310   : > { %5635 = vst [vmem:[#allocation44_spill] sm:$0xff] %v4564_v48  ;;  %2524 = vst.msk [vmem:[#allocation3 + $0x28] sm:$0xff] %vm730_vm2, %v4564_v48  ;;  %1488 = vperm.xlu0 %3432, %v4564_v48   ;;  %v4596_v48 = vld [vmem:[#allocation3 + $0x48] sm:$0xff] }
 0x311   : > { %v1257_v42 = vpop.xlane.xlu1 %1256  ;;  %5642 = vst [vmem:[#allocation51_spill] sm:$0xff] %v4596_v48 }
 0x312   : > { %v4574_v57 = vmax.f32 %v4566_v5, %v1257_v42 }
 0x314   : > { %5637 = vst [vmem:[#allocation46_spill] sm:$0xff] %v4574_v57  ;;  %2525 = vst.msk [vmem:[#allocation3 + $0x30] sm:$0xff] %vm730_vm2, %v4574_v57  ;;  %1493 = vperm.xlu1 %3433, %v4574_v57  }
 0x315   : > { %v1260_v14 = vpop.xlane.xlu0 %1259 }
 0x316   : > { %v4584_v39 = vmax.f32 %v4576_v51, %v1260_v14  ;;  %v4606_v51 = vld [vmem:[#allocation3 + $0x50] sm:$0xff] }
 0x317   : > { %5644 = vst [vmem:[#allocation53_spill] sm:$0xff] %v4606_v51 }
 0x318   : > { %5639 = vst [vmem:[#allocation48_spill] sm:$0xff] %v4584_v39  ;;  %2526 = vst.msk [vmem:[#allocation3 + $0x38] sm:$0xff] %vm730_vm2, %v4584_v39  ;;  %1498 = vperm.xlu0 %3432, %v4584_v39   ;;  %v4616_v39 = vld [vmem:[#allocation3 + $0x58] sm:$0xff] }
 0x319   : > { %v1263_v60 = vpop.xlane.xlu1 %1262  ;;  %5646 = vst [vmem:[#allocation55_spill] sm:$0xff] %v4616_v39 }
 0x31a   : > { %v4594_v5 = vmax.f32 %v4586_v21, %v1263_v60 }
 0x31c   : > { %5641 = vst [vmem:[#allocation50_spill] sm:$0xff] %v4594_v5  ;;  %2527 = vst.msk [vmem:[#allocation3 + $0x40] sm:$0xff] %vm730_vm2, %v4594_v5  ;;  %1503 = vperm.xlu1 %3433, %v4594_v5  }
 0x31d   : > { %v1266_v42 = vpop.xlane.xlu0 %1265 }
 0x31e   : > { %v4604_v57 = vmax.f32 %v4596_v48, %v1266_v42  ;;  %v4626_v48 = vld [vmem:[#allocation3 + $0x60] sm:$0xff] }
 0x31f   : > { %5648 = vst [vmem:[#allocation57_spill] sm:$0xff] %v4626_v48 }
 0x320   : > { %5643 = vst [vmem:[#allocation52_spill] sm:$0xff] %v4604_v57  ;;  %2528 = vst.msk [vmem:[#allocation3 + $0x48] sm:$0xff] %vm730_vm2, %v4604_v57  ;;  %1508 = vperm.xlu0 %3432, %v4604_v57   ;;  %v4636_v57 = vld [vmem:[#allocation3 + $0x68] sm:$0xff] }
 0x321   : > { %v1269_v14 = vpop.xlane.xlu1 %1268  ;;  %5650 = vst [vmem:[#allocation59_spill] sm:$0xff] %v4636_v57 }
 0x322   : > { %v4614_v21 = vmax.f32 %v4606_v51, %v1269_v14 }
 0x324   : > { %5645 = vst [vmem:[#allocation54_spill] sm:$0xff] %v4614_v21  ;;  %2529 = vst.msk [vmem:[#allocation3 + $0x50] sm:$0xff] %vm730_vm2, %v4614_v21  ;;  %1513 = vperm.xlu1 %3433, %v4614_v21  }
 0x325   : > { %v1272_v60 = vpop.xlane.xlu0 %1271 }
 0x326   : > { %v4624_v5 = vmax.f32 %v4616_v39, %v1272_v60  ;;  %v4645_v39 = vld [vmem:[#allocation3 + $0x70] sm:$0xff]  ;;  %v4654_v60 = vld [vmem:[#allocation3 + $0x78] sm:$0xff] }
 0x327   : > { %5652 = vst [vmem:[#allocation61_spill] sm:$0xff] %v4654_v60 }
 0x328   : > { %5647 = vst [vmem:[#allocation56_spill] sm:$0xff] %v4624_v5  ;;  %2530 = vst.msk [vmem:[#allocation3 + $0x58] sm:$0xff] %vm730_vm2, %v4624_v5  ;;  %1518 = vperm.xlu0 %3432, %v4624_v5  }
 0x329   : > { %v1275_v42 = vpop.xlane.xlu1 %1274 }
 0x32a   : > { %v4634_v51 = vmax.f32 %v4626_v48, %v1275_v42 }
 0x32c   : > { %5649 = vst [vmem:[#allocation58_spill] sm:$0xff] %v4634_v51  ;;  %2531 = vst.msk [vmem:[#allocation3 + $0x60] sm:$0xff] %vm730_vm2, %v4634_v51 }
 0x32d   : > { %v1278_v21 = vpop.xlane.xlu0 %1277 }
 0x32e   : > { %v4643_v14 = vmax.f32 %v4636_v57, %v1278_v21  ;;  %v4665_v57 = vld [vmem:[#allocation3 + $0x80] sm:$0xff] }
 0x32f   : > { %5655 = vst [vmem:[#allocation64_spill] sm:$0xff] %v4665_v57 }
 0x330   : > { %5651 = vst [vmem:[#allocation60_spill] sm:$0xff] %v4643_v14  ;;  %2532 = vst.msk [vmem:[#allocation3 + $0x68] sm:$0xff] %vm730_vm2, %v4643_v14 }
 0x331   : > { %v1281_v42 = vpop.xlane.xlu1 %1280 }
 0x332   : > { %v4652_v30 = vmax.f32 %v4645_v39, %v1281_v42 }
 0x334   : > { %2533 = vst.msk [vmem:[#allocation3 + $0x70] sm:$0xff] %vm730_vm2, %v4652_v30 }
 0x335   : > { %v1284_v21 = vpop.xlane.xlu0 %1283 }
 0x336   : > { %v4663_v5 = vmax.f32 %v4654_v60, %v1284_v21  ;;  %v4687_v60 = vld [vmem:[#allocation3 + $0x90] sm:$0xff] }
 0x337   : > { %5661 = vst [vmem:[#allocation70_spill] sm:$0xff] %v4687_v60 }
 0x338   : > { %5654 = vst [vmem:[#allocation63_spill] sm:$0xff] %v4663_v5  ;;  %2534 = vst.msk [vmem:[#allocation3 + $0x78] sm:$0xff] %vm730_vm2, %v4663_v5 }
 0x339   : > { %v1287_v24 = vpop.xlane.xlu1 %1286 }
 0x33a   : > { %v4674_v48 = vmax.f32 %v4665_v57, %v1287_v24  ;;  %v4698_v57 = vld [vmem:[#allocation3 + $0x98] sm:$0xff]  ;;  %v1330_v24 = vmax.f32 %v4682_v8, %v4693_v17  ;;  %v4720_v8 = vld [vmem:[#allocation3 + $0xa8] sm:$0xff] }
 0x33b   : > { %5664 = vst [vmem:[#allocation73_spill] sm:$0xff] %v4698_v57  ;;  %5668 = vst [vmem:[#allocation77_spill] sm:$0xff] %v4720_v8 }
 0x33c   : > { %5657 = vst [vmem:[#allocation66_spill] sm:$0xff] %v4674_v48  ;;  %2535 = vst.msk [vmem:[#allocation3 + $0x80] sm:$0xff] %vm730_vm2, %v4674_v48 }
 0x33d   : > { %v1290_v27 = vpop.xlane.xlu0 %1289 }
 0x33e   : > { %v4685_v42 = vmax.f32 %v4676_v33, %v1290_v27  ;;  %v4729_v27 = vld [vmem:[#allocation3 + $0xb0] sm:$0xff] }
 0x33f   : > { %5670 = vst [vmem:[#allocation79_spill] sm:$0xff] %v4729_v27 }
 0x340   : > { %5660 = vst [vmem:[#allocation69_spill] sm:$0xff] %v4685_v42  ;;  %2536 = vst.msk [vmem:[#allocation3 + $0x88] sm:$0xff] %vm730_vm2, %v4685_v42 }
 0x341   : > { %v1293_v36 = vpop.xlane.xlu1 %1292 }
 0x342   : > { %v4696_v21 = vmax.f32 %v4687_v60, %v1293_v36  ;;  %v4711_v36 = vld [vmem:[#allocation3 + $0xa0] sm:$0xff] }
 0x343   : > { %5666 = vst [vmem:[#allocation75_spill] sm:$0xff] %v4711_v36 }
 0x344   : > { %5663 = vst [vmem:[#allocation72_spill] sm:$0xff] %v4696_v21  ;;  %2537 = vst.msk [vmem:[#allocation3 + $0x90] sm:$0xff] %vm730_vm2, %v4696_v21 }
 0x345   : > { %v1296_v33 = vpop.xlane.xlu0 %1295 }
 0x346   : > { %v4709_v58 = vmax.f32 %v4698_v57, %v1296_v33  ;;  %v4738_v33 = vld [vmem:[#allocation3 + $0xb8] sm:$0xff]  ;;  %v4747_v57 = vld [vmem:[#allocation3 + $0xc0] sm:$0xff] }
 0x347   : > { %1331 = vmax.xlane.f32.xlu0 %v1330_v24  ;;  %5672 = vst [vmem:[#allocation81_spill] sm:$0xff] %v4738_v33  ;;  %5673 = vst [vmem:[#allocation82_spill] sm:$0xff] %v4747_v57 }
 0x348   : > { %5665 = vst [vmem:[#allocation74_spill] sm:$0xff] %v4709_v58  ;;  %1328 = vmax.xlane.f32.xlu1 %v1327_v11  ;;  %2538 = vst.msk [vmem:[#allocation3 + $0x98] sm:$0xff] %vm730_vm2, %v4709_v58 }
 0x349   : > { %v1299_v60 = vpop.xlane.xlu1 %1298 }
 0x34a   : > { %v4718_v17 = vmax.f32 %v4711_v36, %v1299_v60 }
 0x34c   : > { %5667 = vst [vmem:[#allocation76_spill] sm:$0xff] %v4718_v17  ;;  %2539 = vst.msk [vmem:[#allocation3 + $0xa0] sm:$0xff] %vm730_vm2, %v4718_v17 }
 0x34d   : > { %v1302_v24 = vpop.xlane.xlu0 %1301 }
 0x34e   : > { %v4727_v11 = vmax.f32 %v4720_v8, %v1302_v24 }
 0x350   : > { %5669 = vst [vmem:[#allocation78_spill] sm:$0xff] %v4727_v11  ;;  %2540 = vst.msk [vmem:[#allocation3 + $0xa8] sm:$0xff] %vm730_vm2, %v4727_v11 }
 0x351   : > { %v1305_v60 = vpop.xlane.xlu1 %1304 }
 0x352   : > { %v4736_v54 = vmax.f32 %v4729_v27, %v1305_v60  ;;  %v4757_v27 = vld [vmem:[#allocation3 + $0xc8] sm:$0xff] }
 0x354   : > { %5671 = vst [vmem:[#allocation80_spill] sm:$0xff] %v4736_v54  ;;  %2541 = vst.msk [vmem:[#allocation3 + $0xb0] sm:$0xff] %vm730_vm2, %v4736_v54 }
 0x355   : > { %v1308_v24 = vpop.xlane.xlu0 %1307 }
 0x356   : > { %v4745_v45 = vmax.f32 %v4738_v33, %v1308_v24 }
 0x358   : > { %2542 = vst.msk [vmem:[#allocation3 + $0xb8] sm:$0xff] %vm730_vm2, %v4745_v45 }
 0x359   : > { %1523 = vperm.xlu1 %3433, %v4634_v51   ;;  %v1311_v60 = vpop.xlane.xlu1 %1310  ;;  %v4768_v51 = vld [vmem:[#allocation3 + $0xd0] sm:$0xff] }
 0x35a   : > { %v4755_v36 = vmax.f32 %v4747_v57, %v1311_v60  ;;  %5675 = vst [vmem:[#allocation84_spill] sm:$0xff] %v4768_v51 }
 0x35c   : > { %5674 = vst [vmem:[#allocation83_spill] sm:$0xff] %v4755_v36  ;;  %2543 = vst.msk [vmem:[#allocation3 + $0xc0] sm:$0xff] %vm730_vm2, %v4755_v36 }
 0x35d   : > { %1533 = vperm.xlu1 %3433, %v4652_v30   ;;  %1528 = vperm.xlu0 %3432, %v4643_v14   ;;  %v1314_v8 = vpop.xlane.xlu0 %1313  ;;  %v4779_v14 = vld [vmem:[#allocation3 + $0xd8] sm:$0xff] }
 0x35e   : > { %v4766_v33 = vmax.f32 %v4757_v27, %v1314_v8 }
 0x360   : > { %2544 = vst.msk [vmem:[#allocation3 + $0xc8] sm:$0xff] %vm730_vm2, %v4766_v33 }
 0x361   : > { %1543 = vperm.xlu0 %3432, %v4674_v48   ;;  %1538 = vperm.xlu1 %3433, %v4663_v5   ;;  %v1317_v24 = vpop.xlane.xlu1 %1316  ;;  %v4790_v5 = vld [vmem:[#allocation3 + $0xe0] sm:$0xff] }
 0x362   : > { %v4777_v57 = vmax.f32 %v4768_v51, %v1317_v24  ;;  %5677 = vst [vmem:[#allocation86_spill] sm:$0xff] %v4790_v5 }
 0x364   : > { %5676 = vst [vmem:[#allocation85_spill] sm:$0xff] %v4777_v57  ;;  %2545 = vst.msk [vmem:[#allocation3 + $0xd0] sm:$0xff] %vm730_vm2, %v4777_v57 }
 0x365   : > { %1553 = vperm.xlu0 %3432, %v4696_v21   ;;  %1548 = vperm.xlu1 %3433, %v4685_v42   ;;  %v1320_v60 = vpop.xlane.xlu0 %1319  ;;  %v4801_v42 = vld [vmem:[#allocation3 + $0xe8] sm:$0xff] }
 0x366   : > { %v4788_v48 = vmax.f32 %v4779_v14, %v1320_v60 }
 0x368   : > { %2546 = vst.msk [vmem:[#allocation3 + $0xd8] sm:$0xff] %vm730_vm2, %v4788_v48 }
 0x369   : > { %1563 = vperm.xlu0 %3432, %v4718_v17   ;;  %1558 = vperm.xlu1 %3433, %v4709_v58   ;;  %v1323_v8 = vpop.xlane.xlu1 %1322 }
 0x36a   : > { %v4799_v21 = vmax.f32 %v4790_v5, %v1323_v8 }
 0x36c   : > { %5678 = vst [vmem:[#allocation87_spill] sm:$0xff] %v4799_v21  ;;  %2547 = vst.msk [vmem:[#allocation3 + $0xe0] sm:$0xff] %vm730_vm2, %v4799_v21 }
 0x36d   : > { %1573 = vperm.xlu0 %3432, %v4736_v54   ;;  %1568 = vperm.xlu1 %3433, %v4727_v11   ;;  %v1326_v24 = vpop.xlane.xlu0 %1325 }
 0x36e   : > { %v4810_v17 = vmax.f32 %v4801_v42, %v1326_v24 }
 0x370   : > { %2548 = vst.msk [vmem:[#allocation3 + $0xe8] sm:$0xff] %vm730_vm2, %v4810_v17 }
 0x371   : > { %1583 = vperm.xlu0 %3432, %v4755_v36   ;;  %1578 = vperm.xlu1 %3433, %v4745_v45  }
 0x375   : > { %1593 = vperm.xlu0 %3432, %v4777_v57   ;;  %1588 = vperm.xlu1 %3433, %v4766_v33  }
 0x377   : > { %v1464_v60 = vpop.permute.xlu1 %1463 }
 0x378   : > { %v1621_v11 = vsub.f32 %v4203_v0, %v1464_v60  ;;  %v1622_v24 = vsub.f32 %v4205_v61, %v1464_v60 }
 0x379   : > { %1603 = vperm.xlu0 %3432, %v4799_v21   ;;  %1598 = vperm.xlu1 %3433, %v4788_v48  }
 0x37a   : > { %v1685_v8 = vmul.f32 1.442695, %v1621_v11  ;;  %v1687_v54 = vmul.f32 1.442695, %v1622_v24 }
 0x37b   : > { %v1469_v58 = vpop.permute.xlu0 %1468 }
 0x37c   : > { %3460 = vpow2.f32 %v1685_v8  ;;  %v1623_v36 = vsub.f32 %v4209_v63, %v1469_v58  ;;  %v1624_v51 = vsub.f32 %v4211_v1, %v1469_v58 }
 0x37d   : > { %3462 = vpow2.f32 %v1687_v54  ;;  %1608 = vperm.xlu1 %3433, %v4810_v17  }
 0x37e   : > { %v1689_v57 = vmul.f32 1.442695, %v1623_v36  ;;  %v1691_v5 = vmul.f32 1.442695, %v1624_v51 }
 0x37f   : > { %v1474_v0 = vpop.permute.xlu1 %1473 }
 0x380   : > { %3464 = vpow2.f32 %v1689_v57  ;;  %v1625_v61 = vsub.f32 %v4215_v3, %v1474_v0  ;;  %v1626_v60 = vsub.f32 %v4217_v4, %v1474_v0 }
 0x381   : > { %3466 = vpow2.f32 %v1691_v5 }
 0x382   : > { %v1693_v11 = vmul.f32 1.442695, %v1625_v61  ;;  %v1695_v24 = vmul.f32 1.442695, %v1626_v60 }
 0x383   : > { %v1479_v21 = vpop.permute.xlu0 %1478 }
 0x384   : > { %3468 = vpow2.f32 %v1693_v11  ;;  %v1627_v63 = vsub.f32 %v4221_v6, %v1479_v21  ;;  %v1628_v1 = vsub.f32 %v4223_v7, %v1479_v21 }
 0x385   : > { %3470 = vpow2.f32 %v1695_v24 }
 0x386   : > { %v1697_v58 = vmul.f32 1.442695, %v1627_v63  ;;  %v1699_v54 = vmul.f32 1.442695, %v1628_v1 }
 0x387   : > { %v1484_v36 = vpop.permute.xlu1 %1483 }
 0x388   : > { %3472 = vpow2.f32 %v1697_v58  ;;  %v1629_v51 = vsub.f32 %v4227_v9, %v1484_v36  ;;  %v1630_v3 = vsub.f32 %v4229_v10, %v1484_v36 }
 0x389   : > { %v3461_v57 = vpop.eup %3460  ;;  %3474 = vpow2.f32 %v1699_v54 }
 0x38a   : > { %v3463_v4 = vpop.eup %3462  ;;  %v1701_v5 = vmul.f32 1.442695, %v1629_v51  ;;  %v1703_v8 = vmul.f32 1.442695, %v1630_v3 }
 0x38b   : > { %v1489_v0 = vpop.permute.xlu0 %1488  ;;  %v4833_v61 = vadd.f32 %v3463_v4, %v3461_v57 }
 0x38c   : > { %3476 = vpow2.f32 %v1701_v5  ;;  %v1631_v6 = vsub.f32 %v4233_v12, %v1489_v0  ;;  %v1632_v7 = vsub.f32 %v4235_v13, %v1489_v0 }
 0x38d   : > { %v3465_v21 = vpop.eup %3464  ;;  %3478 = vpow2.f32 %v1703_v8 }
 0x38e   : > { %v3467_v60 = vpop.eup %3466  ;;  %v1705_v11 = vmul.f32 1.442695, %v1631_v6  ;;  %v1707_v9 = vmul.f32 1.442695, %v1632_v7  ;;  %v2262_v24 = vpack.c.bf16 %v3465_v21, %v3461_v57 }
 0x38f   : > { %v1494_v10 = vpop.permute.xlu1 %1493  ;;  %v2263_v63 = vpack.c.bf16 %v3467_v60, %v3463_v4  ;;  %v4837_v1 = vadd.f32 %v3467_v60, %v3465_v21 }
 0x390   : > { %3480 = vpow2.f32 %v1705_v11  ;;  %v1633_v58 = vsub.f32 %v4239_v15, %v1494_v10  ;;  %v1634_v54 = vsub.f32 %v4241_v16, %v1494_v10 }
 0x391   : > { %v3469_v36 = vpop.eup %3468  ;;  %3482 = vpow2.f32 %v1707_v9  ;;  %2326 = vmatprep.mubr.bf16.mxu0 %v2263_v63 }
 0x392   : > { %v3471_v12 = vpop.eup %3470  ;;  %v1709_v13 = vmul.f32 1.442695, %v1633_v58  ;;  %v1711_v51 = vmul.f32 1.442695, %v1634_v54  ;;  %2327 = vmatmul.mubr.bf16.vlgmr.msra.gmra.mxu0 %v2262_v24 }
 0x393   : > { %v1499_v3 = vpop.permute.xlu0 %1498  ;;  %v4841_v5 = vadd.f32 %v3471_v12, %v3469_v36 }
 0x394   : > { %3484 = vpow2.f32 %v1709_v13  ;;  %v1635_v57 = vsub.f32 %v4245_v18, %v1499_v3  ;;  %v1636_v4 = vsub.f32 %v4247_v19, %v1499_v3 }
 0x395   : > { %v3473_v8 = vpop.eup %3472  ;;  %3486 = vpow2.f32 %v1711_v51 }
 0x396   : > { %v3475_v15 = vpop.eup %3474  ;;  %v1713_v0 = vmul.f32 1.442695, %v1635_v57  ;;  %v1715_v16 = vmul.f32 1.442695, %v1636_v4  ;;  %v2264_v6 = vpack.c.bf16 %v3473_v8, %v3469_v36 }
 0x397   : > { %v1504_v7 = vpop.permute.xlu1 %1503  ;;  %v2265_v21 = vpack.c.bf16 %v3475_v15, %v3471_v12  ;;  %v4845_v60 = vadd.f32 %v3475_v15, %v3473_v8 }
 0x398   : > { %3488 = vpow2.f32 %v1713_v0  ;;  %v1637_v11 = vsub.f32 %v4379_v22, %v1504_v7  ;;  %v1638_v9 = vsub.f32 %v4381_v23, %v1504_v7 }
 0x399   : > { %v3477_v24 = vpop.eup %3476  ;;  %3490 = vpow2.f32 %v1715_v16  ;;  %2334 = vmatprep.mubr.bf16.mxu0 %v2265_v21 }
 0x39a   : > { %v3479_v18 = vpop.eup %3478  ;;  %v1717_v19 = vmul.f32 1.442695, %v1637_v11  ;;  %v1719_v10 = vmul.f32 1.442695, %v1638_v9  ;;  %2335 = vmatmul.mubr.bf16.gmra.mxu0 %v2264_v6 }
 0x39b   : > { %v1509_v63 = vpop.permute.xlu0 %1508  ;;  %v4849_v58 = vadd.f32 %v3479_v18, %v3477_v24 }
 0x39c   : > { %3492 = vpow2.f32 %v1717_v19  ;;  %v1639_v54 = vsub.f32 %v4385_v25, %v1509_v63  ;;  %v1640_v36 = vsub.f32 %v4387_v26, %v1509_v63 }
 0x39d   : > { %v3481_v12 = vpop.eup %3480  ;;  %3494 = vpow2.f32 %v1719_v10 }
 0x39e   : > { %v3483_v22 = vpop.eup %3482  ;;  %v1721_v13 = vmul.f32 1.442695, %v1639_v54  ;;  %v1723_v23 = vmul.f32 1.442695, %v1640_v36  ;;  %v2266_v51 = vpack.c.bf16 %v3481_v12, %v3477_v24 }
 0x39f   : > { %v1514_v3 = vpop.permute.xlu1 %1513  ;;  %v2267_v57 = vpack.c.bf16 %v3483_v22, %v3479_v18  ;;  %v4853_v4 = vadd.f32 %v3483_v22, %v3481_v12 }
 0x3a0   : > { %3496 = vpow2.f32 %v1721_v13  ;;  %v1641_v8 = vsub.f32 %v4391_v28, %v1514_v3  ;;  %v1642_v15 = vsub.f32 %v4393_v29, %v1514_v3 }
 0x3a1   : > { %v3485_v0 = vpop.eup %3484  ;;  %3498 = vpow2.f32 %v1723_v23  ;;  %2342 = vmatprep.mubr.bf16.mxu0 %v2267_v57 }
 0x3a2   : > { %v3487_v25 = vpop.eup %3486  ;;  %v1725_v26 = vmul.f32 1.442695, %v1641_v8  ;;  %v1727_v16 = vmul.f32 1.442695, %v1642_v15  ;;  %2343 = vmatmul.mubr.bf16.gmra.mxu0 %v2266_v51 }
 0x3a3   : > { %v1519_v6 = vpop.permute.xlu0 %1518  ;;  %v4857_v7 = vadd.f32 %v3487_v25, %v3485_v0 }
 0x3a4   : > { %3500 = vpow2.f32 %v1725_v26  ;;  %v1643_v21 = vsub.f32 %v4397_v31, %v1519_v6  ;;  %v1644_v11 = vsub.f32 %v4399_v32, %v1519_v6  ;;  %v5679_v26 = vsub.f32 %v4645_v39, %v4652_v30  ;;  %v4874_v6 = vld [vmem:[#allocation3 + $0xf8] sm:$0xff] }
 0x3a5   : > { %v3489_v9 = vpop.eup %3488  ;;  %3502 = vpow2.f32 %v1727_v16 }
 0x3a6   : > { %v3491_v28 = vpop.eup %3490  ;;  %v1729_v24 = vmul.f32 1.442695, %v1643_v21  ;;  %v1731_v29 = vmul.f32 1.442695, %v1644_v11  ;;  %v2268_v18 = vpack.c.bf16 %v3489_v9, %v3485_v0  ;;  %v1425_v16 = vmul.f32 1.442695, %v5679_v26 }
 0x3a7   : > { %v2269_v19 = vpack.c.bf16 %v3491_v28, %v3487_v25  ;;  %v4861_v10 = vadd.f32 %v3491_v28, %v3489_v9  ;;  %v4876_v21 = vld [vmem:[#allocation3 + $0xf0] sm:$0xff] }
 0x3a8   : > { %3504 = vpow2.f32 %v1729_v24 }
 0x3a9   : > { %v3493_v63 = vpop.eup %3492  ;;  %3506 = vpow2.f32 %v1731_v29  ;;  %2350 = vmatprep.mubr.bf16.mxu0 %v2269_v19 }
 0x3aa   : > { %v3495_v54 = vpop.eup %3494  ;;  %2351 = vmatmul.mubr.bf16.gmra.mxu0 %v2268_v18  ;;  %3508 = vpow2.f32 %v1425_v16 }
 0x3ab   : > { %v4863_v36 = vadd.f32 %v3495_v54, %v3493_v63 }
 0x3ad   : > { %v3497_v31 = vpop.eup %3496 }
 0x3ae   : > { %v3499_v12 = vpop.eup %3498  ;;  %v2270_v32 = vpack.c.bf16 %v3497_v31, %v3493_v63 }
 0x3af   : > { %v2271_v22 = vpack.c.bf16 %v3499_v12, %v3495_v54  ;;  %v4865_v13 = vadd.f32 %v3499_v12, %v3497_v31 }
 0x3b1   : > { %v3501_v23 = vpop.eup %3500  ;;  %2358 = vmatprep.mubr.bf16.mxu0 %v2271_v22 }
 0x3b2   : > { %v3503_v51 = vpop.eup %3502  ;;  %2359 = vmatmul.mubr.bf16.gmra.mxu0 %v2270_v32 }
 0x3b3   : > { %v4867_v3 = vadd.f32 %v3503_v51, %v3501_v23 }
 0x3b5   : > { %v3505_v57 = vpop.eup %3504 }
 0x3b6   : > { %v3507_v8 = vpop.eup %3506  ;;  %v2272_v15 = vpack.c.bf16 %v3505_v57, %v3501_v23 }
 0x3b7   : > { %v2273_v0 = vpack.c.bf16 %v3507_v8, %v3503_v51  ;;  %v4869_v25 = vadd.f32 %v3507_v8, %v3505_v57  ;;  %v4894_v18 = vpop.eup %3508 }
 0x3b9   : > { %2366 = vmatprep.mubr.bf16.mxu0 %v2273_v0 }
 0x3ba   : > { %2367 = vmatmul.mubr.bf16.gmra.mxu0 %v2272_v15 }
 0x3d0   : > { %v1332_v11 = vpop.xlane.xlu0 %1331 }
 0x3d1   : > { %v4879_v9 = vmax.f32 %v4874_v6, %v1332_v11  ;;  %v1329_v28 = vpop.xlane.xlu1 %1328 }
 0x3d2   : > { %v4882_v24 = vmax.f32 %v4876_v21, %v1329_v28 }
 0x3d3   : > { %v1396_v29 = vsub.f32 %v4874_v6, %v4879_v9  ;;  %2550 = vst.msk [vmem:[#allocation3 + $0xf8] sm:$0xff] %vm730_vm2, %v4879_v9  ;;  %1618 = vperm.xlu1 %3433, %v4879_v9   ;;  %v5703_v6 = vsub.f32 %v4779_v14, %v4788_v48  ;;  %v5708_v48 = vld [vmem:[#allocation68_spill] sm:$0xff] }
 0x3d4   : > { %v1395_v30 = vsub.f32 %v4876_v21, %v4882_v24  ;;  %2549 = vst.msk [vmem:[#allocation3 + $0xf0] sm:$0xff] %vm730_vm2, %v4882_v24  ;;  %1613 = vperm.xlu0 %3432, %v4882_v24  }
 0x3d5   : > { %v1524_v39 = vpop.permute.xlu1 %1523  ;;  %v1451_v9 = vmul.f32 1.442695, %v5703_v6 }
 0x3d6   : > { %v1645_v19 = vsub.f32 %v4403_v34, %v1524_v39  ;;  %v1646_v63 = vsub.f32 %v4405_v35, %v1524_v39 }
 0x3d7   : > { %2142 = vperm.xlu1 %3433, %v4894_v18  }
 0x3d8   : > { %v1733_v54 = vmul.f32 1.442695, %v1645_v19  ;;  %v1735_v31 = vmul.f32 1.442695, %v1646_v63  ;;  %v1529_v12 = vpop.permute.xlu0 %1528 }
 0x3d9   : > { %v1647_v32 = vsub.f32 %v4409_v37, %v1529_v12  ;;  %v1648_v22 = vsub.f32 %v4411_v38, %v1529_v12  ;;  %v1534_v23 = vpop.permute.xlu1 %1533 }
 0x3da   : > { %3510 = vpow2.f32 %v1733_v54  ;;  %v1650_v8 = vsub.f32 %v4417_v41, %v1534_v23  ;;  %v1649_v35 = vsub.f32 %v4415_v40, %v1534_v23 }
 0x3db   : > { %v1737_v51 = vmul.f32 1.442695, %v1647_v32  ;;  %v1739_v57 = vmul.f32 1.442695, %v1648_v22  ;;  %3512 = vpow2.f32 %v1735_v31 }
 0x3dc   : > { %v1544_v15 = vpop.permute.xlu0 %1543  ;;  %v1743_v37 = vmul.f32 1.442695, %v1650_v8  ;;  %v1741_v39 = vmul.f32 1.442695, %v1649_v35 }
 0x3dd   : > { %3514 = vpow2.f32 %v1737_v51  ;;  %v1539_v34 = vpop.permute.xlu1 %1538  ;;  %v1654_v38 = vsub.f32 %v4429_v47, %v1544_v15  ;;  %v1653_v47 = vsub.f32 %v4427_v46, %v1544_v15 }
 0x3de   : > { %3516 = vpow2.f32 %v1739_v57  ;;  %v1651_v0 = vsub.f32 %v4421_v43, %v1539_v34  ;;  %v1652_v26 = vsub.f32 %v4423_v44, %v1539_v34 }
 0x3df   : > { %3518 = vpow2.f32 %v1743_v37  ;;  %v1751_v19 = vmul.f32 1.442695, %v1654_v38 }
 0x3e0   : > { %v1747_v16 = vmul.f32 1.442695, %v1652_v26  ;;  %v1745_v11 = vmul.f32 1.442695, %v1651_v0  ;;  %v1554_v54 = vpop.permute.xlu0 %1553 }
 0x3e1   : > { %v1549_v28 = vpop.permute.xlu1 %1548  ;;  %v1658_v12 = vsub.f32 %v4441_v53, %v1554_v54  ;;  %v1657_v35 = vsub.f32 %v4439_v52, %v1554_v54 }
 0x3e2   : > { %v1656_v41 = vsub.f32 %v4435_v50, %v1549_v28  ;;  %3520 = vpow2.f32 %v1747_v16  ;;  %v1655_v40 = vsub.f32 %v4433_v49, %v1549_v28  ;;  %v1749_v49 = vmul.f32 1.442695, %v1653_v47  ;;  %v5681_v47 = vld [vmem:[#allocation19_spill] sm:$0xff] }
 0x3e3   : > { %3522 = vpow2.f32 %v1745_v11  ;;  %v1759_v46 = vmul.f32 1.442695, %v1658_v12  ;;  %v1757_v28 = vmul.f32 1.442695, %v1657_v35  ;;  %v5683_v35 = vld [vmem:[#allocation24_spill] sm:$0xff] }
 0x3e4   : > { %v1755_v63 = vmul.f32 1.442695, %v1656_v41  ;;  %3524 = vpow2.f32 %v1741_v39  ;;  %v1753_v32 = vmul.f32 1.442695, %v1655_v40  ;;  %v1564_v53 = vpop.permute.xlu0 %1563 }
 0x3e5   : > { %v1559_v43 = vpop.permute.xlu1 %1558  ;;  %3526 = vpow2.f32 %v1751_v19  ;;  %v1662_v26 = vsub.f32 %v4453_v59, %v1564_v53 }
 0x3e6   : > { %v1660_v44 = vsub.f32 %v4447_v56, %v1559_v43  ;;  %3528 = vpow2.f32 %v1755_v63  ;;  %v1659_v15 = vsub.f32 %v4445_v55, %v1559_v43 }
 0x3e7   : > { %v4910_v31 = vpop.eup %3510  ;;  %3530 = vpow2.f32 %v1753_v32  ;;  %v1767_v41 = vmul.f32 1.442695, %v1662_v26 }
 0x3e8   : > { %v4913_v50 = vpop.eup %3512  ;;  %v1763_v23 = vmul.f32 1.442695, %v1660_v44  ;;  %v1761_v38 = vmul.f32 1.442695, %v1659_v15  ;;  %v1574_v19 = vpop.permute.xlu0 %1573 }
 0x3e9   : > { %v1569_v57 = vpop.permute.xlu1 %1568  ;;  %v1666_v12 = vsub.f32 %v5681_v47, %v1574_v19 }
 0x3ea   : > { %v4915_v22 = vpop.eup %3514  ;;  %3532 = vpow2.f32 %v1763_v23  ;;  %v1664_v34 = vsub.f32 %v4459_v2, %v1569_v57  ;;  %v1663_v63 = vsub.f32 %v4457_v62, %v1569_v57 }
 0x3eb   : > { %v4917_v51 = vpop.eup %3516  ;;  %v2274_v56 = vpack.c.bf16 %v4915_v22, %v4910_v31  ;;  %3534 = vpow2.f32 %v1749_v49 }
 0x3ec   : > { %v2275_v8 = vpack.c.bf16 %v4917_v51, %v4913_v50  ;;  %v4926_v0 = vpop.eup %3518  ;;  %3536 = vpow2.f32 %v1759_v46  ;;  %v1771_v11 = vmul.f32 1.442695, %v1664_v34  ;;  %v1769_v62 = vmul.f32 1.442695, %v1663_v63 }
 0x3ed   : > { %v1579_v39 = vpop.permute.xlu1 %1578  ;;  %3538 = vpow2.f32 %v1761_v38  ;;  %v1775_v46 = vmul.f32 1.442695, %v1666_v12  ;;  %v5687_v12 = vld [vmem:[#allocation28_spill] sm:$0xff] }
 0x3ee   : > { %2374 = vmatprep.mubr.bf16.mxu0 %v2275_v8  ;;  %3540 = vpow2.f32 %v1771_v11  ;;  %v1668_v40 = vsub.f32 %v4471_v20, %v1579_v39  ;;  %v1584_v8 = vpop.permute.xlu0 %1583  ;;  %v5685_v11 = vld [vmem:[#allocation22_spill] sm:$0xff] }
 0x3ef   : > { %2375 = vmatmul.mubr.bf16.gmra.mxu0 %v2274_v56  ;;  %v4929_v37 = vpop.eup %3520  ;;  %3542 = vpow2.f32 %v1757_v28 }
 0x3f0   : > { %v4931_v16 = vpop.eup %3522  ;;  %v2277_v55 = vpack.c.bf16 %v4929_v37, %v4926_v0  ;;  %3544 = vpow2.f32 %v1767_v41  ;;  %v1779_v23 = vmul.f32 1.442695, %v1668_v40 }
 0x3f1   : > { %v4935_v2 = vpop.eup %3524  ;;  %v1589_v57 = vpop.permute.xlu1 %1588  ;;  %3546 = vpow2.f32 %v1769_v62 }
 0x3f2   : > { %v4938_v52 = vpop.eup %3526  ;;  %2382 = vmatprep.mubr.bf16.mxu0 %v2277_v55  ;;  %v2276_v54 = vpack.c.bf16 %v4931_v16, %v4935_v2  ;;  %3548 = vpow2.f32 %v1779_v23  ;;  %v1672_v26 = vsub.f32 %v5683_v35, %v1589_v57  ;;  %v1670_v55 = vsub.f32 %v5685_v11, %v1584_v8  ;;  %v5688_v23 = vld [vmem:[#allocation21_spill] sm:$0xff] }
 0x3f3   : > { %1881 = vadd.xlane.f32.xlu0 %v4837_v1  ;;  %v4940_v59 = vpop.eup %3528  ;;  %v5680_v1 = vld [vmem:[#allocation17_spill] sm:$0xff] }
 0x3f4   : > { %v2279_v43 = vpack.c.bf16 %v4940_v59, %v4938_v52  ;;  %v1661_v44 = vsub.f32 %v5680_v1, %v1564_v53  ;;  %v4951_v32 = vpop.eup %3530  ;;  %v5682_v53 = vld [vmem:[#allocation20_spill] sm:$0xff]  ;;  %v1787_v41 = vmul.f32 1.442695, %v1672_v26  ;;  %v5686_v1 = vld [vmem:[#allocation23_spill] sm:$0xff] }
 0x3f5   : > { %v1667_v15 = vsub.f32 %v5682_v53, %v1579_v39  ;;  %v1599_v40 = vpop.permute.xlu1 %1598  ;;  %v1916_v53 = vadd.f32 %v4917_v51, %v4915_v22  ;;  %v1919_v22 = vadd.f32 %v4935_v2, %v4926_v0  ;;  %v5691_v51 = vld [vmem:[#allocation32_spill] sm:$0xff]  ;;  %v1928_v0 = vadd.f32 %v4951_v32, %v4940_v59 }
 0x3f6   : > { %v1765_v20 = vmul.f32 1.442695, %v1661_v44  ;;  %v1671_v44 = vsub.f32 %v5686_v1, %v1589_v57  ;;  %v1676_v62 = vsub.f32 %v5687_v12, %v1599_v40  ;;  %v1922_v59 = vadd.f32 %v4931_v16, %v4929_v37 }
 0x3f7   : > { %2383 = vmatmul.mubr.bf16.gmra.mxu0 %v2276_v54  ;;  %1887 = vadd.xlane.f32.xlu0 %v4845_v60  ;;  %v4953_v49 = vpop.eup %3532  ;;  %v1777_v28 = vmul.f32 1.442695, %v1667_v15 }
 0x3f8   : > { %2390 = vmatprep.mubr.bf16.mxu0 %v2279_v43  ;;  %v4957_v56 = vpop.eup %3534  ;;  %3550 = vpow2.f32 %v1765_v20  ;;  %v1783_v43 = vmul.f32 1.442695, %v1670_v55  ;;  %v1669_v20 = vsub.f32 %v5688_v23, %v1584_v8  ;;  %v1785_v57 = vmul.f32 1.442695, %v1671_v44  ;;  %v5694_v44 = vld [vmem:[#allocation31_spill] sm:$0xff] }
 0x3f9   : > { %v4959_v60 = vpop.eup %3536  ;;  %v2278_v34 = vpack.c.bf16 %v4951_v32, %v4957_v56  ;;  %3552 = vpow2.f32 %v1775_v46 }
 0x3fa   : > { %v4971_v39 = vpop.eup %3538  ;;  %3554 = vpow2.f32 %v1777_v28  ;;  %v1781_v26 = vmul.f32 1.442695, %v1669_v20 }
 0x3fb   : > { %1893 = vadd.xlane.f32.xlu0 %v4853_v4  ;;  %1878 = vadd.xlane.f32.xlu1 %v4833_v61  ;;  %v2281_v4 = vpack.c.bf16 %v4953_v49, %v4959_v60  ;;  %v5684_v61 = vld [vmem:[#allocation18_spill] sm:$0xff]  ;;  %v4973_v63 = vpop.eup %3540  ;;  %3556 = vpow2.f32 %v1787_v41 }
 0x3fc   : > { %v1665_v38 = vsub.f32 %v5684_v61, %v1574_v19  ;;  %v4976_v19 = vpop.eup %3542 }
 0x3fd   : > { %v2280_v47 = vpack.c.bf16 %v4971_v39, %v4976_v19 }
 0x3fe   : > { %v1773_v54 = vmul.f32 1.442695, %v1665_v38  ;;  %v5690_v38 = vld [vmem:[#allocation27_spill] sm:$0xff] }
 0x3ff   : > { %2391 = vmatmul.mubr.bf16.gmra.mxu0 %v2278_v34  ;;  %1899 = vadd.xlane.f32.xlu0 %v4861_v10  ;;  %v4979_v10 = vpop.eup %3544  ;;  %v1795_v34 = vmul.f32 1.442695, %v1676_v62  ;;  %v1675_v11 = vsub.f32 %v5690_v38, %v1599_v40  ;;  %v1913_v62 = vadd.f32 %v4913_v50, %v4910_v31  ;;  %v5695_v31 = vld [vmem:[#allocation29_spill] sm:$0xff] }
 0x400   : > { %1884 = vadd.xlane.f32.xlu1 %v4841_v5  ;;  %2398 = vmatprep.mubr.bf16.mxu0 %v2281_v4  ;;  %v1594_v5 = vpop.permute.xlu0 %1593  ;;  %3558 = vpow2.f32 %v1773_v54  ;;  %v3547_v15 = vpop.eup %3546  ;;  %v5692_v54 = vld [vmem:[#allocation25_spill] sm:$0xff] }
 0x401   : > { %3560 = vpow2.f32 %v1783_v43  ;;  %v3549_v35 = vpop.eup %3548  ;;  %v1609_v4 = vpop.permute.xlu1 %1608  ;;  %v1673_v43 = vsub.f32 %v5692_v54, %v1594_v5  ;;  %v1793_v40 = vmul.f32 1.442695, %v1675_v11 }
 0x402   : > { %3562 = vpow2.f32 %v1785_v57  ;;  %v1680_v28 = vsub.f32 %v5691_v51, %v1609_v4  ;;  %v1934_v57 = vadd.f32 %v4971_v39, %v4953_v49  ;;  %v1925_v49 = vadd.f32 %v4957_v56, %v4938_v52 }
 0x403   : > { %1905 = vadd.xlane.f32.xlu0 %v4865_v13  ;;  %v2283_v13 = vpack.c.bf16 %v4973_v63, %v4979_v10  ;;  %3564 = vpow2.f32 %v1795_v34 }
 0x404   : > { %1890 = vadd.xlane.f32.xlu1 %v4849_v58  ;;  %v5689_v58 = vld [vmem:[#allocation26_spill] sm:$0xff]  ;;  %3566 = vpow2.f32 %v1781_v26  ;;  %v1803_v12 = vmul.f32 1.442695, %v1680_v28 }
 0x405   : > { %v1674_v46 = vsub.f32 %v5689_v58, %v1594_v5  ;;  %v4993_v8 = vpop.eup %3550 }
 0x406   : > { %v2282_v55 = vpack.c.bf16 %v3547_v15, %v4993_v8  ;;  %v1937_v52 = vadd.f32 %v4993_v8, %v4979_v10 }
 0x407   : > { %2399 = vmatmul.mubr.bf16.gmra.mxu0 %v2280_v47  ;;  %1911 = vadd.xlane.f32.xlu0 %v4869_v25  ;;  %v1791_v61 = vmul.f32 1.442695, %v1674_v46  ;;  %v4996_v25 = vpop.eup %3552  ;;  %v1679_v47 = vsub.f32 %v5694_v44, %v1609_v4 }
 0x408   : > { %1896 = vadd.xlane.f32.xlu1 %v4857_v7  ;;  %2406 = vmatprep.mubr.bf16.mxu0 %v2283_v13  ;;  %v1604_v7 = vpop.permute.xlu0 %1603  ;;  %v2285_v41 = vpack.c.bf16 %v3549_v35, %v4996_v25  ;;  %v3555_v2 = vpop.eup %3554  ;;  %v1789_v13 = vmul.f32 1.442695, %v1673_v43 }
 0x409   : > { %3568 = vpow2.f32 %v1791_v61  ;;  %v3557_v5 = vpop.eup %3556  ;;  %v1677_v50 = vsub.f32 %v5695_v31, %v1604_v7  ;;  %v1946_v61 = vadd.f32 %v3555_v2, %v3549_v35  ;;  %v5710_v31 = vld [vmem:[#allocation62_spill] sm:$0xff] }
 0x40a   : > { %3570 = vpow2.f32 %v1793_v40  ;;  %v5697_v40 = vld [vmem:[#allocation60_spill] sm:$0xff] }
 0x40b   : > { %1917 = vadd.xlane.f32.xlu0 %v1916_v53  ;;  %3572 = vpow2.f32 %v1803_v12  ;;  %v1940_v53 = vadd.f32 %v3547_v15, %v4973_v63  ;;  %v1797_v26 = vmul.f32 1.442695, %v1677_v50  ;;  %v5700_v12 = vld [vmem:[#allocation55_spill] sm:$0xff] }
 0x40c   : > { %1902 = vadd.xlane.f32.xlu1 %v4863_v36  ;;  %v5693_v36 = vld [vmem:[#allocation30_spill] sm:$0xff]  ;;  %3574 = vpow2.f32 %v1789_v13 }
 0x40d   : > { %v1678_v1 = vsub.f32 %v5693_v36, %v1604_v7  ;;  %v3559_v23 = vpop.eup %3558  ;;  %v1931_v7 = vadd.f32 %v4976_v19, %v4959_v60  ;;  %v1457_v36 = vmul.f32 1.442695, %v1395_v30 }
 0x40e   : > { %v3561_v58 = vpop.eup %3560  ;;  %v2284_v46 = vpack.c.bf16 %v3555_v2, %v3559_v23  ;;  %v1943_v60 = vadd.f32 %v3559_v23, %v4996_v25  ;;  %v1459_v25 = vmul.f32 1.442695, %v1396_v29 }
 0x40f   : > { %2407 = vmatmul.mubr.bf16.gmra.mxu0 %v2282_v55  ;;  %1920 = vadd.xlane.f32.xlu0 %v1919_v22  ;;  %v1799_v20 = vmul.f32 1.442695, %v1678_v1  ;;  %v2287_v32 = vpack.c.bf16 %v3557_v5, %v3561_v58  ;;  %v3563_v34 = vpop.eup %3562  ;;  %v5696_v1 = vld [vmem:[#allocation59_spill] sm:$0xff] }
 0x410   : > { %1908 = vadd.xlane.f32.xlu1 %v4867_v3  ;;  %2414 = vmatprep.mubr.bf16.mxu0 %v2285_v41  ;;  %v1801_v3 = vmul.f32 1.442695, %v1679_v47  ;;  %v3565_v39 = vpop.eup %3564  ;;  %v1952_v63 = vadd.f32 %v3563_v34, %v3557_v5  ;;  %v5698_v44 = vsub.f32 %v5696_v1, %v5697_v40 }
 0x411   : > { %3576 = vpow2.f32 %v1799_v20  ;;  %v3567_v37 = vpop.eup %3566  ;;  %v5707_v20 = vsub.f32 %v4757_v27, %v4766_v33 }
 0x412   : > { %3578 = vpow2.f32 %v1801_v3  ;;  %v2286_v4 = vpack.c.bf16 %v3563_v34, %v3567_v37  ;;  %v1949_v41 = vadd.f32 %v3567_v37, %v3561_v58  ;;  %v1423_v47 = vmul.f32 1.442695, %v5698_v44  ;;  %v5712_v37 = vld [vmem:[#allocation47_spill] sm:$0xff] }
 0x413   : > { %1929 = vadd.xlane.f32.xlu0 %v1928_v0  ;;  %3580 = vpow2.f32 %v1797_v26  ;;  %v5699_v0 = vsub.f32 %v4801_v42, %v4810_v17  ;;  %v5704_v17 = vld [vmem:[#allocation51_spill] sm:$0xff]  ;;  %v5705_v42 = vld [vmem:[#allocation52_spill] sm:$0xff]  ;;  %v1447_v58 = vmul.f32 1.442695, %v5707_v20  ;;  %v5723_v20 = vld [vmem:[#allocation33_spill] sm:$0xff] }
 0x414   : > { %1914 = vadd.xlane.f32.xlu1 %v1913_v62  ;;  %3582 = vpow2.f32 %v1457_v36  ;;  %v5701_v62 = vld [vmem:[#allocation56_spill] sm:$0xff]  ;;  %v5706_v5 = vsub.f32 %v5704_v17, %v5705_v42 }
 0x415   : > { %3584 = vpow2.f32 %v1459_v25  ;;  %v1455_v2 = vmul.f32 1.442695, %v5699_v0  ;;  %v5702_v21 = vsub.f32 %v5700_v12, %v5701_v62  ;;  %v5718_v0 = vld [vmem:[#allocation36_spill] sm:$0xff] }
 0x416   : > { %v3569_v16 = vpop.eup %3568  ;;  %3586 = vpow2.f32 %v1423_v47  ;;  %v1415_v13 = vmul.f32 1.442695, %v5706_v5  ;;  %v5717_v47 = vld [vmem:[#allocation35_spill] sm:$0xff]  ;;  %v5721_v17 = vld [vmem:[#allocation40_spill] sm:$0xff] }
 0x417   : > { %2415 = vmatmul.mubr.bf16.gmra.mxu0 %v2284_v46  ;;  %1935 = vadd.xlane.f32.xlu0 %v1934_v57  ;;  %v2289_v38 = vpack.c.bf16 %v3565_v39, %v3569_v16  ;;  %v3571_v15 = vpop.eup %3570  ;;  %v1419_v24 = vmul.f32 1.442695, %v5702_v21  ;;  %3588 = vpow2.f32 %v1455_v2  ;;  %v5709_v46 = vld [vmem:[#allocation71_spill] sm:$0xff]  ;;  %v5719_v2 = vsub.f32 %v5717_v47, %v5718_v0  ;;  %v1814_v47 = vld [vmem:[#allocation4 + $0x8] sm:$0xff]  ;;  %v5744_v0 = vld [vmem:[#allocation53_spill] sm:$0xff] }
 0x418   : > { %1923 = vadd.xlane.f32.xlu1 %v1922_v59  ;;  %2422 = vmatprep.mubr.bf16.mxu0 %v2287_v32  ;;  %v3573_v56 = vpop.eup %3572  ;;  %v1958_v22 = vadd.f32 %v3571_v15, %v3565_v39 }
 0x419   : > { %v3575_v11 = vpop.eup %3574  ;;  %3590 = vpow2.f32 %v1419_v24  ;;  %v1399_v12 = vmul.f32 1.442695, %v5719_v2  ;;  %v5745_v2 = vld [vmem:[#allocation54_spill] sm:$0xff] }
 0x41a   : > { %v2288_v35 = vpack.c.bf16 %v3571_v15, %v3575_v11  ;;  %v1955_v8 = vadd.f32 %v3575_v11, %v3569_v16  ;;  %3592 = vpow2.f32 %v1451_v9  ;;  %v5713_v16 = vld [vmem:[#allocation48_spill] sm:$0xff]  ;;  %v5715_v15 = vld [vmem:[#allocation81_spill] sm:$0xff]  ;;  %v5720_v9 = vld [vmem:[#allocation39_spill] sm:$0xff] }
 0x41b   : > { %1941 = vadd.xlane.f32.xlu0 %v1940_v53  ;;  %3594 = vpow2.f32 %v1415_v13  ;;  %v5711_v53 = vld [vmem:[#allocation65_spill] sm:$0xff]  ;;  %v5722_v42 = vsub.f32 %v5720_v9, %v5721_v17 }
 0x41c   : > { %1926 = vadd.xlane.f32.xlu1 %v1925_v49  ;;  %3596 = vpow2.f32 %v1447_v58  ;;  %v5724_v58 = vld [vmem:[#allocation34_spill] sm:$0xff] }
 0x41d   : > { %v1403_v5 = vmul.f32 1.442695, %v5722_v42  ;;  %v5747_v42 = vld [vmem:[#allocation45_spill] sm:$0xff] }
 0x41e   : > { %v3577_v55 = vpop.eup %3576 }
 0x41f   : > { %2423 = vmatmul.mubr.bf16.gmra.mxu0 %v2286_v4  ;;  %1947 = vadd.xlane.f32.xlu0 %v1946_v61  ;;  %v3579_v51 = vpop.eup %3578  ;;  %v2291_v19 = vpack.c.bf16 %v3573_v56, %v3577_v55  ;;  %v5714_v4 = vsub.f32 %v5712_v37, %v5713_v16 }
 0x420   : > { %1932 = vadd.xlane.f32.xlu1 %v1931_v7  ;;  %2430 = vmatprep.mubr.bf16.mxu0 %v2289_v38  ;;  %v1964_v28 = vadd.f32 %v3579_v51, %v3573_v56  ;;  %v3581_v54 = vpop.eup %3580 }
 0x421   : > { %v2290_v10 = vpack.c.bf16 %v3579_v51, %v3581_v54  ;;  %v1961_v43 = vadd.f32 %v3581_v54, %v3577_v55  ;;  %v5040_v30 = vpop.eup %3582  ;;  %v1411_v61 = vmul.f32 1.442695, %v5714_v4 }
 0x422   : > { %v5046_v29 = vpop.eup %3584 }
 0x423   : > { %1953 = vadd.xlane.f32.xlu0 %v1952_v63  ;;  %v5052_v23 = vpop.eup %3586 }
 0x424   : > { %1938 = vadd.xlane.f32.xlu1 %v1937_v52  ;;  %v5060_v32 = vpop.eup %3588  ;;  %v5716_v52 = vsub.f32 %v5715_v15, %v4745_v45 }
 0x426   : > { %v5070_v7 = vpop.eup %3590  ;;  %v1443_v56 = vmul.f32 1.442695, %v5716_v52 }
 0x427   : > { %2431 = vmatmul.mubr.bf16.gmra.mxu0 %v2288_v35  ;;  %1959 = vadd.xlane.f32.xlu0 %v1958_v22  ;;  %v5078_v11 = vpop.eup %3592 }
 0x428   : > { %1944 = vadd.xlane.f32.xlu1 %v1943_v60  ;;  %2438 = vmatprep.mubr.bf16.mxu0 %v2291_v19  ;;  %v5083_v22 = vpop.eup %3594 }
 0x429   : > { %v5088_v19 = vpop.eup %3596 }
 0x42b   : > { %1965 = vadd.xlane.f32.xlu0 %v1964_v28 }
 0x42c   : > { %1950 = vadd.xlane.f32.xlu1 %v1949_v41 }
 0x42f   : > { %2439 = vmatmul.mubr.bf16.gmra.mxu0 %v2290_v10 }
 0x430   : > { %1956 = vadd.xlane.f32.xlu1 %v1955_v8 }
 0x434   : > { %1962 = vadd.xlane.f32.xlu1 %v1961_v43 }
 0x445   : > { %2222 = vperm.xlu1 %3433, %v5040_v30  }
 0x449   : > { %2227 = vperm.xlu1 %3433, %v5046_v29  }
 0x44d   : > { %2137 = vperm.xlu1 %3433, %v5052_v23  }
 0x44e   : > { %v1619_v3 = vpop.permute.xlu1 %1618 }
 0x44f   : > { %v1683_v14 = vsub.f32 %v5708_v48, %v1619_v3  ;;  %v1684_v57 = vsub.f32 %v5709_v46, %v1619_v3  ;;  %v1614_v59 = vpop.permute.xlu0 %1613  ;;  %v5725_v3 = vsub.f32 %v5723_v20, %v5724_v58  ;;  %v5727_v46 = vld [vmem:[#allocation63_spill] sm:$0xff] }
 0x450   : > { %v1681_v50 = vsub.f32 %v5710_v31, %v1614_v59  ;;  %v1682_v34 = vsub.f32 %v5711_v53, %v1614_v59  ;;  %v5730_v53 = vld [vmem:[#allocation44_spill] sm:$0xff] }
 0x451   : > { %v1809_v49 = vmul.f32 1.442695, %v1683_v14  ;;  %v1811_v39 = vmul.f32 1.442695, %v1684_v57  ;;  %2217 = vperm.xlu1 %3433, %v5060_v32   ;;  %v1397_v48 = vmul.f32 1.442695, %v5725_v3 }
 0x452   : > { %v1805_v27 = vmul.f32 1.442695, %v1681_v50  ;;  %v1807_v33 = vmul.f32 1.442695, %v1682_v34  ;;  %v5065_v26 = vpop.f32.mrf.mxu0  ;;  %v5726_v14 = vld [vmem:[#allocation61_spill] sm:$0xff]  ;;  %v5729_v50 = vld [vmem:[#allocation43_spill] sm:$0xff] }
 0x453   : > { %3598 = vpow2.f32 %v1809_v49  ;;  %v5728_v57 = vsub.f32 %v5726_v14, %v5727_v46  ;;  %v5731_v34 = vsub.f32 %v5729_v50, %v5730_v53 }
 0x454   : > { %3600 = vpow2.f32 %v1811_v39  ;;  %v2330_v38 = vpop.f32.mrf.mxu0 }
 0x455   : > { %3602 = vpow2.f32 %v1805_v27  ;;  %2127 = vperm.xlu1 %3433, %v5070_v7   ;;  %v1427_v59 = vmul.f32 1.442695, %v5728_v57  ;;  %v1407_v49 = vmul.f32 1.442695, %v5731_v34  ;;  %v5732_v27 = vld [vmem:[#allocation57_spill] sm:$0xff]  ;;  %v5736_v38 = vld [vmem:[#allocation38_spill] sm:$0xff] }
 0x456   : > { %3604 = vpow2.f32 %v1807_v33  ;;  %v5073_v63 = vpop.f32.mrf.mxu0  ;;  %v5733_v33 = vld [vmem:[#allocation58_spill] sm:$0xff]  ;;  %v5750_v57 = vld [vmem:[#allocation84_spill] sm:$0xff] }
 0x457   : > { %3606 = vpow2.f32 %v1411_v61  ;;  %v5734_v37 = vsub.f32 %v5732_v27, %v5733_v33  ;;  %v5735_v61 = vld [vmem:[#allocation37_spill] sm:$0xff] }
 0x458   : > { %v2333_v55 = vpop.f32.mrf.mxu0  ;;  %3608 = vpow2.f32 %v1443_v56  ;;  %v5737_v15 = vsub.f32 %v5735_v61, %v5736_v38 }
 0x459   : > { %2207 = vperm.xlu1 %3433, %v5078_v11   ;;  %3610 = vpow2.f32 %v1399_v12  ;;  %v1421_v16 = vmul.f32 1.442695, %v5734_v37  ;;  %v5738_v55 = vld [vmem:[#allocation86_spill] sm:$0xff]  ;;  %v5746_v12 = vsub.f32 %v5744_v0, %v5745_v2  ;;  %v5753_v37 = vld [vmem:[#allocation49_spill] sm:$0xff]  ;;  %v1815_v2 = vld [vmem:[#allocation4 + $0x10] sm:$0xff] }
 0x45a   : > { %v5081_v35 = vpop.f32.mrf.mxu0  ;;  %3612 = vpow2.f32 %v1403_v5  ;;  %v1401_v52 = vmul.f32 1.442695, %v5737_v15  ;;  %v5748_v5 = vld [vmem:[#allocation46_spill] sm:$0xff] }
 0x45b   : > { %3614 = vpow2.f32 %v1397_v48  ;;  %v1816_v48 = vld [vmem:[#allocation4 + $0x18] sm:$0xff] }
 0x45c   : > { %v2338_v51 = vpop.f32.mrf.mxu0  ;;  %3616 = vpow2.f32 %v1427_v59  ;;  %v5751_v59 = vld [vmem:[#allocation85_spill] sm:$0xff] }
 0x45d   : > { %2117 = vperm.xlu1 %3433, %v5083_v22   ;;  %3618 = vpow2.f32 %v1407_v49  ;;  %v5739_v51 = vld [vmem:[#allocation87_spill] sm:$0xff]  ;;  %v5752_v50 = vsub.f32 %v5750_v57, %v5751_v59  ;;  %v1822_v59 = vld [vmem:[#allocation4 + $0x48] sm:$0xff] }
 0x45e   : > { %v5086_v60 = vpop.f32.mrf.mxu0  ;;  %3620 = vpow2.f32 %v1421_v16  ;;  %v5754_v16 = vld [vmem:[#allocation50_spill] sm:$0xff] }
 0x45f   : > { %3622 = vpow2.f32 %v1401_v52  ;;  %v1449_v53 = vmul.f32 1.442695, %v5752_v50  ;;  %v5755_v61 = vsub.f32 %v5753_v37, %v5754_v16  ;;  %v1817_v37 = vld [vmem:[#allocation4 + $0x20] sm:$0xff] }
 0x460   : > { %v3599_v28 = vpop.eup %3598  ;;  %v2341_v45 = vpop.f32.mrf.mxu0 }
 0x461   : > { %v3601_v41 = vpop.eup %3600  ;;  %2197 = vperm.xlu1 %3433, %v5088_v19   ;;  %v1413_v38 = vmul.f32 1.442695, %v5755_v61 }
 0x462   : > { %v3603_v54 = vpop.eup %3602  ;;  %v5091_v10 = vpop.f32.mrf.mxu0  ;;  %v1970_v24 = vadd.f32 %v3601_v41, %v3599_v28 }
 0x463   : > { %v3605_v8 = vpop.eup %3604  ;;  %v2292_v43 = vpack.c.bf16 %v3599_v28, %v3603_v54  ;;  %v5740_v28 = vsub.f32 %v5738_v55, %v5739_v51  ;;  %v1818_v55 = vld [vmem:[#allocation4 + $0x28] sm:$0xff] }
 0x464   : > { %v5093_v36 = vpop.eup %3606  ;;  %v2346_v25 = vpop.f32.mrf.mxu0  ;;  %v2293_v1 = vpack.c.bf16 %v3601_v41, %v3605_v8  ;;  %v1967_v40 = vadd.f32 %v3605_v8, %v3603_v54  ;;  %v5741_v8 = vld [vmem:[#allocation41_spill] sm:$0xff] }
 0x465   : > { %2107 = vperm.xlu1 %3433, %v5093_v36   ;;  %v5101_v62 = vpop.eup %3608  ;;  %v1453_v45 = vmul.f32 1.442695, %v5740_v28 }
 0x466   : > { %2446 = vmatprep.mubr.bf16.mxu0 %v2293_v1  ;;  %1968 = vadd.xlane.f32.xlu0 %v1967_v40  ;;  %v5096_v44 = vpop.f32.mrf.mxu0  ;;  %v5133_v54 = vpop.eup %3610 }
 0x467   : > { %2447 = vmatmul.mubr.bf16.gmra.mxu0 %v2292_v43  ;;  %v5742_v43 = vld [vmem:[#allocation42_spill] sm:$0xff]  ;;  %3624 = vpow2.f32 %v1453_v45  ;;  %v1846_v9 = vmul.f32 %v5133_v54, %v1814_v47  ;;  %v5144_v17 = vpop.eup %3612 }
 0x468   : > { %v2349_v21 = vpop.f32.mrf.mxu0  ;;  %v5743_v25 = vsub.f32 %v5741_v8, %v5742_v43  ;;  %v5149_v46 = vpop.eup %3614  ;;  %v1848_v27 = vmul.f32 %v5144_v17, %v1816_v48 }
 0x469   : > { %2187 = vperm.xlu1 %3433, %v5101_v62   ;;  %v1417_v21 = vmul.f32 1.442695, %v5746_v12  ;;  %v5156_v49 = vpop.eup %3616  ;;  %v5756_v12 = vld [vmem:[#allocation82_spill] sm:$0xff] }
 0x46a   : > { %1971 = vadd.xlane.f32.xlu0 %v1970_v24  ;;  %v5104_v6 = vpop.f32.mrf.mxu0  ;;  %v1405_v1 = vmul.f32 1.442695, %v5743_v25  ;;  %v5162_v33 = vpop.eup %3618 }
 0x46b   : > { %v5168_v28 = vpop.eup %3620  ;;  %v1850_v8 = vmul.f32 %v5162_v33, %v1818_v55 }
 0x46c   : > { %v2354_v13 = vpop.f32.mrf.mxu0  ;;  %3626 = vpow2.f32 %v1405_v1  ;;  %v1820_v1 = vld [vmem:[#allocation4 + $0x38] sm:$0xff] }
 0x46d   : > { %v5749_v13 = vsub.f32 %v5747_v42, %v5748_v5  ;;  %3628 = vpow2.f32 %v1417_v21  ;;  %v5757_v21 = vld [vmem:[#allocation83_spill] sm:$0xff]  ;;  %v1852_v48 = vmul.f32 %v5093_v36, %v1820_v1  ;;  %v1854_v36 = vmul.f32 %v5083_v22, %v1822_v59  ;;  %v5768_v22 = vld [vmem:[#allocation77_spill] sm:$0xff] }
 0x46e   : > { %v5115_v31 = vpop.f32.mrf.mxu0  ;;  %v1819_v1 = vld [vmem:[#allocation4 + $0x30] sm:$0xff] }
 0x46f   : > { %v1409_v20 = vmul.f32 1.442695, %v5749_v13  ;;  %v5759_v13 = vld [vmem:[#allocation67_spill] sm:$0xff] }
 0x470   : > { %v2357_v39 = vpop.f32.mrf.mxu0 }
 0x471   : > { %v5158_v39 = vpop.permute.xlu1 %2142  ;;  %3630 = vpow2.f32 %v1409_v20  ;;  %v5760_v20 = vld [vmem:[#allocation69_spill] sm:$0xff] }
 0x472   : > { %v5123_v4 = vpop.f32.mrf.mxu0  ;;  %3632 = vpow2.f32 %v1449_v53 }
 0x473   : > { %3634 = vpow2.f32 %v1413_v38  ;;  %v5762_v38 = vld [vmem:[#allocation73_spill] sm:$0xff] }
 0x474   : > { %v2362_v56 = vpop.f32.mrf.mxu0 }
 0x475   : > { %v1813_v56 = vld [vmem:[#allocation4] sm:$0xff] }
 0x476   : > { %v5131_v41 = vpop.f32.mrf.mxu0  ;;  %v1845_v45 = vmul.f32 %v5149_v46, %v1813_v56 }
 0x478   : > { %v2365_v40 = vpop.f32.mrf.mxu0 }
 0x479   : > { %v5174_v40 = vpop.eup %3622 }
 0x47a   : > { %v5141_v24 = vpop.f32.mrf.mxu0  ;;  %v5179_v5 = vpop.eup %3624 }
 0x47b   : > { %v5189_v50 = vpop.eup %3626 }
 0x47c   : > { %v2370_v58 = vpop.f32.mrf.mxu0  ;;  %v1882_v3 = vpop.xlane.xlu0 %1881  ;;  %v1849_v55 = vmul.f32 %v5189_v50, %v1817_v37 }
 0x47d   : > { %v1974_v14 = vadd.f32 %v1882_v3, %v1846_v9  ;;  %v5758_v9 = vsub.f32 %v5756_v12, %v5757_v21  ;;  %v5761_v58 = vsub.f32 %v5759_v13, %v5760_v20  ;;  %v3629_v61 = vpop.eup %3628 }
 0x47e   : > { %v5154_v34 = vpop.f32.mrf.mxu0 }
 0x47f   : > { %2007 = vst.msk [vmem:[#allocation4 + $0x8] sm:$0xff] %vm730_vm2, %v1974_v14  ;;  %v1445_v42 = vmul.f32 1.442695, %v5758_v9  ;;  %v1431_v3 = vmul.f32 1.442695, %v5761_v58  ;;  %v1847_v14 = vmul.f32 %v5174_v40, %v1815_v2 }
 0x480   : > { %2147 = vperm.xlu0 %3432, %v5156_v49   ;;  %v2373_v15 = vpop.f32.mrf.mxu0  ;;  %v1888_v52 = vpop.xlane.xlu0 %1887 }
 0x481   : > { %v1976_v51 = vadd.f32 %v1888_v52, %v1848_v27  ;;  %3636 = vpow2.f32 %v1445_v42  ;;  %v5763_v15 = vld [vmem:[#allocation74_spill] sm:$0xff] }
 0x482   : > { %3638 = vpow2.f32 %v1431_v3  ;;  %v5764_v52 = vsub.f32 %v5762_v38, %v5763_v15  ;;  %v5769_v42 = vld [vmem:[#allocation78_spill] sm:$0xff]  ;;  %v5771_v3 = vld [vmem:[#allocation64_spill] sm:$0xff]  ;;  %v1821_v15 = vld [vmem:[#allocation4 + $0x40] sm:$0xff] }
 0x483   : > { %2009 = vst.msk [vmem:[#allocation4 + $0x18] sm:$0xff] %vm730_vm2, %v1976_v51  ;;  %v5770_v13 = vsub.f32 %v5768_v22, %v5769_v42  ;;  %v5777_v42 = vld [vmem:[#allocation75_spill] sm:$0xff] }
 0x484   : > { %2132 = vperm.xlu0 %3432, %v5168_v28   ;;  %v1879_v43 = vpop.xlane.xlu1 %1878  ;;  %v1894_v25 = vpop.xlane.xlu0 %1893  ;;  %v1435_v56 = vmul.f32 1.442695, %v5764_v52 }
 0x485   : > { %v1973_v47 = vadd.f32 %v1879_v43, %v1845_v45  ;;  %v1978_v0 = vadd.f32 %v1894_v25, %v1850_v8  ;;  %v1824_v45 = vld [vmem:[#allocation4 + $0x58] sm:$0xff]  ;;  %v3631_v8 = vpop.eup %3630  ;;  %v1439_v20 = vmul.f32 1.442695, %v5770_v13 }
 0x486   : > { %v5201_v9 = vpop.eup %3632  ;;  %3640 = vpow2.f32 %v1435_v56  ;;  %v1856_v58 = vmul.f32 %v5070_v7, %v1824_v45  ;;  %v1851_v59 = vmul.f32 %v3631_v8, %v1819_v1  ;;  %v5774_v56 = vld [vmem:[#allocation70_spill] sm:$0xff]  ;;  %v5778_v13 = vld [vmem:[#allocation76_spill] sm:$0xff] }
 0x487   : > { %2006 = vst.msk [vmem:[#allocation4] sm:$0xff] %vm730_vm2, %v1973_v47  ;;  %2011 = vst.msk [vmem:[#allocation4 + $0x28] sm:$0xff] %vm730_vm2, %v1978_v0  ;;  %v5765_v47 = vld [vmem:[#allocation79_spill] sm:$0xff]  ;;  %v5766_v0 = vld [vmem:[#allocation80_spill] sm:$0xff]  ;;  %v3635_v37 = vpop.eup %3634 }
 0x488   : > { %2212 = vperm.xlu0 %3432, %v5179_v5   ;;  %v1900_v57 = vpop.xlane.xlu0 %1899  ;;  %v5767_v2 = vsub.f32 %v5765_v47, %v5766_v0  ;;  %v1853_v45 = vmul.f32 %v3635_v37, %v1821_v15  ;;  %v1823_v0 = vld [vmem:[#allocation4 + $0x50] sm:$0xff]  ;;  %v1832_v15 = vld [vmem:[#allocation4 + $0x98] sm:$0xff] }
 0x489   : > { %v1885_v53 = vpop.xlane.xlu1 %1884  ;;  %v1980_v27 = vadd.f32 %v1900_v57, %v1852_v48  ;;  %v5772_v48 = vld [vmem:[#allocation66_spill] sm:$0xff] }
 0x48a   : > { %v1975_v16 = vadd.f32 %v1885_v53, %v1847_v14  ;;  %v1441_v12 = vmul.f32 1.442695, %v5767_v2  ;;  %v5773_v14 = vsub.f32 %v5771_v3, %v5772_v48  ;;  %v1855_v3 = vmul.f32 %v3629_v61, %v1823_v0 }
 0x48b   : > { %2013 = vst.msk [vmem:[#allocation4 + $0x38] sm:$0xff] %vm730_vm2, %v1980_v27  ;;  %v1826_v27 = vld [vmem:[#allocation4 + $0x68] sm:$0xff] }
 0x48c   : > { %2008 = vst.msk [vmem:[#allocation4 + $0x10] sm:$0xff] %vm730_vm2, %v1975_v16  ;;  %2122 = vperm.xlu0 %3432, %v3629_v61   ;;  %v1906_v51 = vpop.xlane.xlu0 %1905  ;;  %v1429_v57 = vmul.f32 1.442695, %v5773_v14  ;;  %3642 = vpow2.f32 %v1441_v12  ;;  %v1858_v7 = vmul.f32 %v5052_v23, %v1826_v27  ;;  %v1830_v14 = vld [vmem:[#allocation4 + $0x88] sm:$0xff] }
 0x48d   : > { %v1891_v43 = vpop.xlane.xlu1 %1890  ;;  %v1982_v25 = vadd.f32 %v1906_v51, %v1854_v36  ;;  %3644 = vpow2.f32 %v1439_v20  ;;  %v5775_v36 = vld [vmem:[#allocation72_spill] sm:$0xff]  ;;  %v5779_v20 = vsub.f32 %v5777_v42, %v5778_v13 }
 0x48e   : > { %v1977_v21 = vadd.f32 %v1891_v43, %v1849_v55  ;;  %3646 = vpow2.f32 %v1429_v57  ;;  %v5776_v55 = vsub.f32 %v5774_v56, %v5775_v36  ;;  %v1828_v56 = vld [vmem:[#allocation4 + $0x78] sm:$0xff] }
 0x48f   : > { %2015 = vst.msk [vmem:[#allocation4 + $0x48] sm:$0xff] %vm730_vm2, %v1982_v25  ;;  %v1827_v25 = vld [vmem:[#allocation4 + $0x70] sm:$0xff] }
 0x490   : > { %2010 = vst.msk [vmem:[#allocation4 + $0x20] sm:$0xff] %vm730_vm2, %v1977_v21  ;;  %2202 = vperm.xlu0 %3432, %v5201_v9   ;;  %v1912_v53 = vpop.xlane.xlu0 %1911  ;;  %v1433_v51 = vmul.f32 1.442695, %v5776_v55  ;;  %v5219_v21 = vpop.eup %3636  ;;  %v1859_v23 = vmul.f32 %v4894_v18, %v1827_v25 }
 0x491   : > { %v1897_v16 = vpop.xlane.xlu1 %1896  ;;  %v1984_v38 = vadd.f32 %v1912_v53, %v1856_v58  ;;  %v5223_v22 = vpop.eup %3638  ;;  %v1437_v58 = vmul.f32 1.442695, %v5779_v20  ;;  %v1825_v53 = vld [vmem:[#allocation4 + $0x60] sm:$0xff] }
 0x492   : > { %v1979_v52 = vadd.f32 %v1897_v16, %v1851_v59  ;;  %v1862_v18 = vmul.f32 %v5223_v22, %v1830_v14  ;;  %v1857_v61 = vmul.f32 %v5168_v28, %v1825_v53  ;;  %v1860_v28 = vmul.f32 %v5156_v49, %v1828_v56 }
 0x493   : > { %2017 = vst.msk [vmem:[#allocation4 + $0x58] sm:$0xff] %vm730_vm2, %v1984_v38  ;;  %v5232_v16 = vpop.eup %3640 }
 0x494   : > { %2012 = vst.msk [vmem:[#allocation4 + $0x30] sm:$0xff] %vm730_vm2, %v1979_v52  ;;  %2112 = vperm.xlu0 %3432, %v3635_v37   ;;  %v1918_v43 = vpop.xlane.xlu0 %1917 }
 0x495   : > { %v1903_v1 = vpop.xlane.xlu1 %1902  ;;  %v1986_v47 = vadd.f32 %v1918_v43, %v1858_v7  ;;  %v1864_v43 = vmul.f32 %v5232_v16, %v1832_v15 }
 0x496   : > { %v2563_v2 = vld [vmem:[#allocation4 + $0x48] sm:$0xff]  ;;  %v1981_v12 = vadd.f32 %v1903_v1, %v1853_v45 }
 0x497   : > { %3648 = vrcp.f32 %v2563_v2  ;;  %2019 = vst.msk [vmem:[#allocation4 + $0x68] sm:$0xff] %vm730_vm2, %v1986_v47  ;;  %v1834_v1 = vld [vmem:[#allocation4 + $0xa8] sm:$0xff] }
 0x498   : > { %3650 = vpow2.f32 %v1433_v51  ;;  %2014 = vst.msk [vmem:[#allocation4 + $0x40] sm:$0xff] %vm730_vm2, %v1981_v12  ;;  %2192 = vperm.xlu0 %3432, %v5219_v21   ;;  %v1921_v48 = vpop.xlane.xlu0 %1920  ;;  %v1829_v12 = vld [vmem:[#allocation4 + $0x80] sm:$0xff] }
 0x499   : > { %v1909_v57 = vpop.xlane.xlu1 %1908  ;;  %v1987_v59 = vadd.f32 %v1921_v48, %v1859_v23  ;;  %v5236_v51 = vpop.eup %3642 }
 0x49a   : > { %v2565_v27 = vld [vmem:[#allocation4 + $0x58] sm:$0xff]  ;;  %v1983_v37 = vadd.f32 %v1909_v57, %v1855_v3  ;;  %v5240_v25 = vpop.eup %3644 }
 0x49b   : > { %3652 = vrcp.f32 %v2565_v27  ;;  %2020 = vst.msk [vmem:[#allocation4 + $0x70] sm:$0xff] %vm730_vm2, %v1987_v59  ;;  %v5245_v47 = vpop.eup %3646  ;;  %v1866_v13 = vmul.f32 %v5240_v25, %v1834_v1  ;;  %v1836_v3 = vld [vmem:[#allocation4 + $0xb8] sm:$0xff]  ;;  %v1831_v59 = vld [vmem:[#allocation4 + $0x90] sm:$0xff] }
 0x49c   : > { %3654 = vpow2.f32 %v1437_v58  ;;  %2016 = vst.msk [vmem:[#allocation4 + $0x50] sm:$0xff] %vm730_vm2, %v1983_v37  ;;  %2102 = vperm.xlu0 %3432, %v3631_v8   ;;  %v1930_v38 = vpop.xlane.xlu0 %1929  ;;  %v1861_v58 = vmul.f32 %v5245_v47, %v1829_v12  ;;  %v1868_v37 = vmul.f32 %v5101_v62, %v1836_v3  ;;  %v1842_v3 = vld [vmem:[#allocation4 + $0xe8] sm:$0xff] }
 0x49d   : > { %v1915_v52 = vpop.xlane.xlu1 %1914  ;;  %v1990_v7 = vadd.f32 %v1930_v38, %v1862_v18 }
 0x49e   : > { %v2567_v36 = vld [vmem:[#allocation4 + $0x68] sm:$0xff]  ;;  %v1985_v55 = vadd.f32 %v1915_v52, %v1857_v61 }
 0x49f   : > { %v2562_v45 = vld [vmem:[#allocation4 + $0x40] sm:$0xff]  ;;  %3656 = vrcp.f32 %v2567_v36  ;;  %2023 = vst.msk [vmem:[#allocation4 + $0x88] sm:$0xff] %vm730_vm2, %v1990_v7  ;;  %v1838_v52 = vld [vmem:[#allocation4 + $0xc8] sm:$0xff] }
 0x4a0   : > { %3658 = vrcp.f32 %v2562_v45  ;;  %2018 = vst.msk [vmem:[#allocation4 + $0x60] sm:$0xff] %vm730_vm2, %v1985_v55  ;;  %2182 = vperm.xlu0 %3432, %v5236_v51   ;;  %v1936_v8 = vpop.xlane.xlu0 %1935  ;;  %v1833_v55 = vld [vmem:[#allocation4 + $0xa0] sm:$0xff]  ;;  %v1870_v62 = vmul.f32 %v5088_v19, %v1838_v52 }
 0x4a1   : > { %v1924_v0 = vpop.xlane.xlu1 %1923  ;;  %v1992_v2 = vadd.f32 %v1936_v8, %v1864_v43 }
 0x4a2   : > { %v1988_v23 = vadd.f32 %v1924_v0, %v1860_v28  ;;  %v2568_v61 = vld [vmem:[#allocation4 + $0x70] sm:$0xff]  ;;  %v1840_v0 = vld [vmem:[#allocation4 + $0xd8] sm:$0xff] }
 0x4a3   : > { %v2564_v42 = vld [vmem:[#allocation4 + $0x50] sm:$0xff]  ;;  %2025 = vst.msk [vmem:[#allocation4 + $0x98] sm:$0xff] %vm730_vm2, %v1992_v2  ;;  %v1872_v19 = vmul.f32 %v5078_v11, %v1840_v0  ;;  %v1874_v11 = vmul.f32 %v5060_v32, %v1842_v3 }
 0x4a4   : > { %v3649_v20 = vpop.eup %3648  ;;  %3660 = vrcp.f32 %v2564_v42  ;;  %2021 = vst.msk [vmem:[#allocation4 + $0x78] sm:$0xff] %vm730_vm2, %v1988_v23  ;;  %v1942_v49 = vpop.xlane.xlu0 %1941  ;;  %v1835_v42 = vld [vmem:[#allocation4 + $0xb0] sm:$0xff] }
 0x4a5   : > { %v5251_v48 = vpop.eup %3650  ;;  %v1927_v14 = vpop.xlane.xlu1 %1926  ;;  %v1994_v57 = vadd.f32 %v1942_v49, %v1866_v13  ;;  %2697 = vperm.xlu1 %3433, %v3649_v20  }
 0x4a6   : > { %v1989_v53 = vadd.f32 %v1927_v14, %v1861_v58  ;;  %v1863_v38 = vmul.f32 %v5251_v48, %v1831_v59  ;;  %v1867_v58 = vmul.f32 %v5236_v51, %v1835_v42 }
 0x4a7   : > { %v2566_v27 = vld [vmem:[#allocation4 + $0x60] sm:$0xff]  ;;  %2027 = vst.msk [vmem:[#allocation4 + $0xa8] sm:$0xff] %vm730_vm2, %v1994_v57 }
 0x4a8   : > { %v3653_v18 = vpop.eup %3652  ;;  %3662 = vrcp.f32 %v2566_v27  ;;  %2022 = vst.msk [vmem:[#allocation4 + $0x80] sm:$0xff] %vm730_vm2, %v1989_v53  ;;  %v1948_v15 = vpop.xlane.xlu0 %1947  ;;  %v1837_v27 = vld [vmem:[#allocation4 + $0xc0] sm:$0xff] }
 0x4a9   : > { %v5257_v7 = vpop.eup %3654  ;;  %v1933_v56 = vpop.xlane.xlu1 %1932  ;;  %v1996_v36 = vadd.f32 %v1948_v15, %v1868_v37  ;;  %2707 = vperm.xlu1 %3433, %v3653_v18   ;;  %3664 = vrcp.f32 %v2568_v61  ;;  %v2052_v18 = vld [vmem:[#allocation5 + $0x70] sm:$0xff]  ;;  %v1869_v51 = vmul.f32 %v5219_v21, %v1837_v27 }
 0x4aa   : > { %v1991_v45 = vadd.f32 %v1933_v56, %v1863_v38  ;;  %v1865_v8 = vmul.f32 %v5257_v7, %v1833_v55  ;;  %v1839_v55 = vld [vmem:[#allocation4 + $0xd0] sm:$0xff] }
 0x4ab   : > { %v2569_v43 = vld [vmem:[#allocation4 + $0x78] sm:$0xff]  ;;  %2029 = vst.msk [vmem:[#allocation4 + $0xb8] sm:$0xff] %vm730_vm2, %v1996_v36  ;;  %v1871_v21 = vmul.f32 %v5201_v9, %v1839_v55 }
 0x4ac   : > { %v3657_v28 = vpop.eup %3656  ;;  %3666 = vrcp.f32 %v2569_v43  ;;  %2024 = vst.msk [vmem:[#allocation4 + $0x90] sm:$0xff] %vm730_vm2, %v1991_v45  ;;  %v1954_v1 = vpop.xlane.xlu0 %1953  ;;  %v2244_v45 = vmul.f32 %v5158_v39, %v2052_v18 }
 0x4ad   : > { %v3659_v2 = vpop.eup %3658  ;;  %v1939_v12 = vpop.xlane.xlu1 %1938  ;;  %v1998_v23 = vadd.f32 %v1954_v1, %v1870_v62  ;;  %2717 = vperm.xlu1 %3433, %v3657_v28  }
 0x4ae   : > { %v1993_v13 = vadd.f32 %v1939_v12, %v1865_v8  ;;  %2692 = vperm.xlu0 %3432, %v3659_v2   ;;  %v1841_v12 = vld [vmem:[#allocation4 + $0xe0] sm:$0xff] }
 0x4af   : > { %2031 = vst.msk [vmem:[#allocation4 + $0xc8] sm:$0xff] %vm730_vm2, %v1998_v23  ;;  %v5264_v20 = vpop.f32.mrf.mxu0 }
 0x4b0   : > { %2026 = vst.msk [vmem:[#allocation4 + $0xa0] sm:$0xff] %vm730_vm2, %v1993_v13  ;;  %v1960_v49 = vpop.xlane.xlu0 %1959  ;;  %v1873_v13 = vmul.f32 %v5179_v5, %v1841_v12 }
 0x4b1   : > { %v3661_v14 = vpop.eup %3660  ;;  %v2378_v57 = vpop.f32.mrf.mxu0  ;;  %v2000_v53 = vadd.f32 %v1960_v49, %v1872_v19 }
 0x4b2   : > { %v1945_v59 = vpop.xlane.xlu1 %1944  ;;  %2702 = vperm.xlu0 %3432, %v3661_v14  }
 0x4b3   : > { %v1995_v37 = vadd.f32 %v1945_v59, %v1867_v58  ;;  %2033 = vst.msk [vmem:[#allocation4 + $0xd8] sm:$0xff] %vm730_vm2, %v2000_v53  ;;  %v5270_v61 = vpop.f32.mrf.mxu0 }
 0x4b4   : > { %v1966_v38 = vpop.xlane.xlu0 %1965 }
 0x4b5   : > { %2028 = vst.msk [vmem:[#allocation4 + $0xb0] sm:$0xff] %vm730_vm2, %v1995_v37  ;;  %v3663_v15 = vpop.eup %3662  ;;  %v2381_v52 = vpop.f32.mrf.mxu0  ;;  %v2002_v36 = vadd.f32 %v1966_v38, %v1874_v11  ;;  %v2051_v38 = vld [vmem:[#allocation5 + $0x68] sm:$0xff] }
 0x4b6   : > { %v1951_v56 = vpop.xlane.xlu1 %1950  ;;  %v2579_v43 = vld [vmem:[#allocation4 + $0xc8] sm:$0xff]  ;;  %2712 = vperm.xlu0 %3432, %v3663_v15   ;;  %v3665_v32 = vpop.eup %3664 }
 0x4b7   : > { %v1997_v62 = vadd.f32 %v1951_v56, %v1869_v51  ;;  %3668 = vrcp.f32 %v2579_v43  ;;  %2035 = vst.msk [vmem:[#allocation4 + $0xe8] sm:$0xff] %vm730_vm2, %v2002_v36  ;;  %v2384_v28 = vpop.f32.mrf.mxu0 }
 0x4b8   : > { %v2469_v8 = vadd.f32 %v2384_v28, %v2244_v45 }
 0x4b9   : > { %2030 = vst.msk [vmem:[#allocation4 + $0xc0] sm:$0xff] %vm730_vm2, %v1997_v62  ;;  %v3667_v1 = vpop.eup %3666  ;;  %v2386_v0 = vpop.f32.mrf.mxu0 }
 0x4ba   : > { %v1957_v2 = vpop.xlane.xlu1 %1956  ;;  %v2581_v23 = vld [vmem:[#allocation4 + $0xd8] sm:$0xff]  ;;  %2501 = vst.msk [vmem:[#allocation5 + $0x70] sm:$0xff] %vm445_vm0, %v2469_v8  ;;  %2727 = vperm.xlu1 %3433, %v3667_v1   ;;  %2722 = vperm.xlu0 %3432, %v3665_v32  }
 0x4bb   : > { %v1999_v39 = vadd.f32 %v1957_v2, %v1871_v21  ;;  %3670 = vrcp.f32 %v2581_v23  ;;  %v5280_v42 = vpop.f32.mrf.mxu0  ;;  %v2049_v21 = vld [vmem:[#allocation5 + $0x58] sm:$0xff] }
 0x4bd   : > { %2032 = vst.msk [vmem:[#allocation4 + $0xd0] sm:$0xff] %vm730_vm2, %v1999_v39  ;;  %v2389_v19 = vpop.f32.mrf.mxu0 }
 0x4be   : > { %v1963_v58 = vpop.xlane.xlu1 %1962  ;;  %v2583_v9 = vld [vmem:[#allocation4 + $0xe8] sm:$0xff] }
 0x4bf   : > { %v2001_v49 = vadd.f32 %v1963_v58, %v1873_v13  ;;  %3672 = vrcp.f32 %v2583_v9  ;;  %v5284_v14 = vpop.f32.mrf.mxu0  ;;  %v2047_v9 = vld [vmem:[#allocation5 + $0x48] sm:$0xff] }
 0x4c0   : > { %v2578_v3 = vld [vmem:[#allocation4 + $0xc0] sm:$0xff] }
 0x4c1   : > { %3674 = vrcp.f32 %v2578_v3  ;;  %2034 = vst.msk [vmem:[#allocation4 + $0xe0] sm:$0xff] %vm730_vm2, %v2001_v49  ;;  %v2394_v57 = vpop.f32.mrf.mxu0 }
 0x4c2   : > { %v5287_v59 = vpop.permute.xlu1 %2222 }
 0x4c3   : > { %v5289_v27 = vpop.f32.mrf.mxu0 }
 0x4c4   : > { %v2580_v53 = vld [vmem:[#allocation4 + $0xd0] sm:$0xff]  ;;  %v3669_v37 = vpop.eup %3668 }
 0x4c5   : > { %3676 = vrcp.f32 %v2580_v53  ;;  %v2397_v5 = vpop.f32.mrf.mxu0  ;;  %2777 = vperm.xlu1 %3433, %v3669_v37  }
 0x4c6   : > { %v5291_v18 = vpop.permute.xlu1 %2227 }
 0x4c7   : > { %v5293_v51 = vpop.f32.mrf.mxu0 }
 0x4c8   : > { %v2582_v11 = vld [vmem:[#allocation4 + $0xe0] sm:$0xff]  ;;  %v3671_v15 = vpop.eup %3670 }
 0x4c9   : > { %3678 = vrcp.f32 %v2582_v11  ;;  %v2402_v52 = vpop.f32.mrf.mxu0  ;;  %2787 = vperm.xlu1 %3433, %v3671_v15   ;;  %v2045_v15 = vld [vmem:[#allocation5 + $0x38] sm:$0xff] }
 0x4ca   : > { %v2138_v56 = vpop.permute.xlu1 %2137 }
 0x4cb   : > { %v2243_v36 = vmul.f32 %v2138_v56, %v2051_v38  ;;  %v5295_v55 = vpop.f32.mrf.mxu0 }
 0x4cc   : > { %v3673_v45 = vpop.eup %3672 }
 0x4cd   : > { %v2468_v43 = vadd.f32 %v5270_v61, %v2243_v36  ;;  %v2405_v28 = vpop.f32.mrf.mxu0  ;;  %2797 = vperm.xlu1 %3433, %v3673_v45  }
 0x4ce   : > { %v3675_v62 = vpop.eup %3674  ;;  %v2218_v32 = vpop.permute.xlu1 %2217 }
 0x4cf   : > { %2500 = vst.msk [vmem:[#allocation5 + $0x68] sm:$0xff] %vm445_vm0, %v2468_v43  ;;  %2772 = vperm.xlu0 %3432, %v3675_v62   ;;  %v5299_v8 = vpop.f32.mrf.mxu0  ;;  %v2061_v62 = vld [vmem:[#allocation5 + $0xb8] sm:$0xff] }
 0x4d1   : > { %v2410_v0 = vpop.f32.mrf.mxu0 }
 0x4d2   : > { %v3677_v1 = vpop.eup %3676  ;;  %v2128_v2 = vpop.permute.xlu1 %2127 }
 0x4d3   : > { %v2241_v12 = vmul.f32 %v2128_v2, %v2049_v21  ;;  %2782 = vperm.xlu0 %3432, %v3677_v1   ;;  %v5301_v23 = vpop.f32.mrf.mxu0  ;;  %v2065_v2 = vld [vmem:[#allocation5 + $0xd8] sm:$0xff] }
 0x4d5   : > { %v2466_v39 = vadd.f32 %v5154_v34, %v2241_v12  ;;  %v2413_v13 = vpop.f32.mrf.mxu0  ;;  %v2063_v34 = vld [vmem:[#allocation5 + $0xc8] sm:$0xff] }
 0x4d6   : > { %v3679_v61 = vpop.eup %3678  ;;  %v2208_v19 = vpop.permute.xlu1 %2207 }
 0x4d7   : > { %2498 = vst.msk [vmem:[#allocation5 + $0x58] sm:$0xff] %vm445_vm0, %v2466_v39  ;;  %2792 = vperm.xlu0 %3432, %v3679_v61   ;;  %v5305_v58 = vpop.f32.mrf.mxu0  ;;  %v2257_v13 = vmul.f32 %v2208_v19, %v2065_v2 }
 0x4d9   : > { %v2418_v49 = vpop.f32.mrf.mxu0 }
 0x4da   : > { %v2118_v3 = vpop.permute.xlu1 %2117  ;;  %v1843_v49 = vld [vmem:[#allocation4 + $0xf0] sm:$0xff] }
 0x4db   : > { %v2239_v57 = vmul.f32 %v2118_v3, %v2047_v9  ;;  %v2419_v53 = vpop.f32.mrf.mxu0 }
 0x4dd   : > { %v2464_v37 = vadd.f32 %v5131_v41, %v2239_v57  ;;  %v2421_v5 = vpop.f32.mrf.mxu0  ;;  %v1875_v57 = vmul.f32 %v5040_v30, %v1843_v49 }
 0x4de   : > { %v2198_v11 = vpop.permute.xlu1 %2197 }
 0x4df   : > { %2496 = vst.msk [vmem:[#allocation5 + $0x48] sm:$0xff] %vm445_vm0, %v2464_v37  ;;  %v5309_v38 = vpop.f32.mrf.mxu0  ;;  %v2255_v36 = vmul.f32 %v2198_v11, %v2063_v34  ;;  %v2067_v37 = vld [vmem:[#allocation5 + $0xe8] sm:$0xff]  ;;  %v1844_v34 = vld [vmem:[#allocation4 + $0xf8] sm:$0xff] }
 0x4e0   : > { %v1876_v19 = vmul.f32 %v5046_v29, %v1844_v34 }
 0x4e1   : > { %v2426_v52 = vpop.f32.mrf.mxu0 }
 0x4e2   : > { %v2108_v56 = vpop.permute.xlu1 %2107 }
 0x4e3   : > { %v2237_v45 = vmul.f32 %v2108_v56, %v2045_v15  ;;  %v2427_v43 = vpop.f32.mrf.mxu0  ;;  %v2259_v56 = vmul.f32 %v2218_v32, %v2067_v37  ;;  %v2050_v32 = vld [vmem:[#allocation5 + $0x60] sm:$0xff] }
 0x4e4   : > { %v2480_v21 = vadd.f32 %v2427_v43, %v2255_v36 }
 0x4e5   : > { %v2462_v28 = vadd.f32 %v5115_v31, %v2237_v45  ;;  %v2429_v1 = vpop.f32.mrf.mxu0 }
 0x4e6   : > { %v2188_v0 = vpop.permute.xlu1 %2187  ;;  %2512 = vst.msk [vmem:[#allocation5 + $0xc8] sm:$0xff] %vm445_vm0, %v2480_v21 }
 0x4e7   : > { %2494 = vst.msk [vmem:[#allocation5 + $0x38] sm:$0xff] %vm445_vm0, %v2462_v28  ;;  %v2253_v41 = vmul.f32 %v2188_v0, %v2061_v62  ;;  %v5314_v12 = vpop.f32.mrf.mxu0  ;;  %v2053_v28 = vld [vmem:[#allocation5 + $0x78] sm:$0xff] }
 0x4e9   : > { %v2478_v39 = vadd.f32 %v2419_v53, %v2253_v41  ;;  %v2434_v61 = vpop.f32.mrf.mxu0 }
 0x4eb   : > { %2510 = vst.msk [vmem:[#allocation5 + $0xb8] sm:$0xff] %vm445_vm0, %v2478_v39  ;;  %v2435_v9 = vpop.f32.mrf.mxu0  ;;  %v2066_v39 = vld [vmem:[#allocation5 + $0xe0] sm:$0xff] }
 0x4ec   : > { %v2482_v3 = vadd.f32 %v2435_v9, %v2257_v13  ;;  %v2560_v13 = vld [vmem:[#allocation4 + $0x30] sm:$0xff] }
 0x4ed   : > { %v2437_v31 = vpop.f32.mrf.mxu0 }
 0x4ee   : > { %2514 = vst.msk [vmem:[#allocation5 + $0xd8] sm:$0xff] %vm445_vm0, %v2482_v3  ;;  %v2048_v3 = vld [vmem:[#allocation5 + $0x50] sm:$0xff]  ;;  %v2561_v31 = vld [vmem:[#allocation4 + $0x38] sm:$0xff] }
 0x4ef   : > { %v1969_v5 = vpop.xlane.xlu0 %1968  ;;  %v2440_v11 = vpop.f32.mrf.mxu0 }
 0x4f0   : > { %v2003_v15 = vadd.f32 %v1969_v5, %v1875_v57  ;;  %v2576_v5 = vld [vmem:[#allocation4 + $0xb0] sm:$0xff] }
 0x4f1   : > { %v2442_v52 = vpop.f32.mrf.mxu0 }
 0x4f2   : > { %2036 = vst.msk [vmem:[#allocation4 + $0xf0] sm:$0xff] %vm730_vm2, %v2003_v15  ;;  %v2064_v15 = vld [vmem:[#allocation5 + $0xd0] sm:$0xff] }
 0x4f3   : > { %v1972_v53 = vpop.xlane.xlu0 %1971  ;;  %v2443_v36 = vpop.f32.mrf.mxu0 }
 0x4f4   : > { %v2004_v45 = vadd.f32 %v1972_v53, %v1876_v19  ;;  %v2484_v43 = vadd.f32 %v2443_v36, %v2259_v56  ;;  %v2577_v56 = vld [vmem:[#allocation4 + $0xb8] sm:$0xff] }
 0x4f5   : > { %v2445_v62 = vpop.f32.mrf.mxu0 }
 0x4f6   : > { %2037 = vst.msk [vmem:[#allocation4 + $0xf8] sm:$0xff] %vm730_vm2, %v2004_v45 }
 0x4f7   : > { %2516 = vst.msk [vmem:[#allocation5 + $0xe8] sm:$0xff] %vm445_vm0, %v2484_v43 }
 0x4f9   : > { %v2584_v30 = vld [vmem:[#allocation4 + $0xf0] sm:$0xff] }
 0x4fa   : > { %3680 = vrcp.f32 %v2584_v30 }
 0x4fb   : > { %v2148_v21 = vpop.permute.xlu0 %2147 }
 0x4fc   : > { %v2245_v1 = vmul.f32 %v2148_v21, %v2053_v28  ;;  %v2558_v28 = vld [vmem:[#allocation4 + $0x20] sm:$0xff] }
 0x4fd   : > { %v2585_v0 = vld [vmem:[#allocation4 + $0xf8] sm:$0xff] }
 0x4fe   : > { %3682 = vrcp.f32 %v2585_v0  ;;  %v2470_v41 = vadd.f32 %v5280_v42, %v2245_v1  ;;  %v2559_v0 = vld [vmem:[#allocation4 + $0x28] sm:$0xff] }
 0x4ff   : > { %v2133_v29 = vpop.permute.xlu0 %2132  ;;  %3684 = vrcp.f32 %v2560_v13 }
 0x500   : > { %2502 = vst.msk [vmem:[#allocation5 + $0x78] sm:$0xff] %vm445_vm0, %v2470_v41  ;;  %v2242_v2 = vmul.f32 %v2133_v29, %v2050_v32  ;;  %3686 = vrcp.f32 %v2561_v31  ;;  %v2060_v29 = vld [vmem:[#allocation5 + $0xb0] sm:$0xff]  ;;  %v2557_v31 = vld [vmem:[#allocation4 + $0x18] sm:$0xff] }
 0x501   : > { %3688 = vrcp.f32 %v2576_v5 }
 0x502   : > { %v2467_v61 = vadd.f32 %v5264_v20, %v2242_v2  ;;  %3690 = vrcp.f32 %v2577_v56  ;;  %v2555_v56 = vld [vmem:[#allocation4 + $0x8] sm:$0xff] }
 0x503   : > { %v2213_v9 = vpop.permute.xlu0 %2212  ;;  %3692 = vrcp.f32 %v2558_v28  ;;  %v2865_v28 = vld [vmem:[%s5517_s5 + $0x18] sm:$0xff] }
 0x504   : > { %2499 = vst.msk [vmem:[#allocation5 + $0x60] sm:$0xff] %vm445_vm0, %v2467_v61  ;;  %v2258_v49 = vmul.f32 %v2213_v9, %v2066_v39  ;;  %3694 = vrcp.f32 %v2559_v0  ;;  %v2575_v39 = vld [vmem:[#allocation4 + $0xa8] sm:$0xff] }
 0x506   : > { %v2483_v57 = vadd.f32 %v2440_v11, %v2258_v49  ;;  %v2046_v11 = vld [vmem:[#allocation5 + $0x40] sm:$0xff]  ;;  %v2068_v49 = vld [vmem:[#allocation5 + $0xf0] sm:$0xff] }
 0x507   : > { %v3681_v37 = vpop.eup %3680  ;;  %v2123_v34 = vpop.permute.xlu0 %2122 }
 0x508   : > { %2515 = vst.msk [vmem:[#allocation5 + $0xe0] sm:$0xff] %vm445_vm0, %v2483_v57  ;;  %v2240_v42 = vmul.f32 %v2123_v34, %v2048_v3  ;;  %2802 = vperm.xlu0 %3432, %v3681_v37   ;;  %v2572_v37 = vld [vmem:[#allocation4 + $0x90] sm:$0xff] }
 0x50a   : > { %v2465_v20 = vadd.f32 %v5141_v24, %v2240_v42  ;;  %v2062_v24 = vld [vmem:[#allocation5 + $0xc0] sm:$0xff] }
 0x50b   : > { %v3683_v52 = vpop.eup %3682  ;;  %v2203_v19 = vpop.permute.xlu0 %2202 }
 0x50c   : > { %2497 = vst.msk [vmem:[#allocation5 + $0x50] sm:$0xff] %vm445_vm0, %v2465_v20  ;;  %v2256_v53 = vmul.f32 %v2203_v19, %v2064_v15  ;;  %2092 = vperm.xlu0 %3432, %v5189_v50   ;;  %2807 = vperm.xlu1 %3433, %v3683_v52   ;;  %v3685_v30 = vpop.eup %3684  ;;  %v2573_v15 = vld [vmem:[#allocation4 + $0x98] sm:$0xff]  ;;  %v2570_v19 = vld [vmem:[#allocation4 + $0x80] sm:$0xff] }
 0x50d   : > { %v3687_v1 = vpop.eup %3686 }
 0x50e   : > { %v2481_v36 = vadd.f32 %v5314_v12, %v2256_v53  ;;  %v2044_v12 = vld [vmem:[#allocation5 + $0x30] sm:$0xff]  ;;  %v3689_v32 = vpop.eup %3688  ;;  %v2571_v53 = vld [vmem:[#allocation4 + $0x88] sm:$0xff] }
 0x50f   : > { %v2113_v45 = vpop.permute.xlu0 %2112 }
 0x510   : > { %2513 = vst.msk [vmem:[#allocation5 + $0xd0] sm:$0xff] %vm445_vm0, %v2481_v36  ;;  %v2238_v43 = vmul.f32 %v2113_v45, %v2046_v11  ;;  %2172 = vperm.xlu0 %3432, %v5257_v7   ;;  %2097 = vperm.xlu1 %3433, %v5162_v33   ;;  %v2574_v33 = vld [vmem:[#allocation4 + $0xa0] sm:$0xff] }
 0x511   : > { %3696 = vrcp.f32 %v2574_v33 }
 0x512   : > { %v2463_v62 = vadd.f32 %v5123_v4, %v2238_v43  ;;  %3698 = vrcp.f32 %v2575_v39  ;;  %v2633_v39 = vld [vmem:[#allocation5 + $0x78] sm:$0xff] }
 0x513   : > { %v2193_v21 = vpop.permute.xlu0 %2192 }
 0x514   : > { %2495 = vst.msk [vmem:[#allocation5 + $0x40] sm:$0xff] %vm445_vm0, %v2463_v62  ;;  %v2254_v50 = vmul.f32 %v2193_v21, %v2062_v24  ;;  %2682 = vperm.xlu0 %3432, %v3685_v30   ;;  %2177 = vperm.xlu1 %3433, %v5240_v25   ;;  %v3691_v25 = vpop.eup %3690  ;;  %v2863_v62 = vld [vmem:[%s5517_s5 + $0x8] sm:$0xff]  ;;  %v5365_v30 = vld [vmem:[#allocation12] sm:$0xff]  }
 0x515   : > { %v3693_v9 = vpop.eup %3692  ;;  %3328 = vmatprep.mubr.msk.bf16.mxu1 %vm445_vm0, %v5365_v30 }
 0x516   : > { %v2479_v7 = vadd.f32 %v5309_v38, %v2254_v50  ;;  %v3695_v3 = vpop.eup %3694 }
 0x517   : > { %v2103_v41 = vpop.permute.xlu0 %2102 }
 0x518   : > { %2511 = vst.msk [vmem:[#allocation5 + $0xc0] sm:$0xff] %vm445_vm0, %v2479_v7  ;;  %v2236_v4 = vmul.f32 %v2103_v41, %v2044_v12  ;;  %2762 = vperm.xlu0 %3432, %v3689_v32   ;;  %2687 = vperm.xlu1 %3433, %v3687_v1  }
 0x51a   : > { %v2461_v2 = vadd.f32 %v5104_v6, %v2236_v4  ;;  %v2556_v6 = vld [vmem:[#allocation4 + $0x10] sm:$0xff] }
 0x51b   : > { %v2183_v61 = vpop.permute.xlu0 %2182  ;;  %3700 = vrcp.f32 %v2556_v6 }
 0x51c   : > { %2493 = vst.msk [vmem:[#allocation5 + $0x30] sm:$0xff] %vm445_vm0, %v2461_v2  ;;  %v2252_v13 = vmul.f32 %v2183_v61, %v2060_v29  ;;  %2082 = vperm.xlu0 %3432, %v5174_v40   ;;  %2767 = vperm.xlu1 %3433, %v3691_v25   ;;  %v2260_v40 = vmul.f32 %v5287_v59, %v2068_v49  ;;  %3702 = vrcp.f32 %v2557_v31  ;;  %v2632_v61 = vld [vmem:[#allocation5 + $0x70] sm:$0xff]  ;;  %v2042_v49 = vld [vmem:[#allocation5 + $0x20] sm:$0xff] }
 0x51d   : > { %3704 = vrcp.f32 %v2572_v37  ;;  %v2646_v31 = vld [vmem:[#allocation5 + $0xe0] sm:$0xff] }
 0x51e   : > { %v2477_v38 = vadd.f32 %v5305_v58, %v2252_v13  ;;  %v3697_v57 = vpop.eup %3696  ;;  %v2069_v58 = vld [vmem:[#allocation5 + $0xf8] sm:$0xff] }
 0x51f   : > { %v2261_v42 = vmul.f32 %v5291_v18, %v2069_v58 }
 0x520   : > { %2509 = vst.msk [vmem:[#allocation5 + $0xb0] sm:$0xff] %vm445_vm0, %v2477_v38  ;;  %2162 = vperm.xlu0 %3432, %v5251_v48   ;;  %2087 = vperm.xlu1 %3433, %v5144_v17   ;;  %v2554_v48 = vld [vmem:[#allocation4] sm:$0xff]  ;;  %v5374_v50 = vpop.permute.xlu1 %2697 }
 0x521   : > { %3706 = vrcp.f32 %v2554_v48 }
 0x522   : > { %3708 = vrcp.f32 %v2573_v15  ;;  %v2058_v15 = vld [vmem:[#allocation5 + $0xa0] sm:$0xff] }
 0x523   : > { %3710 = vrcp.f32 %v2555_v56 }
 0x524   : > { %2672 = vperm.xlu0 %3432, %v3693_v9   ;;  %2167 = vperm.xlu1 %3433, %v5232_v16   ;;  %v3699_v16 = vpop.eup %3698  ;;  %3712 = vrcp.f32 %v2570_v19  ;;  %v5378_v1 = vpop.permute.xlu1 %2707 }
 0x525   : > { %3714 = vrcp.f32 %v2571_v53 }
 0x527   : > { %v2448_v5 = vpop.f32.mrf.mxu0 }
 0x528   : > { %v2485_v34 = vadd.f32 %v2448_v5, %v2260_v40  ;;  %2752 = vperm.xlu0 %3432, %v3697_v57   ;;  %2677 = vperm.xlu1 %3433, %v3695_v3   ;;  %v3701_v18 = vpop.eup %3700  ;;  %v2718_v7 = vpop.permute.xlu1 %2717 }
 0x529   : > { %v2450_v17 = vpop.f32.mrf.mxu0  ;;  %v5372_v21 = vpop.permute.xlu0 %2692 }
 0x52a   : > { %2517 = vst.msk [vmem:[#allocation5 + $0xf0] sm:$0xff] %vm445_vm0, %v2485_v34 }
 0x52b   : > { %v2451_v20 = vpop.f32.mrf.mxu0 }
 0x52c   : > { %v2486_v52 = vadd.f32 %v2451_v20, %v2261_v42  ;;  %2072 = vperm.xlu0 %3432, %v5149_v46   ;;  %2757 = vperm.xlu1 %3433, %v3699_v16   ;;  %v3703_v46 = vpop.eup %3702  ;;  %v2647_v42 = vld [vmem:[#allocation5 + $0xe8] sm:$0xff]  ;;  %v2630_v20 = vld [vmem:[#allocation5 + $0x60] sm:$0xff] }
 0x52d   : > { %v2453_v59 = vpop.f32.mrf.mxu0  ;;  %v3705_v11 = vpop.eup %3704  ;;  %v2043_v16 = vld [vmem:[#allocation5 + $0x28] sm:$0xff] }
 0x52e   : > { %2518 = vst.msk [vmem:[#allocation5 + $0xf8] sm:$0xff] %vm445_vm0, %v2486_v52  ;;  %v3707_v36 = vpop.eup %3706  ;;  %v5376_v12 = vpop.permute.xlu0 %2702 }
 0x52f   : > { %v3709_v45 = vpop.eup %3708 }
 0x530   : > { %2152 = vperm.xlu0 %3432, %v5245_v47   ;;  %2077 = vperm.xlu1 %3433, %v5133_v54   ;;  %v3711_v43 = vpop.eup %3710  ;;  %v2862_v54 = vld [vmem:[%s5517_s5] sm:$0xff] }
 0x531   : > { %v3713_v47 = vpop.eup %3712  ;;  %v2648_v40 = vld [vmem:[#allocation5 + $0xf0] sm:$0xff] }
 0x532   : > { %v3715_v24 = vpop.eup %3714  ;;  %v2713_v0 = vpop.permute.xlu0 %2712 }
 0x533   : > { %v2822_v19 = vmul.f32 %v2713_v0, %v2630_v20 }
 0x534   : > { %2662 = vperm.xlu0 %3432, %v3701_v18   ;;  %2157 = vperm.xlu1 %3433, %v5223_v22   ;;  %v2864_v22 = vld [vmem:[%s5517_s5 + $0x10] sm:$0xff] }
 0x535   : > { %v2728_v33 = vpop.permute.xlu1 %2727  ;;  %v2649_v57 = vld [vmem:[#allocation5 + $0xf8] sm:$0xff] }
 0x536   : > { %v2723_v32 = vpop.permute.xlu0 %2722  ;;  %v2825_v13 = vmul.f32 %v2728_v33, %v2633_v39 }
 0x537   : > { %v2824_v38 = vmul.f32 %v2723_v32, %v2632_v61 }
 0x538   : > { %2742 = vperm.xlu0 %3432, %v3705_v11   ;;  %2667 = vperm.xlu1 %3433, %v3703_v46  }
 0x539   : > { %v2849_v3 = vpack.c.bf16 %v2825_v13, %v2824_v38 }
 0x53c   : > { %2652 = vperm.xlu0 %3432, %v3707_v36   ;;  %2747 = vperm.xlu1 %3433, %v3709_v45   ;;  %v2924_v45 = vsel %vm445_vm0, %v2849_v3, 0 }
 0x540   : > { %2732 = vperm.xlu0 %3432, %v3713_v47   ;;  %2657 = vperm.xlu1 %3433, %v3711_v43   ;;  %v5382_v4 = vpop.permute.xlu1 %2777  ;;  %v2631_v43 = vld [vmem:[#allocation5 + $0x68] sm:$0xff] }
 0x541   : > { %v2059_v47 = vld [vmem:[#allocation5 + $0xa8] sm:$0xff] }
 0x544   : > { %2868 = vperm.xlu0 %3432, %v2862_v54   ;;  %2737 = vperm.xlu1 %3433, %v3715_v24   ;;  %v2788_v2 = vpop.permute.xlu1 %2787  ;;  %v2823_v54 = vmul.f32 %v2718_v7, %v2631_v43 }
 0x546   : > { %v2848_v0 = vpack.c.bf16 %v2823_v54, %v2822_v19  ;;  %v2624_v54 = vld [vmem:[#allocation5 + $0x30] sm:$0xff] }
 0x548   : > { %2878 = vperm.xlu0 %3432, %v2864_v22   ;;  %2873 = vperm.xlu1 %3433, %v2863_v62   ;;  %v2798_v9 = vpop.permute.xlu1 %2797  ;;  %v2644_v22 = vld [vmem:[#allocation5 + $0xd0] sm:$0xff] }
 0x549   : > { %v2839_v52 = vmul.f32 %v2798_v9, %v2647_v42  ;;  %v2921_v9 = vsel %vm445_vm0, %v2848_v0, 0 }
 0x54a   : > { %v5380_v41 = vpop.permute.xlu0 %2772 }
 0x54c   : > { %2883 = vperm.xlu1 %3433, %v2865_v28  }
 0x54e   : > { %v2783_v29 = vpop.permute.xlu0 %2782 }
 0x54f   : > { %v2836_v32 = vmul.f32 %v2783_v29, %v2644_v22  ;;  %v2629_v29 = vld [vmem:[#allocation5 + $0x58] sm:$0xff] }
 0x552   : > { %v2793_v25 = vpop.permute.xlu0 %2792 }
 0x553   : > { %v2838_v5 = vmul.f32 %v2793_v25, %v2646_v31  ;;  %v2645_v25 = vld [vmem:[#allocation5 + $0xd8] sm:$0xff] }
 0x554   : > { %v2837_v39 = vmul.f32 %v2788_v2, %v2645_v25  ;;  %v2642_v2 = vld [vmem:[#allocation5 + $0xc0] sm:$0xff] }
 0x555   : > { %v2856_v46 = vpack.c.bf16 %v2839_v52, %v2838_v5  ;;  %v2626_v5 = vld [vmem:[#allocation5 + $0x40] sm:$0xff]  ;;  %v2627_v52 = vld [vmem:[#allocation5 + $0x48] sm:$0xff] }
 0x556   : > { %v2855_v38 = vpack.c.bf16 %v2837_v39, %v2836_v32 }
 0x583   : > { %v2803_v6 = vpop.permute.xlu0 %2802 }
 0x584   : > { %v2840_v34 = vmul.f32 %v2803_v6, %v2648_v40  ;;  %v2040_v6 = vld [vmem:[#allocation5 + $0x10] sm:$0xff]  ;;  %v2834_v40 = vmul.f32 %v5380_v41, %v2642_v2 }
 0x587   : > { %v2808_v37 = vpop.permute.xlu1 %2807  ;;  %v2093_v58 = vpop.permute.xlu0 %2092 }
 0x588   : > { %v2841_v17 = vmul.f32 %v2808_v37, %v2649_v57  ;;  %v2234_v48 = vmul.f32 %v2093_v58, %v2042_v49  ;;  %v2821_v49 = vmul.f32 %v5378_v1, %v2629_v29  ;;  %v2041_v37 = vld [vmem:[#allocation5 + $0x18] sm:$0xff]  ;;  %v2056_v58 = vld [vmem:[#allocation5 + $0x90] sm:$0xff] }
 0x58a   : > { %v2857_v59 = vpack.c.bf16 %v2841_v17, %v2840_v34  ;;  %v2459_v56 = vadd.f32 %v5091_v10, %v2234_v48  ;;  %v2818_v48 = vmul.f32 %v5372_v21, %v2626_v5  ;;  %v2641_v21 = vld [vmem:[#allocation5 + $0xb8] sm:$0xff] }
 0x58b   : > { %v2098_v18 = vpop.permute.xlu1 %2097  ;;  %v2173_v53 = vpop.permute.xlu0 %2172 }
 0x58c   : > { %2491 = vst.msk [vmem:[#allocation5 + $0x20] sm:$0xff] %vm445_vm0, %v2459_v56  ;;  %v2235_v11 = vmul.f32 %v2098_v18, %v2043_v16  ;;  %v2250_v36 = vmul.f32 %v2173_v53, %v2058_v15  ;;  %3332 = vmatprep.subr.msk.bf16.mxu1 %vm445_vm0, %v2857_v59  ;;  %v2057_v59 = vld [vmem:[#allocation5 + $0x98] sm:$0xff]  ;;  %v2819_v56 = vmul.f32 %v5374_v50, %v2627_v52 }
 0x58d   : > { %3313 = vmatpush3.bf16.xpose.msra.mxu1 %v2924_v45  ;;  %v2625_v45 = vld [vmem:[#allocation5 + $0x38] sm:$0xff] }
 0x58e   : > { %v2460_v24 = vadd.f32 %v5096_v44, %v2235_v11  ;;  %v2475_v10 = vadd.f32 %v5299_v8, %v2250_v36  ;;  %3333 = vmatprep.subr.msk.bf16.mxu1 %vm445_vm0, %v2856_v46  ;;  %v2628_v44 = vld [vmem:[#allocation5 + $0x50] sm:$0xff]  ;;  %v2846_v53 = vpack.c.bf16 %v2819_v56, %v2818_v48 }
 0x58f   : > { %v2178_v62 = vpop.permute.xlu1 %2177  ;;  %v5391_v28 = vpop.permute.xlu0 %2682  ;;  %v2820_v13 = vmul.f32 %v5376_v12, %v2628_v44  ;;  %v2643_v12 = vld [vmem:[#allocation5 + $0xc8] sm:$0xff]  ;;  %v2640_v36 = vld [vmem:[#allocation5 + $0xb0] sm:$0xff] }
 0x590   : > { %2492 = vst.msk [vmem:[#allocation5 + $0x28] sm:$0xff] %vm445_vm0, %v2460_v24  ;;  %2507 = vst.msk [vmem:[#allocation5 + $0xa0] sm:$0xff] %vm445_vm0, %v2475_v10  ;;  %v2251_v33 = vmul.f32 %v2178_v62, %v2059_v47  ;;  %v2835_v34 = vmul.f32 %v5382_v4, %v2643_v12  ;;  %v2915_v10 = vsel %vm445_vm0, %v2846_v53, 0  ;;  %v2816_v22 = vmul.f32 %v5391_v28, %v2624_v54  ;;  %v2038_v62 = vld [vmem:[#allocation5] sm:$0xff]  ;;  %v2039_v44 = vld [vmem:[#allocation5 + $0x8] sm:$0xff] }
 0x591   : > { %v2847_v31 = vpack.c.bf16 %v2821_v49, %v2820_v13 }
 0x592   : > { %v2476_v7 = vadd.f32 %v5301_v23, %v2251_v33  ;;  %v2854_v16 = vpack.c.bf16 %v2835_v34, %v2834_v40 }
 0x593   : > { %v2688_v61 = vpop.permute.xlu1 %2687  ;;  %v2763_v8 = vpop.permute.xlu0 %2762  ;;  %v2918_v41 = vsel %vm445_vm0, %v2847_v31, 0  ;;  %v2055_v31 = vld [vmem:[#allocation5 + $0x88] sm:$0xff] }
 0x594   : > { %2508 = vst.msk [vmem:[#allocation5 + $0xa8] sm:$0xff] %vm445_vm0, %v2476_v7  ;;  %v2832_v43 = vmul.f32 %v2763_v8, %v2640_v36 }
 0x595   : > { %3315 = vmatpush3.bf16.xpose.msra.mxu1 %v2921_v9 }
 0x596   : > { %3334 = vmatprep.subr.msk.bf16.mxu1 %vm445_vm0, %v2855_v38 }
 0x597   : > { %v2768_v3 = vpop.permute.xlu1 %2767  ;;  %v2083_v23 = vpop.permute.xlu0 %2082  ;;  %v2638_v7 = vld [vmem:[#allocation5 + $0xa0] sm:$0xff]  ;;  %v2623_v38 = vld [vmem:[#allocation5 + $0x28] sm:$0xff] }
 0x598   : > { %v2232_v57 = vmul.f32 %v2083_v23, %v2040_v6  ;;  %v2833_v46 = vmul.f32 %v2768_v3, %v2641_v21  ;;  %v2622_v23 = vld [vmem:[#allocation5 + $0x20] sm:$0xff] }
 0x59a   : > { %v2457_v17 = vadd.f32 %v5081_v35, %v2232_v57  ;;  %v2853_v24 = vpack.c.bf16 %v2833_v46, %v2832_v43 }
 0x59b   : > { %v2088_v1 = vpop.permute.xlu1 %2087  ;;  %v2163_v42 = vpop.permute.xlu0 %2162  ;;  %v2639_v32 = vld [vmem:[#allocation5 + $0xa8] sm:$0xff] }
 0x59c   : > { %2489 = vst.msk [vmem:[#allocation5 + $0x10] sm:$0xff] %vm445_vm0, %v2457_v17  ;;  %v2233_v15 = vmul.f32 %v2088_v1, %v2041_v37  ;;  %v2248_v20 = vmul.f32 %v2163_v42, %v2056_v58 }
 0x59d   : > { %3317 = vmatpush3.bf16.xpose.msra.mxu1 %v2918_v41 }
 0x59e   : > { %v2458_v4 = vadd.f32 %v5086_v60, %v2233_v15  ;;  %v2473_v35 = vadd.f32 %v5293_v51, %v2248_v20  ;;  %3335 = vmatprep.subr.msk.bf16.mxu1 %vm445_vm0, %v2854_v16  ;;  %v2817_v60 = vmul.f32 %v2688_v61, %v2625_v45  ;;  %v2054_v61 = vld [vmem:[#allocation5 + $0x80] sm:$0xff] }
 0x59f   : > { %v2168_v19 = vpop.permute.xlu1 %2167  ;;  %v2673_v18 = vpop.permute.xlu0 %2672 }
 0x5a0   : > { %2490 = vst.msk [vmem:[#allocation5 + $0x18] sm:$0xff] %vm445_vm0, %v2458_v4  ;;  %2505 = vst.msk [vmem:[#allocation5 + $0x90] sm:$0xff] %vm445_vm0, %v2473_v35  ;;  %v2249_v11 = vmul.f32 %v2168_v19, %v2057_v59  ;;  %v2845_v0 = vpack.c.bf16 %v2817_v60, %v2816_v22  ;;  %v2814_v40 = vmul.f32 %v2673_v18, %v2622_v23 }
 0x5a2   : > { %v2474_v50 = vadd.f32 %v5295_v55, %v2249_v11  ;;  %v2912_v28 = vsel %vm445_vm0, %v2845_v0, 0 }
 0x5a3   : > { %v2678_v47 = vpop.permute.xlu1 %2677  ;;  %v2753_v51 = vpop.permute.xlu0 %2752  ;;  %v2620_v42 = vld [vmem:[#allocation5 + $0x10] sm:$0xff] }
 0x5a4   : > { %2506 = vst.msk [vmem:[#allocation5 + $0x98] sm:$0xff] %vm445_vm0, %v2474_v50  ;;  %v2830_v8 = vmul.f32 %v2753_v51, %v2638_v7  ;;  %v2815_v6 = vmul.f32 %v2678_v47, %v2623_v38  ;;  %v3014_v7 = vld [vmem:[%s4066_s6 + $0x8] sm:$0xff] }
 0x5a5   : > { %3319 = vmatpush3.bf16.xpose.msra.mxu1 %v2915_v10 }
 0x5a6   : > { %3336 = vmatprep.subr.msk.bf16.mxu1 %vm445_vm0, %v2853_v24  ;;  %v2844_v58 = vpack.c.bf16 %v2815_v6, %v2814_v40  ;;  %v3459_v24 = vld [vmem:[#allocation12 + $0x8] sm:$0xff]   ;;  %v3017_v40 = vld [vmem:[%s4066_s6 + $0x20] sm:$0xff] }
 0x5a7   : > { %v2758_v33 = vpop.permute.xlu1 %2757  ;;  %v2073_v25 = vpop.permute.xlu0 %2072  ;;  %v2621_v17 = vld [vmem:[#allocation5 + $0x18] sm:$0xff]  ;;  %v2636_v15 = vld [vmem:[#allocation5 + $0x90] sm:$0xff] }
 0x5a8   : > { %v2831_v55 = vmul.f32 %v2758_v33, %v2639_v32  ;;  %v2230_v39 = vmul.f32 %v2073_v25, %v2038_v62  ;;  %v3004_v62 = vstv %s3003_s16  ;;  %v3013_v32 = vld [vmem:[%s4066_s6] sm:$0xff] }
 0x5aa   : > { %v2455_v13 = vadd.f32 %v5065_v26, %v2230_v39  ;;  %v2852_v49 = vpack.c.bf16 %v2831_v55, %v2830_v8 }
 0x5ab   : > { %v2078_v9 = vpop.permute.xlu1 %2077  ;;  %v2153_v29 = vpop.permute.xlu0 %2152  ;;  %v2637_v20 = vld [vmem:[#allocation5 + $0x98] sm:$0xff] }
 0x5ac   : > { %2487 = vst.msk [vmem:[#allocation5] sm:$0xff] %vm445_vm0, %v2455_v13  ;;  %v2231_v2 = vmul.f32 %v2078_v9, %v2039_v44  ;;  %v2246_v3 = vmul.f32 %v2153_v29, %v2054_v61  ;;  %v3015_v13 = vld [vmem:[%s4066_s6 + $0x10] sm:$0xff] }
 0x5ad   : > { %3321 = vmatpush3.bf16.xpose.msra.mxu1 %v2912_v28 }
 0x5ae   : > { %v2456_v57 = vadd.f32 %v5073_v63, %v2231_v2  ;;  %v2471_v12 = vadd.f32 %v5284_v14, %v2246_v3  ;;  %3337 = vmatprep.subr.msk.bf16.mxu1 %vm445_vm0, %v2852_v49  ;;  %v2909_v14 = vsel %vm445_vm0, %v2844_v58, 0  ;;  %v3016_v49 = vld [vmem:[%s4066_s6 + $0x18] sm:$0xff] }
 0x5af   : > { %v2158_v26 = vpop.permute.xlu1 %2157  ;;  %v2663_v37 = vpop.permute.xlu0 %2662 }
 0x5b0   : > { %2488 = vst.msk [vmem:[#allocation5 + $0x8] sm:$0xff] %vm445_vm0, %v2456_v57  ;;  %2503 = vst.msk [vmem:[#allocation5 + $0x80] sm:$0xff] %vm445_vm0, %v2471_v12  ;;  %v2247_v5 = vmul.f32 %v2158_v26, %v2055_v31  ;;  %v2812_v16 = vmul.f32 %v2663_v37, %v2620_v42 }
 0x5b2   : > { %v2472_v34 = vadd.f32 %v5289_v27, %v2247_v5  ;;  %v3018_v5 = vld [vmem:[%s4066_s6 + $0x28] sm:$0xff] }
 0x5b3   : > { %v2668_v48 = vpop.permute.xlu1 %2667  ;;  %v2743_v1 = vpop.permute.xlu0 %2742  ;;  %v2618_v53 = vld [vmem:[#allocation5] sm:$0xff] }
 0x5b4   : > { %2504 = vst.msk [vmem:[#allocation5 + $0x88] sm:$0xff] %vm445_vm0, %v2472_v34  ;;  %v2813_v63 = vmul.f32 %v2668_v48, %v2621_v17  ;;  %v2828_v56 = vmul.f32 %v2743_v1, %v2636_v15 }
 0x5b5   : > { %3323 = vmatpush3.bf16.xpose.msra.mxu1 %v2909_v14 }
 0x5b6   : > { %v2843_v59 = vpack.c.bf16 %v2813_v63, %v2812_v16  ;;  %v3019_v63 = vld [vmem:[%s4066_s6 + $0x30] sm:$0xff] }
 0x5b7   : > { %v2748_v41 = vpop.permute.xlu1 %2747  ;;  %v2653_v52 = vpop.permute.xlu0 %2652  ;;  %v2619_v27 = vld [vmem:[#allocation5 + $0x8] sm:$0xff]  ;;  %v2634_v36 = vld [vmem:[#allocation5 + $0x80] sm:$0xff] }
 0x5b8   : > { %v2829_v4 = vmul.f32 %v2748_v41, %v2637_v20  ;;  %v2906_v18 = vsel %vm445_vm0, %v2843_v59, 0  ;;  %v2810_v11 = vmul.f32 %v2653_v52, %v2618_v53  ;;  %v3020_v20 = vld [vmem:[%s4066_s6 + $0x38] sm:$0xff]  ;;  %s3892_s6 = smov [#allocation13]  }
 0x5b9   : > { %s3800_s12 = sshll.u32 %s3892_s6, 4  ;;  %s3801_s12 = int_to_ptr.vmem [resolvable:$false] %s3800_s12 }
 0x5ba   : > { %v2851_v35 = vpack.c.bf16 %v2829_v4, %v2828_v56  ;;  %s3802_s14 = scalar_lea.vmem %s3801_s12, 2048  ;;  %p3803_p13 = scmp.lt.s32.totalorder %s5462_s19, %s3801_s12 }
 0x5bb   : > { %v2658_v21 = vpop.permute.xlu1 %2657  ;;  %v2733_v46 = vpop.permute.xlu0 %2732  ;;  %v2635_v45 = vld [vmem:[#allocation5 + $0x88] sm:$0xff]  ;;  %p3804_p0 = scmp.lt.s32.totalorder %s3802_s14, %s3796_s29 }
 0x5bc   : > { %v2811_v19 = vmul.f32 %v2658_v21, %v2619_v27  ;;  %3338 = vmatprep.subr.msk.bf16.mxu1 %vm445_vm0, %v2851_v35  ;;  %v2826_v60 = vmul.f32 %v2733_v46, %v2634_v36 }
 0x5bd   : > { %3325 = vmatpush3.bf16.xpose.msra.mxu1 %v2906_v18  ;;  %p3805_p5 = por %p3804_p0, %p3803_p13 }
 0x5be   : > { %v2842_v50 = vpack.c.bf16 %v2811_v19, %v2810_v11 }
 0x5bf   : > { %v2738_v43 = vpop.permute.xlu1 %2737  ;;  %v2869_v10 = vpop.permute.xlu0 %2868  ;;  %p3806_p10 = pnand %p3805_p5, %p3799_p2 }
 0x5c0   : > { %v2827_v47 = vmul.f32 %v2738_v43, %v2635_v45  ;;  %v2903_v54 = vsel %vm445_vm0, %v2842_v50, 0 }
 0x5c2   : > { %v2850_v51 = vpack.c.bf16 %v2827_v47, %v2826_v60 }
 0x5c3   : > { %v2874_v39 = vpop.permute.xlu1 %2873  ;;  %v2879_v6 = vpop.permute.xlu0 %2878 }
 0x5c4   : > { %3339 = vmatprep.subr.msk.bf16.mxu1 %vm445_vm0, %v2850_v51 }
 0x5c5   : > { %3327 = vmatpush3.bf16.xpose.msra.mxu1 %v2903_v54 }
 0x5c7   : > { %v2884_v58 = vpop.permute.xlu1 %2883 }
 0x5cc   : > { %3329 = vmatmul.mubr.msk.bf16.vlgmr.msra.gmra.mxu1 %vm445_vm0, %v5365_v30 }
 0x5cd   : > { %3330 = vmatprep.mubr.msk.bf16.mxu1 %vm445_vm0, %v3459_v24 }
 0x5d4   : > { %3331 = vmatmul.mubr.msk.bf16.gmra.mxu1 %vm445_vm0, %v3459_v24 }
 0x68c   : > { %v2984_v22 = vpop.f32.mrf.mxu1 }
 0x68d   : > { %v2985_v0 = vadd.f32 %v2984_v22, %v2869_v10 }
 0x68e   : > { %v2986_v33 = vpop.f32.mrf.mxu1 }
 0x68f   : > { %v3005_v25 = vmul.f32 %v3004_v62, %v2985_v0  ;;  %v2987_v55 = vadd.f32 %v2986_v33, %v2869_v10 }
 0x690   : > { %v2988_v44 = vpop.f32.mrf.mxu1 }
 0x691   : > { %v3021_v30 = vadd.f32 %v3013_v32, %v3005_v25  ;;  %v3006_v61 = vmul.f32 %v3004_v62, %v2987_v55  ;;  %v2989_v8 = vadd.f32 %v2988_v44, %v2874_v39 }
 0x692   : > { %v2990_v38 = vpop.f32.mrf.mxu1 }
 0x693   : > { %3029 = vst [vmem:[%s5442_s21] sm:$0xff] %v3021_v30  ;;  %v3022_v9 = vadd.f32 %v3014_v7, %v3006_v61  ;;  %v3007_v29 = vmul.f32 %v3004_v62, %v2989_v8  ;;  %v2991_v28 = vadd.f32 %v2990_v38, %v2874_v39 }
 0x694   : > { %v2994_v2 = vpop.f32.mrf.mxu1 }
 0x695   : > { %3030 = vst [vmem:[%s5442_s21 + $0x8] sm:$0xff] %v3022_v9  ;;  %v3023_v3 = vadd.f32 %v3015_v13, %v3007_v29  ;;  %v3008_v23 = vmul.f32 %v3004_v62, %v2991_v28  ;;  %v2995_v31 = vadd.f32 %v2994_v2, %v2879_v6 }
 0x696   : > { %v2996_v57 = vpop.f32.mrf.mxu1 }
 0x697   : > { %3031 = vst [vmem:[%s5442_s21 + $0x10] sm:$0xff] %v3023_v3  ;;  %v3024_v12 = vadd.f32 %v3016_v49, %v3008_v23  ;;  %v3009_v26 = vmul.f32 %v3004_v62, %v2995_v31  ;;  %v2997_v37 = vadd.f32 %v2996_v57, %v2879_v6 }
 0x698   : > { %v2998_v34 = vpop.f32.mrf.mxu1 }
 0x699   : > { %3032 = vst [vmem:[%s5442_s21 + $0x18] sm:$0xff] %v3024_v12  ;;  %v3025_v17 = vadd.f32 %v3017_v40, %v3009_v26  ;;  %v3010_v48 = vmul.f32 %v3004_v62, %v2997_v37  ;;  %v2999_v1 = vadd.f32 %v2998_v34, %v2884_v58 }
 0x69a   : > { %v3000_v14 = vpop.f32.mrf.mxu1 }
 0x69b   : > { %3033 = vst [vmem:[%s5442_s21 + $0x20] sm:$0xff] %v3025_v17  ;;  %v3026_v42 = vadd.f32 %v3018_v5, %v3010_v48  ;;  %v3011_v16 = vmul.f32 %v3004_v62, %v2999_v1  ;;  %v3001_v15 = vadd.f32 %v3000_v14, %v2884_v58 }
 0x69d   : > { %3034 = vst [vmem:[%s5442_s21 + $0x28] sm:$0xff] %v3026_v42  ;;  %v3027_v41 = vadd.f32 %v3019_v63, %v3011_v16  ;;  %v3012_v52 = vmul.f32 %v3004_v62, %v3001_v15 }
 0x69f   : > { %3035 = vst [vmem:[%s5442_s21 + $0x30] sm:$0xff] %v3027_v41  ;;  %v3028_v59 = vadd.f32 %v3020_v20, %v3012_v52 }
 0x6a1   : > { %3036 = vst [vmem:[%s5442_s21 + $0x38] sm:$0xff] %v3028_v59 }
 0x6a2   : > { %3809 = shalt.err (!%p3806_p10)
}
 0x6a3   : > { %s3810_s25 = scalar_lea.hbm %s5460_s2, 1024  ;;  %s3814_s18 = scalar_lea.hbm %s5519_s7, 2048 }
 0x6a4   : > { %p3811_p1 = scmp.ne.s32.totalorder %s5460_s2, %s3810_s25  ;;  %p3815_p12 = scmp.lt.s32.totalorder %s5460_s2, %s5519_s7 }
 0x6a5   : > { %p3816_p3 = scmp.lt.s32.totalorder %s3814_s18, %s3810_s25 }
 0x6a6   : > { %p3812_p4 = pnand %p3811_p1, %p4033_p7 }
 0x6a7   : > { %p3817_p8 = por %p3816_p3, %p3815_p12 }
 0x6a8   : > { %p3813_p6 = pneg %p3812_p4 }
 0x6aa   : > { %p3818_p9 = pnand %p3817_p8, %p3813_p6 }
 0x6ac   : > { %3821 = shalt.err (!%p3818_p9)
}
 0x6ad   : > { %s3893_s4 = smov 256   ;;  %s3894_s23 = smov 16  }
 0x6ae   : > { %3350 = dma.vmem_to_hbm [thread:$0]  (%p4033_p7), %s5462_s19, 1024, %s5460_s2, %s3038_s10, %s3893_s4, %s3893_s4, %s3894_s23  }
 0x6af PF: > { %s3068_s24 = sand.u32 1, %s3860_s26   ;;  %p5780_p11 = scmp.ne.s32.totalorder %s5599_s13, 0 }
 0x6b0   : > { %p5781_p2 = scmp.ge.s32.totalorder %s3880_s8, 2  ;;  %s3069_s29 = scalar_lea.sflag [#allocation9], %s3068_s24 }
 0x6b2   : > { %p3364_p13 = pnand %p5781_p2, %p5780_p11 }
 0x6b4   : > { %p3365_p0 = pneg %p3364_p13 }
 0x6b6   : > { %3855 = dma.done.wait (%p3365_p0), %s3069_s29, 1024  }
 0x6b7   : > { %3857 = vsyncadd (%p3365_p0), %s3069_s29, 4294966272  ;;  %s25_s8 = sadd.s32 1, %s3880_s8   ;;  %s5782_s26 = smov %s3864_s27 }
 0x6b8   : > { %p22_p5 = scmp.ge.s32.totalorder %s25_s8, 4   ;;  %s5783_s27 = smov %s3868_s28 }
 0x6b9   : > { %s5784_s28 = smov %s4042_s22  ;;  %s5785_s29 = smov %s3876_s30 }
 0x6ba   : > { %s5786_s30 = smov %s5788_s15  ;;  %24 = sbr.rel (!%p22_p5) target bundleno = 11 (0xb), region = 112 }
 0x6bf   :  { %3074 = vsyncpa [#allocation8], 1 }
 0x6c0   :  { %3076 = vsyncpa [#allocation8 + $0x1], 1 }
 0x6c1   :  { %3077 = vsyncpa [#allocation11], 1 }
 0x6c2   :  { %3078 = vsyncpa [#allocation9], 1 }
 0x6c3   :  { %3080 = vsyncpa [#allocation9 + $0x1], 1 }

</bundles_post_ra>
